<compile_context>
chip_gen: v7x
topology: tpu7x:2x2x1
jax: 0.10.0
libtpu: 0.0.40
codegen_flags: <defaults>
</compile_context>

<pallas_src>
import functools

import jax
import jax.numpy as jnp
from jax.experimental import pallas as pl
from jax.experimental.pallas import tpu as pltpu

BN_EPS = 1e-5
TRAIN_MEAN = jnp.array([0.485, 0.456, 0.406], jnp.float32)
TRAIN_STD = jnp.array([0.229, 0.224, 0.225], jnp.float32)


def _round_up(x, m):
    return ((x + m - 1) // m) * m


@functools.lru_cache(maxsize=None)
def _vmem_limit_bytes():
    cap = 64 * 1024 * 1024
    try:
        cap = int(pltpu.get_tpu_info().vmem_capacity_bytes)
    except Exception:
        pass
    # ~40 MiB on v7x (64 MiB physical), capped at 64 MiB on v5e/v6e (128 MiB).
    return int(min(64 * 1024 * 1024, max(32 * 1024 * 1024, (cap * 5) // 8)))


def _epilogue_params(bias, scale, shift, relu):
    """out = scale * relu?(x + bias) + shift ; fold bias into shift when no relu."""
    bias = bias.astype(jnp.float32)
    scale = scale.astype(jnp.float32)
    shift = shift.astype(jnp.float32)
    if relu:
        return bias, scale, shift
    return jnp.zeros_like(bias), scale, shift + bias * scale


# ----------------------------------------------------------------------------
# Kernel 1: fused (A @ B + bias [-> ReLU]) * bn_scale + bn_shift   (im2col path)
# ----------------------------------------------------------------------------
def _fused_matmul_kernel(a_ref, b_ref, bias_ref, scale_ref, shift_ref, o_ref, *, relu):
    acc = jnp.dot(a_ref[...], b_ref[...], preferred_element_type=jnp.float32)
    acc = acc + bias_ref[...]
    if relu:
        acc = jnp.maximum(acc, 0.0)                # ReLU happens BEFORE BatchNorm
    acc = acc * scale_ref[...] + shift_ref[...]
    o_ref[...] = acc.astype(o_ref.dtype)


@functools.lru_cache(maxsize=None)
def _build_fused_matmul(m, k, cout, tm, relu, vmem_limit):
    kernel = functools.partial(_fused_matmul_kernel, relu=relu)
    call = pl.pallas_call(
        kernel,
        out_shape=jax.ShapeDtypeStruct((m, cout), jnp.bfloat16),
        grid_spec=pltpu.PrefetchScalarGridSpec(
            num_scalar_prefetch=0,
            grid=(m // tm,),
            in_specs=[
                pl.BlockSpec((tm, k), lambda i: (i, 0)),     # A tile (full K, no pad)
                pl.BlockSpec((k, cout), lambda i: (0, 0)),   # B resident
                pl.BlockSpec((1, cout), lambda i: (0, 0)),   # conv bias
                pl.BlockSpec((1, cout), lambda i: (0, 0)),   # bn scale
                pl.BlockSpec((1, cout), lambda i: (0, 0)),   # bn shift
            ],
            out_specs=pl.BlockSpec((tm, cout), lambda i: (i, 0)),
        ),
        compiler_params=pltpu.CompilerParams(
            dimension_semantics=("parallel",),
            vmem_limit_bytes=vmem_limit,
        ),
    )
    return jax.jit(call)


def _pick_tm_b(m):
    if m <= 2048 and m % 16 == 0:
        return m
    for cand in range(2048, 127, -128):
        if m % cand == 0:
            return cand
    return None


def _fused_matmul(a, bm, bias, scale, shift, *, relu):
    m, k = a.shape
    _, cout = bm.shape
    tm = _pick_tm_b(m)
    if tm is None:
        mp = _round_up(m, 1024)
        a = jnp.pad(a, ((0, mp - m), (0, 0)))
        tm, m_pad = 1024, mp
    else:
        m_pad = m
    fn = _build_fused_matmul(m_pad, k, cout, tm, bool(relu), _vmem_limit_bytes())
    out = fn(a, bm, bias.reshape(1, cout), scale.reshape(1, cout),
             shift.reshape(1, cout))
    return out[:m]


# ----------------------------------------------------------------------------
# Kernel 2: shift-conv (stride-1 convs, Cin % 128 == 0) — no HBM im2col.
# The padded activation is flattened to (rows, Cin); tap (kh, kw) of a dilated
# KxK kernel is just the row-shift  kh*d*Wp + kw*d  of the same flat array.
# ----------------------------------------------------------------------------
def _shift_conv_kernel(x_ref, w_ref, bias_ref, scale_ref, shift_ref, o_ref, *,
                       tm, offsets, relu):
    i = pl.program_id(1)
    base = pl.multiple_of(i * tm, tm)
    parts = [x_ref[0, pl.ds(base + off, tm), :] for off in offsets]
    a = parts[0] if len(parts) == 1 else jnp.concatenate(parts, axis=-1)
    acc = jnp.dot(a, w_ref[...], preferred_element_type=jnp.float32)
    acc = acc + bias_ref[...]
    if relu:
        acc = jnp.maximum(acc, 0.0)
    acc = acc * scale_ref[...] + shift_ref[...]
    o_ref[0] = acc.astype(o_ref.dtype)


@functools.lru_cache(maxsize=None)
def _build_shift_conv(n, rows_in, cin, kkcin, cout, tm, ntiles, offsets, relu,
                      vmem_limit):
    kernel = functools.partial(_shift_conv_kernel, tm=tm, offsets=offsets, relu=relu)
    call = pl.pallas_call(
        kernel,
        out_shape=jax.ShapeDtypeStruct((n, ntiles * tm, cout), jnp.bfloat16),
        grid_spec=pltpu.PrefetchScalarGridSpec(
            num_scalar_prefetch=0,
            grid=(n, ntiles),
            in_specs=[
                # full flattened activation per batch element; constant block
                # index along the tile axis -> DMA'd once per batch element.
                pl.BlockSpec((1, rows_in, cin), lambda b, i: (b, 0, 0)),
                pl.BlockSpec((kkcin, cout), lambda b, i: (0, 0)),   # weights resident
                pl.BlockSpec((1, cout), lambda b, i: (0, 0)),       # bias
                pl.BlockSpec((1, cout), lambda b, i: (0, 0)),       # bn scale
                pl.BlockSpec((1, cout), lambda b, i: (0, 0)),       # bn shift
            ],
            out_specs=pl.BlockSpec((1, tm, cout), lambda b, i: (b, i, 0)),
        ),
        compiler_params=pltpu.CompilerParams(
            dimension_semantics=("parallel", "arbitrary"),
            vmem_limit_bytes=vmem_limit,
        ),
    )
    return jax.jit(call)


def _pick_shift_tile(mrow, cin, cout, kk, vmem_limit, max_off):
    cin_l = _round_up(cin, 128)
    cout_l = _round_up(cout, 128)
    kkcin_l = _round_up(kk * cin, 128)
    x_res = 2 * (mrow + max_off + 2048) * cin_l * 2          # double-buffered input
    w_res = 2 * kk * cin * cout * 2                          # double-buffered weights
    budget = vmem_limit - x_res - w_res - 10 * 1024 * 1024   # margin
    per_row = 2 * kkcin_l * 2 + cout_l * 4 + 2 * cout_l * 2  # A(+slices), f32 acc, out
    cap = max(256, min(2048, budget // per_row if budget > 0 else 256))
    cap = max(16, int(cap) & ~15)                            # multiple of 16 (bf16)
    if mrow <= cap:
        return _round_up(mrow, 16), 1
    ntiles = -(-mrow // cap)
    tm = _round_up(-(-mrow // ntiles), 16)
    return tm, ntiles


def _shift_conv(x, w, bias, scale, shift, *, relu, dilation, pads):
    # x: (N, H, W, Cin) bf16 ; w: forward-conv layout (Cout, Cin, KH, KW)
    n, h, wdt, cin = x.shape
    cout, _, kh, kw = w.shape
    pt, pb, plft, prt = pads
    hp, wp = h + pt + pb, wdt + plft + prt
    h_out = hp - dilation * (kh - 1)
    w_out = wp - dilation * (kw - 1)
    mrow = h_out * wp                                   # "full width" pseudo-output rows
    max_off = dilation * (kh - 1) * wp + dilation * (kw - 1)

    vlim = _vmem_limit_bytes()
    tm, ntiles = _pick_shift_tile(mrow, cin, cout, kh * kw, vlim, max_off)
    mrow_pad = tm * ntiles
    need_rows = mrow_pad + max_off
    extra_h = max(0, -(-(need_rows - hp * wp) // wp))   # extra bottom rows -> tail pad

    xflat = jnp.pad(x.astype(jnp.bfloat16),
                    ((0, 0), (pt, pb + extra_h), (plft, prt), (0, 0)))
    rows_in = (hp + extra_h) * wp
    xflat = xflat.reshape(n, rows_in, cin)

    offsets = tuple(int(r * dilation * wp + c * dilation)
                    for r in range(kh) for c in range(kw))
    bm = jnp.transpose(w, (2, 3, 1, 0)).reshape(kh * kw * cin, cout).astype(jnp.bfloat16)
    bias2, scale2, shift2 = _epilogue_params(bias, scale, shift, relu)

    fn = _build_shift_conv(n, rows_in, cin, kh * kw * cin, cout, tm, ntiles,
                           offsets, bool(relu), vlim)
    out = fn(xflat, bm, bias2.reshape(1, cout), scale2.reshape(1, cout),
             shift2.reshape(1, cout))
    out = out[:, :mrow, :].reshape(n, h_out, wp, cout)[:, :, :w_out, :]
    return out


# ----------------------------------------------------------------------------
# im2col fallback (stride-2 convs and tiny channel counts)
# ----------------------------------------------------------------------------
def _im2col_conv(x, w, b, *, stride, padding, dilation, relu, scale, shift):
    n, h, w_, cin = x.shape
    cout, _, kh_, kw_ = w.shape
    xp = jnp.pad(x, ((0, 0), (padding, padding), (padding, padding), (0, 0)))
    h_out = (h + 2 * padding - dilation * (kh_ - 1) - 1) // stride + 1
    w_out = (w_ + 2 * padding - dilation * (kw_ - 1) - 1) // stride + 1
    cols = []
    for r in range(kh_):
        for c in range(kw_):
            hs, ws = r * dilation, c * dilation
            cols.append(
                xp[:, hs:hs + (h_out - 1) * stride + 1:stride,
                      ws:ws + (w_out - 1) * stride + 1:stride, :])
    patches = jnp.concatenate(cols, axis=-1).astype(jnp.bfloat16)
    a = patches.reshape(n * h_out * w_out, kh_ * kw_ * cin)
    bm = jnp.transpose(w, (2, 3, 1, 0)).reshape(kh_ * kw_ * cin, cout).astype(jnp.bfloat16)
    bias2, scale2, shift2 = _epilogue_params(b, scale, shift, relu)
    out = _fused_matmul(a, bm, bias2, scale2, shift2, relu=relu)
    return out.reshape(n, h_out, w_out, cout)


# ----------------------------------------------------------------------------
# Conv / ConvTranspose dispatch
# ----------------------------------------------------------------------------
def _conv2d(x, w, b, *, stride, padding, dilation, relu, scale, shift):
    cin = x.shape[-1]
    if stride == 1 and cin % 128 == 0:
        return _shift_conv(x, w, b, scale, shift, relu=relu, dilation=dilation,
                           pads=(padding, padding, padding, padding))
    return _im2col_conv(x, w, b, stride=stride, padding=padding, dilation=dilation,
                        relu=relu, scale=scale, shift=shift)


def _conv_transpose2d(x, w, b, *, stride, padding, relu, scale, shift):
    # w: PyTorch ConvTranspose2d layout (Cin, Cout, KH, KW).  Sub-pixel phase
    # decomposition for k=4, s=2, p=1: each output phase is a stride-1 2x2 conv.
    cin, cout, kh, kw = w.shape
    assert stride == 2 and padding == 1 and kh == 4 and kw == 4
    n, h, wdt, _ = x.shape
    # phase -> ((pad_before, pad_after), kernel taps in input order)
    tap_sel = {0: ((1, 0), (3, 1)), 1: ((0, 1), (2, 0))}
    rows = []
    for a in (0, 1):
        (pt, pb), kys = tap_sel[a]
        cols = []
        for bb in (0, 1):
            (plf, prt), kxs = tap_sel[bb]
            wp = jnp.stack(
                [jnp.stack([w[:, :, kys[r], kxs[c]] for c in (0, 1)], axis=-1)
                 for r in (0, 1)], axis=-2)              # (Cin, Cout, 2, 2)
            wp = jnp.transpose(wp, (1, 0, 2, 3))         # forward layout (Cout, Cin, 2, 2)
            ph = _shift_conv(x, wp, b, scale, shift, relu=relu, dilation=1,
                             pads=(pt, pb, plf, prt))    # (N, H, W, Cout)
            cols.append(ph)
        rows.append(jnp.stack(cols, axis=3).reshape(n, h, 2 * wdt, cout))
    return jnp.stack(rows, axis=2).reshape(n, 2 * h, 2 * wdt, cout)


# ----------------------------------------------------------------------------
# Parameter construction (deterministic, synthetic)
# ----------------------------------------------------------------------------
#  (kind, cin, cout, k, stride, pad, dilation, relu+bn)
ENC_CFG = [
    ("conv", 4, 64, 5, 1, 2, 1, True),
    ("conv", 64, 128, 3, 2, 1, 1, True),
    ("conv", 128, 128, 3, 1, 1, 1, True),
    ("conv", 128, 256, 3, 2, 1, 1, True),
    ("conv", 256, 256, 3, 1, 1, 1, True),
    ("conv", 256, 256, 3, 1, 1, 1, True),
    ("conv", 256, 256, 3, 1, 2, 2, True),
    ("conv", 256, 256, 3, 1, 4, 4, True),
    ("conv", 256, 256, 3, 1, 8, 8, True),
    ("conv", 256, 256, 3, 1, 16, 16, True),
    ("conv", 256, 512, 3, 1, 1, 1, False),
]
DEC_CFG = [
    ("conv", 256, 256, 3, 1, 1, 1, True),
    ("conv", 256, 256, 3, 1, 1, 1, True),
    ("convT", 256, 128, 4, 2, 1, 1, True),
    ("conv", 128, 128, 3, 1, 1, 1, True),
    ("convT", 128, 64, 4, 2, 1, 1, True),
    ("conv", 64, 32, 3, 1, 1, 1, True),
    ("conv", 32, 6, 3, 1, 1, 1, False),
]


def _init_layer(key, cfg):
    kind, cin, cout, k, _, _, _, relu_bn = cfg
    k_w, k_b, k_bn = jax.random.split(key, 3)
    fan_in = cin * k * k
    if kind == "conv":
        w = jax.random.normal(k_w, (cout, cin, k, k), jnp.float32) / jnp.sqrt(fan_in)
    else:  # ConvTranspose2d weight layout
        w = jax.random.normal(k_w, (cin, cout, k, k), jnp.float32) / jnp.sqrt(fan_in)
    b = 0.01 * jax.random.normal(k_b, (cout,), jnp.float32)
    if relu_bn:
        k1, k2, k3, k4 = jax.random.split(k_bn, 4)
        gamma = 1.0 + 0.05 * jax.random.normal(k1, (cout,), jnp.float32)
        beta = 0.05 * jax.random.normal(k2, (cout,), jnp.float32)
        run_mean = 0.05 * jax.random.normal(k3, (cout,), jnp.float32)
        run_var = 1.0 + 0.1 * jax.random.uniform(k4, (cout,), jnp.float32)
        scale = gamma / jnp.sqrt(run_var + BN_EPS)
        shift = beta - run_mean * scale
    else:
        scale = jnp.ones((cout,), jnp.float32)
        shift = jnp.zeros((cout,), jnp.float32)
    return dict(cfg=cfg, w=w, b=b, scale=scale, shift=shift)


def init_vae_inpainter_params(key):
    keys = jax.random.split(key, len(ENC_CFG) + len(DEC_CFG))
    enc = [_init_layer(keys[i], c) for i, c in enumerate(ENC_CFG)]
    dec = [_init_layer(keys[len(ENC_CFG) + i], c) for i, c in enumerate(DEC_CFG)]
    return {"encode": enc, "decode": dec}


def _apply_layer(x, layer):
    kind, _, _, _, stride, pad, dil, relu_bn = layer["cfg"]
    if kind == "conv":
        return _conv2d(x, layer["w"], layer["b"], stride=stride, padding=pad,
                       dilation=dil, relu=relu_bn,
                       scale=layer["scale"], shift=layer["shift"])
    return _conv_transpose2d(x, layer["w"], layer["b"], stride=stride, padding=pad,
                             relu=relu_bn, scale=layer["scale"], shift=layer["shift"])


# ----------------------------------------------------------------------------
# Full forward pass (mirrors VAEInpainter.forward with in_mean=None)
# ----------------------------------------------------------------------------
def vae_inpainter_forward(params, imgs, mask, noise_key):
    """imgs: (N, 3, H, W) NCHW float32, mask: (N, 1, H, W) -> (N, 3, H, W)."""
    imgs_nhwc = jnp.transpose(imgs, (0, 2, 3, 1)).astype(jnp.float32)
    mask_nhwc = jnp.transpose(mask, (0, 2, 3, 1)).astype(jnp.float32)
    n, h, w, _ = imgs_nhwc.shape

    # x = cat(imgs * mask, 1 - mask) -> 4 channels  (in_mean is None path)
    x = jnp.concatenate([imgs_nhwc * mask_nhwc, 1.0 - mask_nhwc], axis=-1)
    if (h, w) != (224, 224):
        x = jax.image.resize(x, (n, 224, 224, 4), method="bilinear", antialias=False)
        x = x.at[..., 3].set(jnp.round(x[..., 3]))   # round the upsampled mask channel

    # ---- encode ----
    feat = x.astype(jnp.bfloat16)
    for layer in params["encode"]:
        feat = _apply_layer(feat, layer)
    z_params = feat.astype(jnp.float32)              # (N, 56, 56, 512)

    # ---- reparametrize ----
    mu, logvar = z_params[..., :256], z_params[..., 256:]
    eps = jax.random.normal(noise_key, mu.shape, mu.dtype)
    z = mu + eps * jnp.exp(0.5 * logvar)

    # ---- decode ----
    feat = z.astype(jnp.bfloat16)
    for layer in params["decode"]:
        feat = _apply_layer(feat, layer)
    x_params = feat.astype(jnp.float32)              # (N, 224, 224, 6)
    recon = x_params[..., :3]

    # per-channel clamp to the valid (ImageNet-normalized) pixel range
    lo = (0.0 - TRAIN_MEAN) / TRAIN_STD
    hi = (1.0 - TRAIN_MEAN) / TRAIN_STD
    recon = jnp.clip(recon, lo, hi)

    if (h, w) != (224, 224):
        recon = jax.image.resize(recon, (n, h, w, 3), method="bilinear", antialias=False)

    out_nhwc = imgs_nhwc * mask_nhwc + recon * (1.0 - mask_nhwc)
    return jnp.transpose(out_nhwc, (0, 3, 1, 2))      # back to NCHW


# ----------------------------------------------------------------------------
if __name__ == "__main__":
    key = jax.random.PRNGKey(0)
    k_img, k_mask = jax.random.split(key)

    N, C, H, W = 2, 3, 16, 16
    imgs = jax.random.uniform(k_img, (N, C, H, W), jnp.float32)
    mask = (jax.random.uniform(k_mask, (N, 1, H, W)) > 0.5).astype(jnp.float32)

    params = init_vae_inpainter_params(jax.random.PRNGKey(42))
    out = vae_inpainter_forward(params, imgs, mask, noise_key=jax.random.PRNGKey(123))
    out = jax.block_until_ready(out)

    assert out.shape == (N, C, H, W), out.shape
    assert bool(jnp.all(jnp.isfinite(out)))
    print("KERNEL_OK")
</pallas_src>

<mosaic_0001>
module attributes {stable_mosaic.version = 11 : i64} {
  func.func @_fused_matmul_kernel(%arg0: i32, %arg1: memref<2048x100xbf16, #tpu.memory_space<vmem>>, %arg2: memref<100x64xbf16, #tpu.memory_space<vmem>>, %arg3: memref<1x64xf32, #tpu.memory_space<vmem>>, %arg4: memref<1x64xf32, #tpu.memory_space<vmem>>, %arg5: memref<1x64xf32, #tpu.memory_space<vmem>>, %arg6: memref<2048x64xbf16, #tpu.memory_space<vmem>>) attributes {dimension_semantics = [#tpu.dimension_semantics<parallel>], iteration_bounds = array<i64: 49>, scalar_prefetch = 0 : i64, scratch_operands = 0 : i64, tpu.core_type = #tpu.core_type<tc>, window_params = [{transform_indices = @transform_0, window_bounds = array<i64: 2048, 100>}, {pipeline_mode = #tpu.pipeline_mode<synchronous>, transform_indices = @transform_1, window_bounds = array<i64: 100, 64>}, {pipeline_mode = #tpu.pipeline_mode<synchronous>, transform_indices = @transform_2, window_bounds = array<i64: 1, 64>}, {pipeline_mode = #tpu.pipeline_mode<synchronous>, transform_indices = @transform_3, window_bounds = array<i64: 1, 64>}, {pipeline_mode = #tpu.pipeline_mode<synchronous>, transform_indices = @transform_4, window_bounds = array<i64: 1, 64>}, {transform_indices = @transform_5, window_bounds = array<i64: 2048, 64>}]} {
    %c0 = arith.constant 0 : index
    %c0_0 = arith.constant 0 : index
    %0 = vector.load %arg1[%c0, %c0_0] : memref<2048x100xbf16, #tpu.memory_space<vmem>>, vector<2048x100xbf16>
    %c0_1 = arith.constant 0 : index
    %c0_2 = arith.constant 0 : index
    %1 = vector.load %arg2[%c0_1, %c0_2] : memref<100x64xbf16, #tpu.memory_space<vmem>>, vector<100x64xbf16>
    %cst = arith.constant dense<0.000000e+00> : vector<2048x64xf32>
    %2 = tpu.matmul %0, %1, %cst {dimension_numbers = #tpu.dot_dimension_numbers<[1], [0], [0], [1], [0, 0, 1, 1], [], []>} : vector<2048x100xbf16>, vector<100x64xbf16>, vector<2048x64xf32> -> vector<2048x64xf32>
    %c0_3 = arith.constant 0 : index
    %c0_4 = arith.constant 0 : index
    %3 = vector.load %arg3[%c0_3, %c0_4] : memref<1x64xf32, #tpu.memory_space<vmem>>, vector<1x64xf32>
    %4 = vector.broadcast %3 : vector<1x64xf32> to vector<2048x64xf32>
    %5 = arith.addf %2, %4 : vector<2048x64xf32>
    %cst_5 = arith.constant 0.000000e+00 : f32
    %6 = vector.broadcast %cst_5 : f32 to vector<2048x64xf32>
    %7 = arith.maximumf %5, %6 : vector<2048x64xf32>
    %c0_6 = arith.constant 0 : index
    %c0_7 = arith.constant 0 : index
    %8 = vector.load %arg4[%c0_6, %c0_7] : memref<1x64xf32, #tpu.memory_space<vmem>>, vector<1x64xf32>
    %9 = vector.broadcast %8 : vector<1x64xf32> to vector<2048x64xf32>
    %10 = arith.mulf %7, %9 : vector<2048x64xf32>
    %c0_8 = arith.constant 0 : index
    %c0_9 = arith.constant 0 : index
    %11 = vector.load %arg5[%c0_8, %c0_9] : memref<1x64xf32, #tpu.memory_space<vmem>>, vector<1x64xf32>
    %12 = vector.broadcast %11 : vector<1x64xf32> to vector<2048x64xf32>
    %13 = arith.addf %10, %12 : vector<2048x64xf32>
    %14 = arith.truncf %13 : vector<2048x64xf32> to vector<2048x64xbf16>
    %c0_10 = arith.constant 0 : index
    %c0_11 = arith.constant 0 : index
    %15 = vector.load %arg6[%c0_10, %c0_11] : memref<2048x64xbf16, #tpu.memory_space<vmem>>, vector<2048x64xbf16>
    tpu.vector_store %arg6[%c0_10, %c0_11], %14 {strides = array<i32>} : memref<2048x64xbf16, #tpu.memory_space<vmem>>, vector<2048x64xbf16>,
    return
  }
  func.func @transform_0(%arg0: i32) -> (i32, i32) {
    %c0_i32 = arith.constant 0 : i32
    %c0_i32_0 = arith.constant 0 : i32
    return %arg0, %c0_i32 : i32, i32
  }
  func.func @transform_1(%arg0: i32) -> (i32, i32) {
    %c0_i32 = arith.constant 0 : i32
    %c0_i32_0 = arith.constant 0 : i32
    %c0_i32_1 = arith.constant 0 : i32
    return %c0_i32, %c0_i32_0 : i32, i32
  }
  func.func @transform_2(%arg0: i32) -> (i32, i32) {
    %c0_i32 = arith.constant 0 : i32
    %c0_i32_0 = arith.constant 0 : i32
    %c0_i32_1 = arith.constant 0 : i32
    return %c0_i32, %c0_i32_0 : i32, i32
  }
  func.func @transform_3(%arg0: i32) -> (i32, i32) {
    %c0_i32 = arith.constant 0 : i32
    %c0_i32_0 = arith.constant 0 : i32
    %c0_i32_1 = arith.constant 0 : i32
    return %c0_i32, %c0_i32_0 : i32, i32
  }
  func.func @transform_4(%arg0: i32) -> (i32, i32) {
    %c0_i32 = arith.constant 0 : i32
    %c0_i32_0 = arith.constant 0 : i32
    %c0_i32_1 = arith.constant 0 : i32
    return %c0_i32, %c0_i32_0 : i32, i32
  }
  func.func @transform_5(%arg0: i32) -> (i32, i32) {
    %c0_i32 = arith.constant 0 : i32
    %c0_i32_0 = arith.constant 0 : i32
    return %arg0, %c0_i32 : i32, i32
  }
}

</mosaic_0001>

<bundles_post_ra>
// kernel: tpu_custom_call.1
= control target key start
LH: loop header
LB: loop body
LE: loop exit
PB: predicated region body
PF: predicated region fallthrough
CT: control target
= control target key end

     0   :  { %10 = vsyncpa [#allocation3], 0  ;;  %s8768_s0 = inlined_call_operand.hbm [shape: bf16[100352,100], index: 0, kind: input, shape index: {}]   ;;  %s8769_s1 = inlined_call_operand.vmem [shape: bf16[100,64], index: 1, kind: input, shape index: {}]   ;;  %s8770_s2 = inlined_call_operand.vmem [shape: f32[1,64], index: 2, kind: input, shape index: {}]   ;;  %s8771_s3 = inlined_call_operand.vmem [shape: f32[1,64], index: 3, kind: input, shape index: {}]   ;;  %s8772_s4 = inlined_call_operand.vmem [shape: f32[1,64], index: 4, kind: input, shape index: {}]   ;;  %s8773_s5 = inlined_call_operand.hbm [shape: bf16[100352,64], index: 5, kind: output, shape index: {}]  }
   0x1   :  { %12 = vsyncpa [#allocation3 + $0x1], 0 }
   0x2   :  { %13 = vsyncpa [#allocation4], 0 }
   0x3   :  { %15 = vsyncpa [#allocation4 + $0x1], 0  ;;  %s6340_s18 = smov 0   ;;  %s6342_s19 = smov 0  }
   0x4   :  { %s6344_s20 = smov 0   ;;  %s6346_s21 = smov 0  }
   0x5 LB: > { %s6361_s22 = sadd.s32 4294967295, %s6302_s21   ;;  %s4797_s23 = sadd.s32 4294967294, %s6302_s21   ;;  %s6302_s21 = sphi %s6346_s21, %s8799_s21   ;;  %s6298_s20 = sphi %s6344_s20, %s8798_s20   ;;  %s6294_s19 = sphi %s6342_s19, %s8797_s19   ;;  %s6290_s18 = sphi %s6340_s18, %s8796_s18  }
   0x6   : > { %s6365_s24 = sadd.s32 1, %s6302_s21   ;;  %s28_s25 = sadd.s32 1, %s6298_s20 }
   0x7   : > { %s25_s26 = ssub.s32 %s6302_s21, %s6365_s24  ;;  %p35_p0 = scmp.ne.s32.totalorder %s6298_s20, %s6294_s19 }
   0x8   : > { %p26_p1 = scmp.eq.s32.totalorder %s25_s26, 0  ;;  %p36_p2 = scmp.eq.s32.totalorder %s6302_s21, 0 }
   0x9   : > { %p41_p3 = scmp.ne.s32.totalorder %s6294_s19, %s6290_s18  ;;  %p42_p4 = scmp.eq.s32.totalorder %s6361_s22, 0 }
   0xa   : > { %s6377_s27 = scalar_select %p26_p1, %s6298_s20, %s28_s25  }
   0xb   : > { %p6379_p5 = por %p36_p2, %p35_p0  ;;  %p6383_p6 = por %p42_p4, %p41_p3 }
   0xc   : > { %p149_p7 = scmp.eq.s32.totalorder %s6361_s22, 48  ;;  %p155_p8 = scmp.eq.s32.totalorder %s4797_s23, 48 }
   0xd   : > { %p6024_p9 = scmp.lt.s32.totalorder %s6302_s21, 49  ;;  %s187_s7 = sand.u32 1, %s6298_s20  }
   0xe   : > { %p6389_p10 = por %p149_p7, %p35_p0  ;;  %p6393_p11 = por %p155_p8, %p41_p3 }
   0xf   : > { %s5333_s8 = sshll.u32 %s6302_s21, 14  ;;  %s4800_s9 = sshll.u32 %s187_s7, 10 }
  0x10   : > { %s8777_s30 = scalar_select %p6389_p10, 1, 0 }
  0x11   : > { %s8778_s6 = scalar_select %p6393_p11, 1, 0 }
  0x12   : > { %s6402_s12 = scalar_lea.hbm %s8768_s0, %s5333_s8  ;;  %s191_s13 = scalar_lea.vmem [#allocation2], %s4800_s9 }
  0x13   : > { %s198_s14 = sshll.u32 %s191_s13, 4  ;;  %p6406_p12 = pnand %p6024_p9, %p6379_p5  ;;  %s6410_s14 = int_to_ptr.vmem [resolvable:$true] %s198_s14 }
  0x14   : > { %s6412_s16 = scalar_lea.sflag [#allocation3], %s187_s7  ;;  %s6206_s17 = scalar_lea.hbm %s6402_s12, 16384 }
  0x15   : > { %p6207_p13 = scmp.ne.s32.totalorder %s6402_s12, %s6206_s17  ;;  %p6208_p0 = pneg %p6406_p12 }
  0x16   : > { %s6211_s26 = scalar_lea.hbm %s8768_s0, 802816  ;;  %p6212_p3 = scmp.lt.u32.totalorder %s6402_s12, %s8768_s0 }
  0x17   : > { %p6209_p1 = pnand %p6208_p0, %p6207_p13  ;;  %p6213_p4 = scmp.lt.u32.totalorder %s6211_s26, %s6206_s17 }
  0x18   : > { %p6215_p7 = scmp.lt.u32.totalorder %s6206_s17, %s6402_s12 }
  0x19   : > { %p6210_p2 = pneg %p6209_p1  ;;  %p6214_p5 = por %p6213_p4, %p6212_p3 }
  0x1b   : > { %p6216_p8 = por %p6215_p7, %p6214_p5 }
  0x1d   : > { %p6217_p9 = pnand %p6216_p8, %p6210_p2 }
  0x1f   : > { %6220 = shalt.err (!%p6217_p9)
}
  0x20   : > { %s6221_s7 = scalar_lea.vmem %s6410_s14, 16384  ;;  %s6304_s9 = smov [#allocation2]  }
  0x21   : > { %p6222_p13 = scmp.ne.s32.totalorder %s6410_s14, %s6221_s7  ;;  %s6226_s10 = sshll.u32 %s6304_s9, 4  ;;  %s6227_s10 = int_to_ptr.vmem [resolvable:$false] %s6226_s10 }
  0x22   : > { %s6228_s11 = scalar_lea.vmem %s6227_s10, 32768  ;;  %p6229_p10 = scmp.lt.s32.totalorder %s6410_s14, %s6227_s10 }
  0x23   : > { %p6224_p1 = pnand %p6222_p13, %p6208_p0  ;;  %p6230_p3 = scmp.lt.s32.totalorder %s6228_s11, %s6221_s7 }
  0x25   : > { %p6225_p11 = pneg %p6224_p1  ;;  %p6231_p4 = por %p6230_p3, %p6229_p10 }
  0x27   : > { %p6232_p5 = pnand %p6231_p4, %p6225_p11 }
  0x29   : > { %6235 = shalt.err (!%p6232_p5)
}
  0x2a   : > { %s6305_s13 = smov 64   ;;  %s6306_s17 = smov 4  }
  0x2b   : > { %6019 = dma.hbm_to_vmem [thread:$0]  (!%p6406_p12), %s6402_s12, 16384, %s6410_s14, %s6412_s16, %s6305_s13, %s6305_s13, %s6306_s17  }
  0x2c   : > { %p4803_p0 = scmp.ge.s32.totalorder %s6302_s21, 1  ;;  %p206_p2 = scmp.lt.s32.totalorder %s6302_s21, 50 }
  0x2e   : > { %p207_p7 = pnand %p4803_p0, %p206_p2 }
  0x30   : > { %210 = sbr.rel (%p207_p7) target bundleno = 642 (0x282), region = 40 }
  0x37   : > { %s6443_s23 = sand.u32 1, %s6294_s19  }
  0x38   : > { %s4804_s25 = sshll.u32 %s6443_s23, 10  ;;  %s213_s26 = scalar_lea.sflag [#allocation3], %s6443_s23 }
  0x39   : > { %s6449_s28 = scalar_lea.vmem [#allocation2], %s4804_s25 }
  0x3a   : > { %6281 = dma.done.wait (%p6383_p6), %s213_s26, 16384  }
  0x3b   : > { %6283 = vsyncadd (%p6383_p6), %s213_s26, 4294950912  ;;  %v6062_v0 = vld [vmem:[%s8769_s1] sm:$0xff]   ;;  %v6063_v1 = vld [vmem:[%s8769_s1 + $0x8] sm:$0xff]   ;;  %vm1201_vm0 = vcmask 818176   ;;  %vm1586_vm1 = vcmask 1041408   ;;  %vm4453_vm2 = vcmask 519168  }
  0x3c   : > { %5726 = vmatprep.subr.bf16.mxu0 %v6062_v0  ;;  %5996 = vmatprep.subr.bf16.mxu1 %v6062_v0  ;;  %v6064_v2 = vld [vmem:[%s8769_s1 + $0x10] sm:$0xff]   ;;  %v6065_v3 = vld [vmem:[%s8769_s1 + $0x18] sm:$0xff]   ;;  %v6069_v4 = vld [vmem:[%s6449_s28] sm:$0xff]   ;;  %s6749_s9 = scalar_lea.vmem [#allocation5], %s4804_s25  ;;  %s5590_s13 = sshll.u32 %s6361_s22, 14 }
  0x3d   : > { %5727 = vmatpush3.bf16.msra.mxu0 %v6062_v0  ;;  %6003 = vmatpush3.bf16.msra.mxu1 %v6062_v0  ;;  %v6070_v5 = vld [vmem:[%s6449_s28 + $0x200] sm:$0xff]   ;;  %v6067_v7 = vld [vmem:[%s8769_s1 + $0x28] sm:$0xff]   ;;  %v6068_v8 = vld [vmem:[%s8769_s1 + $0x30] ss:$0 sps:$4 sm:$0x33]   ;;  %s4724_s17 = sshll.u32 %s6749_s9, 4  ;;  %s8711_s12 = scalar_lea.hbm %s8773_s5, %s5590_s13  ;;  %s8713_s17 = int_to_ptr.vmem [resolvable:$true] %s4724_s17 }
  0x3e   : > { %5728 = vmatprep.subr.bf16.mxu0 %v6063_v1  ;;  %5997 = vmatprep.subr.bf16.mxu1 %v6063_v1  ;;  %v6066_v6 = vld [vmem:[%s8769_s1 + $0x20] sm:$0xff]   ;;  %v1588_v9 = vsel %vm1586_vm1, %v6068_v8, 0  ;;  %v6071_v10 = vld [vmem:[%s6449_s28 + $0x8] sm:$0xff]   ;;  %v6073_v12 = vld [vmem:[%s6449_s28 + $0x10] sm:$0xff]   ;;  %s4711_s14 = scalar_lea.sflag [#allocation4], %s6443_s23  ;;  %s6236_s15 = scalar_lea.vmem %s8713_s17, 16384 }
  0x3f   : > { %5740 = vmatprep.mubr.msk.bf16.mxu0 %vm1201_vm0, %v6069_v4  ;;  %5868 = vmatprep.mubr.msk.bf16.mxu1 %vm1201_vm0, %v6070_v5  ;;  %v6072_v11 = vld [vmem:[%s6449_s28 + $0x208] sm:$0xff]   ;;  %v6074_v13 = vld [vmem:[%s6449_s28 + $0x210] sm:$0xff]   ;;  %v6075_v14 = vld [vmem:[%s6449_s28 + $0x18] sm:$0xff]   ;;  %p6237_p6 = scmp.ne.s32.totalorder %s8713_s17, %s6236_s15  ;;  %p8794_p10 = scmp.ne.s32.totalorder %s8777_s30, 0 }
  0x40   : > { %v6076_v15 = vld [vmem:[%s6449_s28 + $0x218] sm:$0xff]   ;;  %v6077_v16 = vld [vmem:[%s6449_s28 + $0x20] sm:$0xff]   ;;  %v6079_v18 = vld [vmem:[%s6449_s28 + $0x28] sm:$0xff]   ;;  %s6307_s16 = smov [#allocation5]  }
  0x41   : > { %5729 = vmatpush3.bf16.msra.mxu0 %v6063_v1  ;;  %6004 = vmatpush3.bf16.msra.mxu1 %v6063_v1  ;;  %v6078_v17 = vld [vmem:[%s6449_s28 + $0x220] sm:$0xff]   ;;  %v6080_v19 = vld [vmem:[%s6449_s28 + $0x228] sm:$0xff]   ;;  %v6081_v20 = vld [vmem:[%s6449_s28 + $0x30] sm:$0xff]   ;;  %p6238_p11 = pnand %p6237_p6, %p8794_p10  ;;  %s6240_s8 = sshll.u32 %s6307_s16, 4  ;;  %s6241_s8 = int_to_ptr.vmem [resolvable:$false] %s6240_s8 }
  0x42   : > { %5730 = vmatprep.subr.bf16.mxu0 %v6064_v2  ;;  %5998 = vmatprep.subr.bf16.mxu1 %v6064_v2  ;;  %v6082_v21 = vld [vmem:[%s6449_s28 + $0x230] sm:$0xff]   ;;  %v6083_v22 = vld [vmem:[%s6449_s28 + $0x38] sm:$0xff]   ;;  %v6085_v24 = vld [vmem:[%s6449_s28 + $0x40] sm:$0xff]   ;;  %s6242_s7 = scalar_lea.vmem %s6241_s8, 32768  ;;  %p6243_p8 = scmp.lt.s32.totalorder %s8713_s17, %s6241_s8 }
  0x43   : > { %v6084_v23 = vld [vmem:[%s6449_s28 + $0x238] sm:$0xff]   ;;  %v6086_v25 = vld [vmem:[%s6449_s28 + $0x240] sm:$0xff]   ;;  %v6087_v26 = vld [vmem:[%s6449_s28 + $0x48] sm:$0xff]   ;;  %p6239_p12 = pneg %p6238_p11  ;;  %p6244_p9 = scmp.lt.s32.totalorder %s6242_s7, %s6236_s15 }
  0x44   : > { %v6088_v27 = vld [vmem:[%s6449_s28 + $0x248] sm:$0xff]   ;;  %v6089_v28 = vld [vmem:[%s6449_s28 + $0x50] sm:$0xff]   ;;  %v6091_v30 = vld [vmem:[%s6449_s28 + $0x58] sm:$0xff]  }
  0x45   : > { %5731 = vmatpush3.bf16.msra.mxu0 %v6064_v2  ;;  %6005 = vmatpush3.bf16.msra.mxu1 %v6064_v2  ;;  %v6090_v29 = vld [vmem:[%s6449_s28 + $0x250] sm:$0xff]   ;;  %v6092_v31 = vld [vmem:[%s6449_s28 + $0x258] sm:$0xff]   ;;  %v6093_v32 = vld [vmem:[%s6449_s28 + $0x60] sm:$0xff]   ;;  %p6245_p13 = por %p6244_p9, %p6243_p8 }
  0x46   : > { %5732 = vmatprep.subr.bf16.mxu0 %v6065_v3  ;;  %5999 = vmatprep.subr.bf16.mxu1 %v6065_v3  ;;  %v6094_v33 = vld [vmem:[%s6449_s28 + $0x260] sm:$0xff]   ;;  %v6095_v34 = vld [vmem:[%s6449_s28 + $0x68] sm:$0xff]   ;;  %v6097_v36 = vld [vmem:[%s6449_s28 + $0x70] sm:$0xff]  }
  0x47   : > { %v6096_v35 = vld [vmem:[%s6449_s28 + $0x268] sm:$0xff]   ;;  %v6098_v37 = vld [vmem:[%s6449_s28 + $0x270] sm:$0xff]   ;;  %v6099_v38 = vld [vmem:[%s6449_s28 + $0x78] sm:$0xff]   ;;  %p6246_p1 = pnand %p6245_p13, %p6239_p12 }
  0x48   : > { %v6100_v39 = vld [vmem:[%s6449_s28 + $0x278] sm:$0xff]   ;;  %v6101_v40 = vld [vmem:[%s6449_s28 + $0x80] sm:$0xff]   ;;  %v6103_v42 = vld [vmem:[%s6449_s28 + $0x88] sm:$0xff]  }
  0x49   : > { %5733 = vmatpush3.bf16.msra.mxu0 %v6065_v3  ;;  %6006 = vmatpush3.bf16.msra.mxu1 %v6065_v3  ;;  %v6102_v41 = vld [vmem:[%s6449_s28 + $0x280] sm:$0xff]   ;;  %v6104_v43 = vld [vmem:[%s6449_s28 + $0x288] sm:$0xff]   ;;  %v6105_v44 = vld [vmem:[%s6449_s28 + $0x90] sm:$0xff]  }
  0x4a   : > { %5734 = vmatprep.subr.bf16.mxu0 %v6066_v6  ;;  %6000 = vmatprep.subr.bf16.mxu1 %v6066_v6  ;;  %v6106_v45 = vld [vmem:[%s6449_s28 + $0x290] sm:$0xff]   ;;  %v6107_v46 = vld [vmem:[%s6449_s28 + $0x98] sm:$0xff]   ;;  %v6109_v48 = vld [vmem:[%s6449_s28 + $0xa0] sm:$0xff]  }
  0x4b   : > { %v6108_v47 = vld [vmem:[%s6449_s28 + $0x298] sm:$0xff]   ;;  %v6110_v49 = vld [vmem:[%s6449_s28 + $0x2a0] sm:$0xff]   ;;  %v6111_v50 = vld [vmem:[%s6449_s28 + $0xa8] sm:$0xff]  }
  0x4c   : > { %v6112_v51 = vld [vmem:[%s6449_s28 + $0x2a8] sm:$0xff]   ;;  %v6113_v52 = vld [vmem:[%s6449_s28 + $0xb0] sm:$0xff]   ;;  %v6115_v54 = vld [vmem:[%s6449_s28 + $0xb8] sm:$0xff]  }
  0x4d   : > { %5735 = vmatpush3.bf16.msra.mxu0 %v6066_v6  ;;  %6007 = vmatpush3.bf16.msra.mxu1 %v6066_v6  ;;  %v6114_v53 = vld [vmem:[%s6449_s28 + $0x2b0] sm:$0xff]   ;;  %v6116_v55 = vld [vmem:[%s6449_s28 + $0x2b8] sm:$0xff]   ;;  %v6117_v56 = vld [vmem:[%s6449_s28 + $0xc0] sm:$0xff]  }
  0x4e   : > { %5736 = vmatprep.subr.bf16.mxu0 %v6067_v7  ;;  %6001 = vmatprep.subr.bf16.mxu1 %v6067_v7  ;;  %v6118_v57 = vld [vmem:[%s6449_s28 + $0x2c0] sm:$0xff]   ;;  %v6119_v58 = vld [vmem:[%s6449_s28 + $0xc8] sm:$0xff]   ;;  %v6121_v60 = vld [vmem:[%s6449_s28 + $0xd0] sm:$0xff]  }
  0x4f   : > { %v6120_v59 = vld [vmem:[%s6449_s28 + $0x2c8] sm:$0xff]   ;;  %v6122_v61 = vld [vmem:[%s6449_s28 + $0x2d0] sm:$0xff]   ;;  %v6123_v62 = vld [vmem:[%s6449_s28 + $0xd8] sm:$0xff]  }
  0x50   : > { %v6124_v63 = vld [vmem:[%s6449_s28 + $0x2d8] sm:$0xff]   ;;  %v6125_v0 = vld [vmem:[%s6449_s28 + $0xe0] sm:$0xff]   ;;  %v6127_v2 = vld [vmem:[%s6449_s28 + $0xe8] sm:$0xff]  }
  0x51   : > { %5737 = vmatpush3.bf16.msra.mxu0 %v6067_v7  ;;  %6008 = vmatpush3.bf16.msra.mxu1 %v6067_v7  ;;  %v6126_v1 = vld [vmem:[%s6449_s28 + $0x2e0] sm:$0xff]   ;;  %v6128_v3 = vld [vmem:[%s6449_s28 + $0x2e8] sm:$0xff]   ;;  %v6129_v4 = vld [vmem:[%s6449_s28 + $0xf0] sm:$0xff]  }
  0x52   : > { %6010 = vmatprep.subr.msk.bf16.mxu0 %vm1586_vm1, %v6068_v8  ;;  %6011 = vmatprep.subr.msk.bf16.mxu1 %vm1586_vm1, %v6068_v8  ;;  %v6130_v5 = vld [vmem:[%s6449_s28 + $0x2f0] sm:$0xff]   ;;  %v6131_v6 = vld [vmem:[%s6449_s28 + $0xf8] sm:$0xff]   ;;  %v6133_v8 = vld [vmem:[%s6449_s28 + $0x100] sm:$0xff]  }
  0x53   : > { %v6132_v7 = vld [vmem:[%s6449_s28 + $0x2f8] sm:$0xff]  }
  0x55   : > { %5739 = vmatpush3.bf16.msra.mxu0 %v1588_v9  ;;  %6009 = vmatpush3.bf16.msra.mxu1 %v1588_v9  ;;  %v6134_v9 = vld [vmem:[%s6449_s28 + $0x300] sm:$0xff]  }
  0x58   : > { %5741 = vmatmul.mubr.msk.bf16.vlgmr.msra.gmra.mrb[0].mxu0 %vm1201_vm0, %v6071_v10  ;;  %5869 = vmatmul.mubr.msk.bf16.vlgmr.msra.gmra.mrb[0].mxu1 %vm1201_vm0, %v6072_v11  ;;  %v6135_v10 = vld [vmem:[%s6449_s28 + $0x108] sm:$0xff]  }
  0x59   : > { %5744 = vmatprep.mubr.msk.bf16.mxu0 %vm1201_vm0, %v6073_v12  ;;  %5872 = vmatprep.mubr.msk.bf16.mxu1 %vm1201_vm0, %v6074_v13  ;;  %v6136_v11 = vld [vmem:[%s6449_s28 + $0x308] sm:$0xff]   ;;  %v6137_v12 = vld [vmem:[%s6449_s28 + $0x110] sm:$0xff]  }
  0x5a   : > { %v6138_v13 = vld [vmem:[%s6449_s28 + $0x310] sm:$0xff]  }
  0x60   : > { %5745 = vmatmul.mubr.msk.bf16.gmra.mrb[4].mxu0 %vm1201_vm0, %v6075_v14  ;;  %5873 = vmatmul.mubr.msk.bf16.gmra.mrb[4].mxu1 %vm1201_vm0, %v6076_v15  ;;  %v6139_v14 = vld [vmem:[%s6449_s28 + $0x118] sm:$0xff]  }
  0x61   : > { %5748 = vmatprep.mubr.msk.bf16.mxu0 %vm1201_vm0, %v6077_v16  ;;  %5876 = vmatprep.mubr.msk.bf16.mxu1 %vm1201_vm0, %v6078_v17  ;;  %v6140_v15 = vld [vmem:[%s6449_s28 + $0x318] sm:$0xff]   ;;  %v6141_v16 = vld [vmem:[%s6449_s28 + $0x120] sm:$0xff]  }
  0x62   : > { %v6142_v17 = vld [vmem:[%s6449_s28 + $0x320] sm:$0xff]  }
  0x68   : > { %5749 = vmatmul.mubr.msk.bf16.gmra.mrb[8].mxu0 %vm1201_vm0, %v6079_v18  ;;  %5877 = vmatmul.mubr.msk.bf16.gmra.mrb[8].mxu1 %vm1201_vm0, %v6080_v19  ;;  %v6143_v18 = vld [vmem:[%s6449_s28 + $0x128] sm:$0xff]  }
  0x69   : > { %5752 = vmatprep.mubr.msk.bf16.mxu0 %vm1201_vm0, %v6081_v20  ;;  %5880 = vmatprep.mubr.msk.bf16.mxu1 %vm1201_vm0, %v6082_v21  ;;  %v6144_v19 = vld [vmem:[%s6449_s28 + $0x328] sm:$0xff]   ;;  %v6145_v20 = vld [vmem:[%s6449_s28 + $0x130] sm:$0xff]  }
  0x6a   : > { %v6146_v21 = vld [vmem:[%s6449_s28 + $0x330] sm:$0xff]  }
  0x70   : > { %5753 = vmatmul.mubr.msk.bf16.gmra.mrb[12].mxu0 %vm1201_vm0, %v6083_v22  ;;  %5881 = vmatmul.mubr.msk.bf16.gmra.mrb[12].mxu1 %vm1201_vm0, %v6084_v23  ;;  %v6147_v22 = vld [vmem:[%s6449_s28 + $0x138] sm:$0xff]  }
  0x71   : > { %5756 = vmatprep.mubr.msk.bf16.mxu0 %vm1201_vm0, %v6085_v24  ;;  %5884 = vmatprep.mubr.msk.bf16.mxu1 %vm1201_vm0, %v6086_v25  ;;  %v6148_v23 = vld [vmem:[%s6449_s28 + $0x338] sm:$0xff]   ;;  %v6149_v24 = vld [vmem:[%s6449_s28 + $0x140] sm:$0xff]  }
  0x72   : > { %v6150_v25 = vld [vmem:[%s6449_s28 + $0x340] sm:$0xff]  }
  0x78   : > { %5757 = vmatmul.mubr.msk.bf16.gmra.mrb[16].mxu0 %vm1201_vm0, %v6087_v26  ;;  %5885 = vmatmul.mubr.msk.bf16.gmra.mrb[16].mxu1 %vm1201_vm0, %v6088_v27  ;;  %v6151_v26 = vld [vmem:[%s6449_s28 + $0x148] sm:$0xff]  }
  0x79   : > { %5760 = vmatprep.mubr.msk.bf16.mxu0 %vm1201_vm0, %v6089_v28  ;;  %5888 = vmatprep.mubr.msk.bf16.mxu1 %vm1201_vm0, %v6090_v29  ;;  %v6152_v27 = vld [vmem:[%s6449_s28 + $0x348] sm:$0xff]   ;;  %v6153_v28 = vld [vmem:[%s6449_s28 + $0x150] sm:$0xff]  }
  0x7a   : > { %v6154_v29 = vld [vmem:[%s6449_s28 + $0x350] sm:$0xff]  }
  0x80   : > { %5761 = vmatmul.mubr.msk.bf16.gmra.mrb[20].mxu0 %vm1201_vm0, %v6091_v30  ;;  %5889 = vmatmul.mubr.msk.bf16.gmra.mrb[20].mxu1 %vm1201_vm0, %v6092_v31  ;;  %v6155_v30 = vld [vmem:[%s6449_s28 + $0x158] sm:$0xff]  }
  0x81   : > { %5764 = vmatprep.mubr.msk.bf16.mxu0 %vm1201_vm0, %v6093_v32  ;;  %5892 = vmatprep.mubr.msk.bf16.mxu1 %vm1201_vm0, %v6094_v33  ;;  %v6156_v31 = vld [vmem:[%s6449_s28 + $0x358] sm:$0xff]   ;;  %v6157_v32 = vld [vmem:[%s6449_s28 + $0x160] sm:$0xff]  }
  0x82   : > { %v6158_v33 = vld [vmem:[%s6449_s28 + $0x360] sm:$0xff]  }
  0x88   : > { %5765 = vmatmul.mubr.msk.bf16.gmra.mrb[24].mxu0 %vm1201_vm0, %v6095_v34  ;;  %5893 = vmatmul.mubr.msk.bf16.gmra.mrb[24].mxu1 %vm1201_vm0, %v6096_v35  ;;  %v6159_v34 = vld [vmem:[%s6449_s28 + $0x168] sm:$0xff]  }
  0x89   : > { %5768 = vmatprep.mubr.msk.bf16.mxu0 %vm1201_vm0, %v6097_v36  ;;  %5896 = vmatprep.mubr.msk.bf16.mxu1 %vm1201_vm0, %v6098_v37  ;;  %v6160_v35 = vld [vmem:[%s6449_s28 + $0x368] sm:$0xff]   ;;  %v6161_v36 = vld [vmem:[%s6449_s28 + $0x170] sm:$0xff]  }
  0x8a   : > { %v6162_v37 = vld [vmem:[%s6449_s28 + $0x370] sm:$0xff]  }
  0x90   : > { %5769 = vmatmul.mubr.msk.bf16.gmra.mrb[28].mxu0 %vm1201_vm0, %v6099_v38  ;;  %5897 = vmatmul.mubr.msk.bf16.gmra.mrb[28].mxu1 %vm1201_vm0, %v6100_v39  ;;  %v6163_v38 = vld [vmem:[%s6449_s28 + $0x178] sm:$0xff]  }
  0x91   : > { %5772 = vmatprep.mubr.msk.bf16.mxu0 %vm1201_vm0, %v6101_v40  ;;  %5900 = vmatprep.mubr.msk.bf16.mxu1 %vm1201_vm0, %v6102_v41  ;;  %v6164_v39 = vld [vmem:[%s6449_s28 + $0x378] sm:$0xff]   ;;  %v6165_v40 = vld [vmem:[%s6449_s28 + $0x180] sm:$0xff]  }
  0x92   : > { %v6166_v41 = vld [vmem:[%s6449_s28 + $0x380] sm:$0xff]  }
  0x98   : > { %5773 = vmatmul.mubr.msk.bf16.gmra.mrb[32].mxu0 %vm1201_vm0, %v6103_v42  ;;  %5901 = vmatmul.mubr.msk.bf16.gmra.mrb[32].mxu1 %vm1201_vm0, %v6104_v43  ;;  %v6167_v42 = vld [vmem:[%s6449_s28 + $0x188] sm:$0xff]  }
  0x99   : > { %5776 = vmatprep.mubr.msk.bf16.mxu0 %vm1201_vm0, %v6105_v44  ;;  %5904 = vmatprep.mubr.msk.bf16.mxu1 %vm1201_vm0, %v6106_v45  ;;  %v6168_v43 = vld [vmem:[%s6449_s28 + $0x388] sm:$0xff]   ;;  %v6169_v44 = vld [vmem:[%s6449_s28 + $0x190] sm:$0xff]  }
  0x9a   : > { %v6170_v45 = vld [vmem:[%s6449_s28 + $0x390] sm:$0xff]  }
  0xa0   : > { %5777 = vmatmul.mubr.msk.bf16.gmra.mrb[36].mxu0 %vm1201_vm0, %v6107_v46  ;;  %5905 = vmatmul.mubr.msk.bf16.gmra.mrb[36].mxu1 %vm1201_vm0, %v6108_v47  ;;  %v6171_v46 = vld [vmem:[%s6449_s28 + $0x198] sm:$0xff]  }
  0xa1   : > { %5780 = vmatprep.mubr.msk.bf16.mxu0 %vm1201_vm0, %v6109_v48  ;;  %5908 = vmatprep.mubr.msk.bf16.mxu1 %vm1201_vm0, %v6110_v49  ;;  %v6172_v47 = vld [vmem:[%s6449_s28 + $0x398] sm:$0xff]   ;;  %v6173_v48 = vld [vmem:[%s6449_s28 + $0x1a0] sm:$0xff]  }
  0xa2   : > { %v6174_v49 = vld [vmem:[%s6449_s28 + $0x3a0] sm:$0xff]  }
  0xa8   : > { %5781 = vmatmul.mubr.msk.bf16.gmra.mrb[40].mxu0 %vm1201_vm0, %v6111_v50  ;;  %5909 = vmatmul.mubr.msk.bf16.gmra.mrb[40].mxu1 %vm1201_vm0, %v6112_v51  ;;  %v6175_v50 = vld [vmem:[%s6449_s28 + $0x1a8] sm:$0xff]  }
  0xa9   : > { %5784 = vmatprep.mubr.msk.bf16.mxu0 %vm1201_vm0, %v6113_v52  ;;  %5912 = vmatprep.mubr.msk.bf16.mxu1 %vm1201_vm0, %v6114_v53  ;;  %v6176_v51 = vld [vmem:[%s6449_s28 + $0x3a8] sm:$0xff]   ;;  %v6177_v52 = vld [vmem:[%s6449_s28 + $0x1b0] sm:$0xff]  }
  0xaa   : > { %v6178_v53 = vld [vmem:[%s6449_s28 + $0x3b0] sm:$0xff]  }
  0xb0   : > { %5785 = vmatmul.mubr.msk.bf16.gmra.mrb[44].mxu0 %vm1201_vm0, %v6115_v54  ;;  %5913 = vmatmul.mubr.msk.bf16.gmra.mrb[44].mxu1 %vm1201_vm0, %v6116_v55  ;;  %v6697_v54 = vld [vmem:[%s8770_s2] ss:$0 sm:$0xff] }
  0xb1   : > { %5788 = vmatprep.mubr.msk.bf16.mxu0 %vm1201_vm0, %v6117_v56  ;;  %5916 = vmatprep.mubr.msk.bf16.mxu1 %vm1201_vm0, %v6118_v57 }
  0xb8   : > { %5789 = vmatmul.mubr.msk.bf16.gmra.mrb[48].mxu0 %vm1201_vm0, %v6119_v58  ;;  %5917 = vmatmul.mubr.msk.bf16.gmra.mrb[48].mxu1 %vm1201_vm0, %v6120_v59  ;;  %v6705_v58 = vld [vmem:[%s8771_s3] ss:$0 sm:$0xff] }
  0xb9   : > { %5792 = vmatprep.mubr.msk.bf16.mxu0 %vm1201_vm0, %v6121_v60  ;;  %5920 = vmatprep.mubr.msk.bf16.mxu1 %vm1201_vm0, %v6122_v61 }
  0xc0   : > { %5793 = vmatmul.mubr.msk.bf16.gmra.mrb[52].mxu0 %vm1201_vm0, %v6123_v62  ;;  %5921 = vmatmul.mubr.msk.bf16.gmra.mrb[52].mxu1 %vm1201_vm0, %v6124_v63  ;;  %v6179_v62 = vld [vmem:[%s6449_s28 + $0x1b8] sm:$0xff]  }
  0xc1   : > { %5796 = vmatprep.mubr.msk.bf16.mxu0 %vm1201_vm0, %v6125_v0  ;;  %5924 = vmatprep.mubr.msk.bf16.mxu1 %vm1201_vm0, %v6126_v1  ;;  %v6180_v63 = vld [vmem:[%s6449_s28 + $0x3b8] sm:$0xff]  }
  0xc8   : > { %5797 = vmatmul.mubr.msk.bf16.gmra.mrb[56].mxu0 %vm1201_vm0, %v6127_v2  ;;  %5925 = vmatmul.mubr.msk.bf16.gmra.mrb[56].mxu1 %vm1201_vm0, %v6128_v3 }
  0xc9   : > { %5800 = vmatprep.mubr.msk.bf16.mxu0 %vm1201_vm0, %v6129_v4  ;;  %5928 = vmatprep.mubr.msk.bf16.mxu1 %vm1201_vm0, %v6130_v5  ;;  %v6181_v4 = vld [vmem:[%s6449_s28 + $0x1c0] sm:$0xff]  }
  0xca   : > { %v6182_v5 = vld [vmem:[%s6449_s28 + $0x3c0] sm:$0xff]  }
  0xd0   : > { %5801 = vmatmul.mubr.msk.bf16.gmra.mrb[60].mxu0 %vm1201_vm0, %v6131_v6  ;;  %5929 = vmatmul.mubr.msk.bf16.gmra.mrb[60].mxu1 %vm1201_vm0, %v6132_v7 }
  0xd1   : > { %5804 = vmatprep.mubr.msk.bf16.mxu0 %vm1201_vm0, %v6133_v8  ;;  %5932 = vmatprep.mubr.msk.bf16.mxu1 %vm1201_vm0, %v6134_v9 }
  0xd8   : > { %5805 = vmatmul.mubr.msk.bf16.gmra.mrb[64].mxu0 %vm1201_vm0, %v6135_v10  ;;  %5933 = vmatmul.mubr.msk.bf16.gmra.mrb[64].mxu1 %vm1201_vm0, %v6136_v11 }
  0xd9   : > { %5808 = vmatprep.mubr.msk.bf16.mxu0 %vm1201_vm0, %v6137_v12  ;;  %5936 = vmatprep.mubr.msk.bf16.mxu1 %vm1201_vm0, %v6138_v13  ;;  %v6719_v12 = vld [vmem:[%s8772_s4] ss:$0 sm:$0xff] }
  0xe0   : > { %5809 = vmatmul.mubr.msk.bf16.gmra.mrb[68].mxu0 %vm1201_vm0, %v6139_v14  ;;  %5937 = vmatmul.mubr.msk.bf16.gmra.mrb[68].mxu1 %vm1201_vm0, %v6140_v15 }
  0xe1   : > { %5812 = vmatprep.mubr.msk.bf16.mxu0 %vm1201_vm0, %v6141_v16  ;;  %5940 = vmatprep.mubr.msk.bf16.mxu1 %vm1201_vm0, %v6142_v17 }
  0xe8   : > { %5813 = vmatmul.mubr.msk.bf16.gmra.mrb[72].mxu0 %vm1201_vm0, %v6143_v18  ;;  %5941 = vmatmul.mubr.msk.bf16.gmra.mrb[72].mxu1 %vm1201_vm0, %v6144_v19 }
  0xe9   : > { %5816 = vmatprep.mubr.msk.bf16.mxu0 %vm1201_vm0, %v6145_v20  ;;  %5944 = vmatprep.mubr.msk.bf16.mxu1 %vm1201_vm0, %v6146_v21 }
  0xf0   : > { %5817 = vmatmul.mubr.msk.bf16.gmra.mrb[76].mxu0 %vm1201_vm0, %v6147_v22  ;;  %5945 = vmatmul.mubr.msk.bf16.gmra.mrb[76].mxu1 %vm1201_vm0, %v6148_v23 }
  0xf1   : > { %5820 = vmatprep.mubr.msk.bf16.mxu0 %vm1201_vm0, %v6149_v24  ;;  %5948 = vmatprep.mubr.msk.bf16.mxu1 %vm1201_vm0, %v6150_v25 }
  0xf8   : > { %5821 = vmatmul.mubr.msk.bf16.gmra.mrb[80].mxu0 %vm1201_vm0, %v6151_v26  ;;  %5949 = vmatmul.mubr.msk.bf16.gmra.mrb[80].mxu1 %vm1201_vm0, %v6152_v27 }
  0xf9   : > { %5824 = vmatprep.mubr.msk.bf16.mxu0 %vm1201_vm0, %v6153_v28  ;;  %5952 = vmatprep.mubr.msk.bf16.mxu1 %vm1201_vm0, %v6154_v29 }
 0x100   : > { %5825 = vmatmul.mubr.msk.bf16.gmra.mrb[84].mxu0 %vm1201_vm0, %v6155_v30  ;;  %5953 = vmatmul.mubr.msk.bf16.gmra.mrb[84].mxu1 %vm1201_vm0, %v6156_v31 }
 0x101   : > { %5828 = vmatprep.mubr.msk.bf16.mxu0 %vm1201_vm0, %v6157_v32  ;;  %5956 = vmatprep.mubr.msk.bf16.mxu1 %vm1201_vm0, %v6158_v33 }
 0x108   : > { %5829 = vmatmul.mubr.msk.bf16.gmra.mrb[88].mxu0 %vm1201_vm0, %v6159_v34  ;;  %5957 = vmatmul.mubr.msk.bf16.gmra.mrb[88].mxu1 %vm1201_vm0, %v6160_v35 }
 0x109   : > { %5832 = vmatprep.mubr.msk.bf16.mxu0 %vm1201_vm0, %v6161_v36  ;;  %5960 = vmatprep.mubr.msk.bf16.mxu1 %vm1201_vm0, %v6162_v37 }
 0x110   : > { %5833 = vmatmul.mubr.msk.bf16.gmra.mrb[92].mxu0 %vm1201_vm0, %v6163_v38  ;;  %5961 = vmatmul.mubr.msk.bf16.gmra.mrb[92].mxu1 %vm1201_vm0, %v6164_v39 }
 0x111   : > { %5836 = vmatprep.mubr.msk.bf16.mxu0 %vm1201_vm0, %v6165_v40  ;;  %5964 = vmatprep.mubr.msk.bf16.mxu1 %vm1201_vm0, %v6166_v41  ;;  %v6183_v41 = vld [vmem:[%s6449_s28 + $0x1c8] sm:$0xff]  }
 0x118   : > { %5837 = vmatmul.mubr.msk.bf16.gmra.mrb[96].mxu0 %vm1201_vm0, %v6167_v42  ;;  %5965 = vmatmul.mubr.msk.bf16.gmra.mrb[96].mxu1 %vm1201_vm0, %v6168_v43  ;;  %v6184_v42 = vld [vmem:[%s6449_s28 + $0x3c8] sm:$0xff]  }
 0x119   : > { %5840 = vmatprep.mubr.msk.bf16.mxu0 %vm1201_vm0, %v6169_v44  ;;  %5968 = vmatprep.mubr.msk.bf16.mxu1 %vm1201_vm0, %v6170_v45 }
 0x120   : > { %5841 = vmatmul.mubr.msk.bf16.gmra.mrb[100].mxu0 %vm1201_vm0, %v6171_v46  ;;  %5969 = vmatmul.mubr.msk.bf16.gmra.mrb[100].mxu1 %vm1201_vm0, %v6172_v47 }
 0x121   : > { %5844 = vmatprep.mubr.msk.bf16.mxu0 %vm1201_vm0, %v6173_v48  ;;  %5972 = vmatprep.mubr.msk.bf16.mxu1 %vm1201_vm0, %v6174_v49  ;;  %v6185_v49 = vld [vmem:[%s6449_s28 + $0x1d0] sm:$0xff]  }
 0x128   : > { %5845 = vmatmul.mubr.msk.bf16.gmra.mrb[104].mxu0 %vm1201_vm0, %v6175_v50  ;;  %5973 = vmatmul.mubr.msk.bf16.gmra.mrb[104].mxu1 %vm1201_vm0, %v6176_v51  ;;  %v6186_v50 = vld [vmem:[%s6449_s28 + $0x3d0] sm:$0xff]  }
 0x129   : > { %5848 = vmatprep.mubr.msk.bf16.mxu0 %vm1201_vm0, %v6177_v52  ;;  %5976 = vmatprep.mubr.msk.bf16.mxu1 %vm1201_vm0, %v6178_v53 }
 0x12b   : > { %v5742_v55 = vpop.f32.mrb[0].mxu0  ;;  %v5870_v56 = vpop.f32.mrb[0].mxu1 }
 0x12c   : > { %v1633_v57 = vadd.f32 %v5742_v55, %v6697_v54  ;;  %v2145_v59 = vadd.f32 %v5870_v56, %v6697_v54  ;;  %v1624_v60 = vpop.f32.mrb[1].mxu0  ;;  %v2136_v61 = vpop.f32.mrb[1].mxu1 }
 0x12d   : > { %v1625_v0 = vadd.f32 %v6697_v54, %v1624_v60  ;;  %v2137_v1 = vadd.f32 %v6697_v54, %v2136_v61  ;;  %v5743_v2 = vpop.f32.mrb[2].mxu0  ;;  %v5871_v3 = vpop.f32.mrb[2].mxu1 }
 0x12e   : > { %v2649_v6 = vmax.f32 %v1633_v57, 0.0  ;;  %v2777_v7 = vmax.f32 %v2145_v59, 0.0  ;;  %v1636_v8 = vadd.f32 %v5743_v2, %v6697_v54  ;;  %v2148_v9 = vadd.f32 %v5871_v3, %v6697_v54  ;;  %v1627_v10 = vpop.f32.mrb[3].mxu0  ;;  %v2139_v11 = vpop.f32.mrb[3].mxu1 }
 0x12f   : > { %v2647_v13 = vmax.f32 %v1625_v0, 0.0  ;;  %v2775_v14 = vmax.f32 %v2137_v1, 0.0  ;;  %v1628_v15 = vadd.f32 %v6697_v54, %v1627_v10  ;;  %v2140_v16 = vadd.f32 %v6697_v54, %v2139_v11 }
 0x130   : > { %v2912_v17 = vmul.f32 %v6705_v58, %v2649_v6  ;;  %v3040_v18 = vmul.f32 %v6705_v58, %v2777_v7  ;;  %v2650_v19 = vmax.f32 %v1636_v8, 0.0  ;;  %v2778_v20 = vmax.f32 %v2148_v9, 0.0  ;;  %5849 = vmatmul.mubr.msk.bf16.gmra.mrb[108].mxu0 %vm1201_vm0, %v6179_v62  ;;  %5977 = vmatmul.mubr.msk.bf16.gmra.mrb[108].mxu1 %vm1201_vm0, %v6180_v63 }
 0x131   : > { %v2910_v21 = vmul.f32 %v6705_v58, %v2647_v13  ;;  %v3038_v22 = vmul.f32 %v6705_v58, %v2775_v14  ;;  %v2648_v23 = vmax.f32 %v1628_v15, 0.0  ;;  %v2776_v24 = vmax.f32 %v2140_v16, 0.0  ;;  %5852 = vmatprep.mubr.msk.bf16.mxu0 %vm1201_vm0, %v6181_v4  ;;  %5980 = vmatprep.mubr.msk.bf16.mxu1 %vm1201_vm0, %v6182_v5 }
 0x132   : > { %v3175_v25 = vadd.f32 %v6719_v12, %v2912_v17  ;;  %v3303_v26 = vadd.f32 %v6719_v12, %v3040_v18  ;;  %v2913_v27 = vmul.f32 %v6705_v58, %v2650_v19  ;;  %v3041_v28 = vmul.f32 %v6705_v58, %v2778_v20 }
 0x133   : > { %v3173_v29 = vadd.f32 %v6719_v12, %v2910_v21  ;;  %v3301_v30 = vadd.f32 %v6719_v12, %v3038_v22  ;;  %v2911_v31 = vmul.f32 %v6705_v58, %v2648_v23  ;;  %v3039_v32 = vmul.f32 %v6705_v58, %v2776_v24  ;;  %v5746_v33 = vpop.f32.mrb[4].mxu0  ;;  %v5874_v34 = vpop.f32.mrb[4].mxu1  ;;  %v6187_v24 = vld [vmem:[%s6449_s28 + $0x1d8] sm:$0xff]  }
 0x134   : > { %v5336_v35 = vpack.c.bf16 %v3175_v25, %v3175_v25  ;;  %v5464_v36 = vpack.c.bf16 %v3303_v26, %v3303_v26  ;;  %v3176_v37 = vadd.f32 %v6719_v12, %v2913_v27  ;;  %v3304_v38 = vadd.f32 %v6719_v12, %v3041_v28  ;;  %v1640_v39 = vpop.f32.mrb[5].mxu0  ;;  %v2152_v40 = vpop.f32.mrb[5].mxu1 }
 0x135   : > { %v5334_v43 = vpack.c.bf16 %v3173_v29, %v3173_v29  ;;  %v5462_v44 = vpack.c.bf16 %v3301_v30, %v3301_v30  ;;  %v3174_v45 = vadd.f32 %v6719_v12, %v2911_v31  ;;  %v3302_v46 = vadd.f32 %v6719_v12, %v3039_v32  ;;  %v5747_v47 = vpop.f32.mrb[6].mxu0  ;;  %v5875_v48 = vpop.f32.mrb[6].mxu1  ;;  %v6188_v31 = vld [vmem:[%s6449_s28 + $0x3d8] sm:$0xff]  }
 0x136   : > { %4456 = vst.msk [vmem:[%s6749_s9 + $0x8] sm:$0xf] %vm4453_vm2, %v5336_v35  ;;  %4584 = vst.msk [vmem:[%s6749_s9 + $0x208] sm:$0xf] %vm4453_vm2, %v5464_v36  ;;  %v5337_v51 = vpack.c.bf16 %v3176_v37, %v3176_v37  ;;  %v5465_v52 = vpack.c.bf16 %v3304_v38, %v3304_v38  ;;  %v1649_v53 = vadd.f32 %v5746_v33, %v6697_v54  ;;  %v1643_v56 = vpop.f32.mrb[7].mxu0  ;;  %v2155_v57 = vpop.f32.mrb[7].mxu1 }
 0x137   : > { %v2161_v55 = vadd.f32 %v5874_v34, %v6697_v54  ;;  %4454 = vst.msk [vmem:[%s6749_s9] sm:$0xf] %vm4453_vm2, %v5334_v43  ;;  %4582 = vst.msk [vmem:[%s6749_s9 + $0x200] sm:$0xf] %vm4453_vm2, %v5462_v44  ;;  %v5335_v59 = vpack.c.bf16 %v3174_v45, %v3174_v45  ;;  %v5463_v60 = vpack.c.bf16 %v3302_v46, %v3302_v46  ;;  %v6189_v38 = vld [vmem:[%s6449_s28 + $0x1e0] sm:$0xff]  }
 0x138   : > { %v1641_v61 = vadd.f32 %v6697_v54, %v1640_v39  ;;  %v2153_v62 = vadd.f32 %v6697_v54, %v2152_v40  ;;  %4457 = vst.msk [vmem:[%s6749_s9 + $0xc] sm:$0xf] %vm4453_vm2, %v5337_v51  ;;  %4585 = vst.msk [vmem:[%s6749_s9 + $0x20c] sm:$0xf] %vm4453_vm2, %v5465_v52  ;;  %v2653_v63 = vmax.f32 %v1649_v53, 0.0  ;;  %v1652_v1 = vadd.f32 %v5747_v47, %v6697_v54  ;;  %v6190_v39 = vld [vmem:[%s6449_s28 + $0x3e0] sm:$0xff]  }
 0x139   : > { %v2781_v0 = vmax.f32 %v2161_v55, 0.0  ;;  %v2164_v2 = vadd.f32 %v5875_v48, %v6697_v54  ;;  %5853 = vmatmul.mubr.msk.bf16.gmra.mrb[112].mxu0 %vm1201_vm0, %v6183_v41  ;;  %5981 = vmatmul.mubr.msk.bf16.gmra.mrb[112].mxu1 %vm1201_vm0, %v6184_v42  ;;  %4455 = vst.msk [vmem:[%s6749_s9 + $0x4] sm:$0xf] %vm4453_vm2, %v5335_v59  ;;  %4583 = vst.msk [vmem:[%s6749_s9 + $0x204] sm:$0xf] %vm4453_vm2, %v5463_v60  ;;  %v1644_v5 = vadd.f32 %v6697_v54, %v1643_v56 }
 0x13a   : > { %v2651_v3 = vmax.f32 %v1641_v61, 0.0  ;;  %v2779_v4 = vmax.f32 %v2153_v62, 0.0  ;;  %v2156_v6 = vadd.f32 %v6697_v54, %v2155_v57  ;;  %5856 = vmatprep.mubr.msk.bf16.mxu0 %vm1201_vm0, %v6185_v49  ;;  %5984 = vmatprep.mubr.msk.bf16.mxu1 %vm1201_vm0, %v6186_v50  ;;  %v2916_v7 = vmul.f32 %v6705_v58, %v2653_v63 }
 0x13b   : > { %v3044_v8 = vmul.f32 %v6705_v58, %v2781_v0  ;;  %v2654_v9 = vmax.f32 %v1652_v1, 0.0  ;;  %v2782_v10 = vmax.f32 %v2164_v2, 0.0  ;;  %v2652_v14 = vmax.f32 %v1644_v5, 0.0  ;;  %v5750_v16 = vpop.f32.mrb[8].mxu0  ;;  %v5878_v17 = vpop.f32.mrb[8].mxu1 }
 0x13c   : > { %v2914_v11 = vmul.f32 %v6705_v58, %v2651_v3  ;;  %v3042_v13 = vmul.f32 %v6705_v58, %v2779_v4  ;;  %v2780_v15 = vmax.f32 %v2156_v6, 0.0  ;;  %v3179_v18 = vadd.f32 %v6719_v12, %v2916_v7  ;;  %v1656_v22 = vpop.f32.mrb[9].mxu0  ;;  %v2168_v23 = vpop.f32.mrb[9].mxu1  ;;  %v6191_v6 = vld [vmem:[%s6449_s28 + $0x1e8] sm:$0xff]  }
 0x13d   : > { %v3307_v19 = vadd.f32 %v6719_v12, %v3044_v8  ;;  %v2917_v20 = vmul.f32 %v6705_v58, %v2654_v9  ;;  %v3045_v21 = vmul.f32 %v6705_v58, %v2782_v10  ;;  %v2915_v27 = vmul.f32 %v6705_v58, %v2652_v14  ;;  %v5751_v29 = vpop.f32.mrb[10].mxu0  ;;  %v5879_v30 = vpop.f32.mrb[10].mxu1  ;;  %v6192_v14 = vld [vmem:[%s6449_s28 + $0x3e8] sm:$0xff]  }
 0x13e   : > { %v3177_v25 = vadd.f32 %v6719_v12, %v2914_v11  ;;  %v3305_v26 = vadd.f32 %v6719_v12, %v3042_v13  ;;  %v3043_v28 = vmul.f32 %v6705_v58, %v2780_v15  ;;  %v5340_v32 = vpack.c.bf16 %v3179_v18, %v3179_v18  ;;  %v1659_v36 = vpop.f32.mrb[11].mxu0  ;;  %v2171_v37 = vpop.f32.mrb[11].mxu1 }
 0x13f   : > { %v5468_v33 = vpack.c.bf16 %v3307_v19, %v3307_v19  ;;  %v3180_v34 = vadd.f32 %v6719_v12, %v2917_v20  ;;  %v3308_v35 = vadd.f32 %v6719_v12, %v3045_v21  ;;  %v3178_v42 = vadd.f32 %v6719_v12, %v2915_v27  ;;  %v6193_v21 = vld [vmem:[%s6449_s28 + $0x1f0] sm:$0xff]  }
 0x140   : > { %v5338_v40 = vpack.c.bf16 %v3177_v25, %v3177_v25  ;;  %v5466_v41 = vpack.c.bf16 %v3305_v26, %v3305_v26  ;;  %v3306_v43 = vadd.f32 %v6719_v12, %v3043_v28  ;;  %4460 = vst.msk [vmem:[%s6749_s9 + $0x18] sm:$0xf] %vm4453_vm2, %v5340_v32  ;;  %v1665_v46 = vadd.f32 %v5750_v16, %v6697_v54  ;;  %v6194_v26 = vld [vmem:[%s6449_s28 + $0x3f0] sm:$0xff]  }
 0x141   : > { %4588 = vst.msk [vmem:[%s6749_s9 + $0x218] sm:$0xf] %vm4453_vm2, %v5468_v33  ;;  %v5341_v44 = vpack.c.bf16 %v3180_v34, %v3180_v34  ;;  %v5469_v45 = vpack.c.bf16 %v3308_v35, %v3308_v35  ;;  %v2177_v47 = vadd.f32 %v5878_v17, %v6697_v54  ;;  %5857 = vmatmul.mubr.msk.bf16.gmra.mrb[116].mxu0 %vm1201_vm0, %v6187_v24 }
 0x142   : > { %4458 = vst.msk [vmem:[%s6749_s9 + $0x10] sm:$0xf] %vm4453_vm2, %v5338_v40  ;;  %4586 = vst.msk [vmem:[%s6749_s9 + $0x210] sm:$0xf] %vm4453_vm2, %v5466_v41  ;;  %v5339_v48 = vpack.c.bf16 %v3178_v42, %v3178_v42  ;;  %v5467_v49 = vpack.c.bf16 %v3306_v43, %v3306_v43  ;;  %v1657_v50 = vadd.f32 %v6697_v54, %v1656_v22  ;;  %5985 = vmatmul.mubr.msk.bf16.gmra.mrb[116].mxu1 %vm1201_vm0, %v6188_v31 }
 0x143   : > { %v2169_v51 = vadd.f32 %v6697_v54, %v2168_v23  ;;  %4461 = vst.msk [vmem:[%s6749_s9 + $0x1c] sm:$0xf] %vm4453_vm2, %v5341_v44  ;;  %4589 = vst.msk [vmem:[%s6749_s9 + $0x21c] sm:$0xf] %vm4453_vm2, %v5469_v45  ;;  %v2657_v52 = vmax.f32 %v1665_v46, 0.0  ;;  %v2785_v53 = vmax.f32 %v2177_v47, 0.0  ;;  %v1668_v55 = vadd.f32 %v5751_v29, %v6697_v54  ;;  %5860 = vmatprep.mubr.msk.bf16.mxu0 %vm1201_vm0, %v6189_v38 }
 0x144   : > { %v2180_v56 = vadd.f32 %v5879_v30, %v6697_v54  ;;  %5988 = vmatprep.mubr.msk.bf16.mxu1 %vm1201_vm0, %v6190_v39  ;;  %4459 = vst.msk [vmem:[%s6749_s9 + $0x14] sm:$0xf] %vm4453_vm2, %v5339_v48  ;;  %4587 = vst.msk [vmem:[%s6749_s9 + $0x214] sm:$0xf] %vm4453_vm2, %v5467_v49  ;;  %v2655_v57 = vmax.f32 %v1657_v50, 0.0  ;;  %v1660_v60 = vadd.f32 %v6697_v54, %v1659_v36  ;;  %v5754_v62 = vpop.f32.mrb[12].mxu0 }
 0x145   : > { %v2783_v59 = vmax.f32 %v2169_v51, 0.0  ;;  %v2172_v61 = vadd.f32 %v6697_v54, %v2171_v37  ;;  %v5882_v63 = vpop.f32.mrb[12].mxu1  ;;  %v2920_v0 = vmul.f32 %v6705_v58, %v2657_v52  ;;  %v3048_v1 = vmul.f32 %v6705_v58, %v2785_v53  ;;  %v1672_v4 = vpop.f32.mrb[13].mxu0  ;;  %v6195_v51 = vld [vmem:[%s6449_s28 + $0x1f8] sm:$0xff]  }
 0x146   : > { %v2658_v2 = vmax.f32 %v1668_v55, 0.0  ;;  %v2786_v3 = vmax.f32 %v2180_v56, 0.0  ;;  %v2184_v5 = vpop.f32.mrb[13].mxu1  ;;  %v2918_v7 = vmul.f32 %v6705_v58, %v2655_v57  ;;  %v2656_v9 = vmax.f32 %v1660_v60, 0.0  ;;  %v5755_v11 = vpop.f32.mrb[14].mxu0  ;;  %v6196_v60 = vld [vmem:[%s6449_s28 + $0x3f8] sm:$0xff]  }
 0x147   : > { %v3046_v8 = vmul.f32 %v6705_v58, %v2783_v59  ;;  %v2784_v10 = vmax.f32 %v2172_v61, 0.0  ;;  %v5883_v13 = vpop.f32.mrb[14].mxu1  ;;  %v3183_v15 = vadd.f32 %v6719_v12, %v2920_v0  ;;  %v3311_v16 = vadd.f32 %v6719_v12, %v3048_v1  ;;  %v1675_v19 = vpop.f32.mrb[15].mxu0 }
 0x148   : > { %v2921_v17 = vmul.f32 %v6705_v58, %v2658_v2  ;;  %v3049_v18 = vmul.f32 %v6705_v58, %v2786_v3  ;;  %v2187_v20 = vpop.f32.mrb[15].mxu1  ;;  %v3181_v22 = vadd.f32 %v6719_v12, %v2918_v7  ;;  %v2919_v24 = vmul.f32 %v6705_v58, %v2656_v9 }
 0x149   : > { %v3309_v23 = vadd.f32 %v6719_v12, %v3046_v8  ;;  %v3047_v25 = vmul.f32 %v6705_v58, %v2784_v10  ;;  %v5344_v27 = vpack.c.bf16 %v3183_v15, %v3183_v15  ;;  %v5472_v28 = vpack.c.bf16 %v3311_v16, %v3311_v16  ;;  %5861 = vmatmul.mubr.msk.bf16.gmra.mrb[120].mxu0 %vm1201_vm0, %v6191_v6 }
 0x14a   : > { %v3184_v29 = vadd.f32 %v6719_v12, %v2921_v17  ;;  %v3312_v30 = vadd.f32 %v6719_v12, %v3049_v18  ;;  %v5342_v31 = vpack.c.bf16 %v3181_v22, %v3181_v22  ;;  %v3182_v33 = vadd.f32 %v6719_v12, %v2919_v24  ;;  %5989 = vmatmul.mubr.msk.bf16.gmra.mrb[120].mxu1 %vm1201_vm0, %v6192_v14 }
 0x14b   : > { %v5470_v32 = vpack.c.bf16 %v3309_v23, %v3309_v23  ;;  %v3310_v34 = vadd.f32 %v6719_v12, %v3047_v25  ;;  %4464 = vst.msk [vmem:[%s6749_s9 + $0x28] sm:$0xf] %vm4453_vm2, %v5344_v27  ;;  %4592 = vst.msk [vmem:[%s6749_s9 + $0x228] sm:$0xf] %vm4453_vm2, %v5472_v28  ;;  %v1681_v37 = vadd.f32 %v5754_v62, %v6697_v54  ;;  %5864 = vmatprep.mubr.msk.bf16.mxu0 %vm1201_vm0, %v6193_v21  ;;  %v5758_v43 = vpop.f32.mrb[16].mxu0  ;;  %v5886_v44 = vpop.f32.mrb[16].mxu1 }
 0x14c   : > { %v5345_v35 = vpack.c.bf16 %v3184_v29, %v3184_v29  ;;  %v5473_v36 = vpack.c.bf16 %v3312_v30, %v3312_v30  ;;  %v2193_v38 = vadd.f32 %v5882_v63, %v6697_v54  ;;  %4462 = vst.msk [vmem:[%s6749_s9 + $0x20] sm:$0xf] %vm4453_vm2, %v5342_v31  ;;  %v5343_v39 = vpack.c.bf16 %v3182_v33, %v3182_v33  ;;  %v1688_v49 = vpop.f32.mrb[17].mxu0  ;;  %v2200_v50 = vpop.f32.mrb[17].mxu1 }
 0x14d   : > { %4590 = vst.msk [vmem:[%s6749_s9 + $0x220] sm:$0xf] %vm4453_vm2, %v5470_v32  ;;  %v5471_v40 = vpack.c.bf16 %v3310_v34, %v3310_v34  ;;  %v1673_v41 = vadd.f32 %v6697_v54, %v1672_v4  ;;  %v2185_v42 = vadd.f32 %v6697_v54, %v2184_v5  ;;  %5992 = vmatprep.mubr.msk.bf16.mxu1 %vm1201_vm0, %v6194_v26  ;;  %v2661_v45 = vmax.f32 %v1681_v37, 0.0  ;;  %v5759_v57 = vpop.f32.mrb[18].mxu0  ;;  %v5887_v59 = vpop.f32.mrb[18].mxu1 }
 0x14e   : > { %4465 = vst.msk [vmem:[%s6749_s9 + $0x2c] sm:$0xf] %vm4453_vm2, %v5345_v35  ;;  %4593 = vst.msk [vmem:[%s6749_s9 + $0x22c] sm:$0xf] %vm4453_vm2, %v5473_v36  ;;  %v2789_v46 = vmax.f32 %v2193_v38, 0.0  ;;  %v1684_v47 = vadd.f32 %v5755_v11, %v6697_v54  ;;  %v2196_v48 = vadd.f32 %v5883_v13, %v6697_v54  ;;  %v1676_v55 = vadd.f32 %v6697_v54, %v1675_v19  ;;  %v1691_v1 = vpop.f32.mrb[19].mxu0 }
 0x14f   : > { %4463 = vst.msk [vmem:[%s6749_s9 + $0x24] sm:$0xf] %vm4453_vm2, %v5343_v39  ;;  %4591 = vst.msk [vmem:[%s6749_s9 + $0x224] sm:$0xf] %vm4453_vm2, %v5471_v40  ;;  %v2659_v52 = vmax.f32 %v1673_v41, 0.0  ;;  %v2787_v53 = vmax.f32 %v2185_v42, 0.0  ;;  %v2188_v56 = vadd.f32 %v6697_v54, %v2187_v20  ;;  %v2924_v61 = vmul.f32 %v6705_v58, %v2661_v45 }
 0x150   : > { %v3052_v62 = vmul.f32 %v6705_v58, %v2789_v46  ;;  %v2662_v63 = vmax.f32 %v1684_v47, 0.0  ;;  %v2790_v0 = vmax.f32 %v2196_v48, 0.0  ;;  %v2203_v2 = vpop.f32.mrb[19].mxu1  ;;  %v2660_v5 = vmax.f32 %v1676_v55, 0.0 }
 0x151   : > { %v2922_v3 = vmul.f32 %v6705_v58, %v2659_v52  ;;  %v3050_v4 = vmul.f32 %v6705_v58, %v2787_v53  ;;  %v2788_v6 = vmax.f32 %v2188_v56, 0.0  ;;  %v3187_v7 = vadd.f32 %v6719_v12, %v2924_v61  ;;  %5865 = vmatmul.mubr.msk.bf16.gmra.mrb[124].mxu0 %vm1201_vm0, %v6195_v51 }
 0x152   : > { %v3315_v8 = vadd.f32 %v6719_v12, %v3052_v62  ;;  %v2925_v9 = vmul.f32 %v6705_v58, %v2662_v63  ;;  %v3053_v10 = vmul.f32 %v6705_v58, %v2790_v0  ;;  %v2923_v14 = vmul.f32 %v6705_v58, %v2660_v5  ;;  %5993 = vmatmul.mubr.msk.bf16.gmra.mrb[124].mxu1 %vm1201_vm0, %v6196_v60 }
 0x153   : > { %v3185_v11 = vadd.f32 %v6719_v12, %v2922_v3  ;;  %v3313_v13 = vadd.f32 %v6719_v12, %v3050_v4  ;;  %v3051_v15 = vmul.f32 %v6705_v58, %v2788_v6  ;;  %v5348_v16 = vpack.c.bf16 %v3187_v7, %v3187_v7  ;;  %v6895_v24 = vpop.f32.mrb[20].mxu0  ;;  %v6897_v25 = vpop.f32.mrb[20].mxu1 }
 0x154   : > { %v5476_v17 = vpack.c.bf16 %v3315_v8, %v3315_v8  ;;  %v3188_v18 = vadd.f32 %v6719_v12, %v2925_v9  ;;  %v3316_v19 = vadd.f32 %v6719_v12, %v3053_v10  ;;  %v3186_v22 = vadd.f32 %v6719_v12, %v2923_v14  ;;  %v6905_v30 = vpop.f32.mrb[21].mxu0  ;;  %v6907_v31 = vpop.f32.mrb[21].mxu1 }
 0x155   : > { %v5346_v20 = vpack.c.bf16 %v3185_v11, %v3185_v11  ;;  %v5474_v21 = vpack.c.bf16 %v3313_v13, %v3313_v13  ;;  %v3314_v23 = vadd.f32 %v6719_v12, %v3051_v15  ;;  %4468 = vst.msk [vmem:[%s6749_s9 + $0x38] sm:$0xf] %vm4453_vm2, %v5348_v16  ;;  %v1697_v28 = vadd.f32 %v5758_v43, %v6697_v54  ;;  %v6915_v36 = vpop.f32.mrb[22].mxu0  ;;  %v6917_v37 = vpop.f32.mrb[22].mxu1 }
 0x156   : > { %4596 = vst.msk [vmem:[%s6749_s9 + $0x238] sm:$0xf] %vm4453_vm2, %v5476_v17  ;;  %v5349_v26 = vpack.c.bf16 %v3188_v18, %v3188_v18  ;;  %v5477_v27 = vpack.c.bf16 %v3316_v19, %v3316_v19  ;;  %v2209_v29 = vadd.f32 %v5886_v44, %v6697_v54  ;;  %v5347_v32 = vpack.c.bf16 %v3186_v22, %v3186_v22  ;;  %v1707_v42 = vpop.f32.mrb[23].mxu0  ;;  %v2219_v43 = vpop.f32.mrb[23].mxu1 }
 0x157   : > { %4466 = vst.msk [vmem:[%s6749_s9 + $0x30] sm:$0xf] %vm4453_vm2, %v5346_v20  ;;  %4594 = vst.msk [vmem:[%s6749_s9 + $0x230] sm:$0xf] %vm4453_vm2, %v5474_v21  ;;  %v5475_v33 = vpack.c.bf16 %v3314_v23, %v3314_v23  ;;  %v1689_v34 = vadd.f32 %v6697_v54, %v1688_v49  ;;  %v2201_v35 = vadd.f32 %v6697_v54, %v2200_v50  ;;  %v2665_v38 = vmax.f32 %v1697_v28, 0.0 }
 0x158   : > { %4469 = vst.msk [vmem:[%s6749_s9 + $0x3c] sm:$0xf] %vm4453_vm2, %v5349_v26  ;;  %4597 = vst.msk [vmem:[%s6749_s9 + $0x23c] sm:$0xf] %vm4453_vm2, %v5477_v27  ;;  %v2793_v39 = vmax.f32 %v2209_v29, 0.0  ;;  %v1700_v40 = vadd.f32 %v5759_v57, %v6697_v54  ;;  %v2212_v41 = vadd.f32 %v5887_v59, %v6697_v54  ;;  %v1692_v46 = vadd.f32 %v6697_v54, %v1691_v1 }
 0x159   : > { %4467 = vst.msk [vmem:[%s6749_s9 + $0x34] sm:$0xf] %vm4453_vm2, %v5347_v32  ;;  %4595 = vst.msk [vmem:[%s6749_s9 + $0x234] sm:$0xf] %vm4453_vm2, %v5475_v33  ;;  %v2663_v44 = vmax.f32 %v1689_v34, 0.0  ;;  %v2791_v45 = vmax.f32 %v2201_v35, 0.0  ;;  %v2204_v47 = vadd.f32 %v6697_v54, %v2203_v2  ;;  %v2928_v48 = vmul.f32 %v6705_v58, %v2665_v38 }
 0x15a   : > { %v3056_v49 = vmul.f32 %v6705_v58, %v2793_v39  ;;  %v2666_v50 = vmax.f32 %v1700_v40, 0.0  ;;  %v2794_v51 = vmax.f32 %v2212_v41, 0.0  ;;  %v2664_v55 = vmax.f32 %v1692_v46, 0.0 }
 0x15b   : > { %v2926_v52 = vmul.f32 %v6705_v58, %v2663_v44  ;;  %v3054_v53 = vmul.f32 %v6705_v58, %v2791_v45  ;;  %v2792_v56 = vmax.f32 %v2204_v47, 0.0  ;;  %v3191_v57 = vadd.f32 %v6719_v12, %v2928_v48  ;;  %v6943_v2 = vpop.f32.mrb[24].mxu0  ;;  %v6945_v3 = vpop.f32.mrb[24].mxu1 }
 0x15c   : > { %v3319_v59 = vadd.f32 %v6719_v12, %v3056_v49  ;;  %v2929_v60 = vmul.f32 %v6705_v58, %v2666_v50  ;;  %v3057_v61 = vmul.f32 %v6705_v58, %v2794_v51  ;;  %v2927_v0 = vmul.f32 %v6705_v58, %v2664_v55  ;;  %v6949_v8 = vpop.f32.mrb[25].mxu0  ;;  %v6951_v9 = vpop.f32.mrb[25].mxu1 }
 0x15d   : > { %v3189_v62 = vadd.f32 %v6719_v12, %v2926_v52  ;;  %v3317_v63 = vadd.f32 %v6719_v12, %v3054_v53  ;;  %v3055_v1 = vmul.f32 %v6705_v58, %v2792_v56  ;;  %v5352_v4 = vpack.c.bf16 %v3191_v57, %v3191_v57  ;;  %v6955_v15 = vpop.f32.mrb[26].mxu0  ;;  %v6957_v16 = vpop.f32.mrb[26].mxu1 }
 0x15e   : > { %v5480_v5 = vpack.c.bf16 %v3319_v59, %v3319_v59  ;;  %v3192_v6 = vadd.f32 %v6719_v12, %v2929_v60  ;;  %v3320_v7 = vadd.f32 %v6719_v12, %v3057_v61  ;;  %v3190_v13 = vadd.f32 %v6719_v12, %v2927_v0  ;;  %v6967_v21 = vpop.f32.mrb[27].mxu0  ;;  %v6969_v22 = vpop.f32.mrb[27].mxu1 }
 0x15f   : > { %v5350_v10 = vpack.c.bf16 %v3189_v62, %v3189_v62  ;;  %v5478_v11 = vpack.c.bf16 %v3317_v63, %v3317_v63  ;;  %v3318_v14 = vadd.f32 %v6719_v12, %v3055_v1  ;;  %4472 = vst.msk [vmem:[%s6749_s9 + $0x48] sm:$0xf] %vm4453_vm2, %v5352_v4  ;;  %v1713_v19 = vadd.f32 %v6895_v24, %v6697_v54 }
 0x160   : > { %4600 = vst.msk [vmem:[%s6749_s9 + $0x248] sm:$0xf] %vm4453_vm2, %v5480_v5  ;;  %v5353_v17 = vpack.c.bf16 %v3192_v6, %v3192_v6  ;;  %v5481_v18 = vpack.c.bf16 %v3320_v7, %v3320_v7  ;;  %v2225_v20 = vadd.f32 %v6897_v25, %v6697_v54  ;;  %v5351_v23 = vpack.c.bf16 %v3190_v13, %v3190_v13 }
 0x161   : > { %4470 = vst.msk [vmem:[%s6749_s9 + $0x40] sm:$0xf] %vm4453_vm2, %v5350_v10  ;;  %4598 = vst.msk [vmem:[%s6749_s9 + $0x240] sm:$0xf] %vm4453_vm2, %v5478_v11  ;;  %v5479_v26 = vpack.c.bf16 %v3318_v14, %v3318_v14  ;;  %v1705_v27 = vadd.f32 %v6697_v54, %v6905_v30  ;;  %v2217_v24 = vadd.f32 %v6697_v54, %v6907_v31  ;;  %v2669_v25 = vmax.f32 %v1713_v19, 0.0 }
 0x162   : > { %4473 = vst.msk [vmem:[%s6749_s9 + $0x4c] sm:$0xf] %vm4453_vm2, %v5353_v17  ;;  %4601 = vst.msk [vmem:[%s6749_s9 + $0x24c] sm:$0xf] %vm4453_vm2, %v5481_v18  ;;  %v2797_v28 = vmax.f32 %v2225_v20, 0.0  ;;  %v1716_v29 = vadd.f32 %v6915_v36, %v6697_v54  ;;  %v2228_v32 = vadd.f32 %v6917_v37, %v6697_v54  ;;  %v1708_v31 = vadd.f32 %v6697_v54, %v1707_v42 }
 0x163   : > { %4471 = vst.msk [vmem:[%s6749_s9 + $0x44] sm:$0xf] %vm4453_vm2, %v5351_v23  ;;  %4599 = vst.msk [vmem:[%s6749_s9 + $0x244] sm:$0xf] %vm4453_vm2, %v5479_v26  ;;  %v2667_v30 = vmax.f32 %v1705_v27, 0.0  ;;  %v2795_v33 = vmax.f32 %v2217_v24, 0.0  ;;  %v2220_v34 = vadd.f32 %v6697_v54, %v2219_v43  ;;  %v2932_v35 = vmul.f32 %v6705_v58, %v2669_v25 }
 0x164   : > { %v3060_v38 = vmul.f32 %v6705_v58, %v2797_v28  ;;  %v2670_v39 = vmax.f32 %v1716_v29, 0.0  ;;  %v2798_v40 = vmax.f32 %v2228_v32, 0.0  ;;  %v2668_v41 = vmax.f32 %v1708_v31, 0.0  ;;  %v6997_v45 = vpop.f32.mrb[28].mxu0  ;;  %v6999_v46 = vpop.f32.mrb[28].mxu1 }
 0x165   : > { %v2930_v36 = vmul.f32 %v6705_v58, %v2667_v30  ;;  %v3058_v37 = vmul.f32 %v6705_v58, %v2795_v33  ;;  %v2796_v44 = vmax.f32 %v2220_v34, 0.0  ;;  %v3195_v42 = vadd.f32 %v6719_v12, %v2932_v35  ;;  %v7005_v49 = vpop.f32.mrb[29].mxu0  ;;  %v7007_v50 = vpop.f32.mrb[29].mxu1 }
 0x166   : > { %v3323_v43 = vadd.f32 %v6719_v12, %v3060_v38  ;;  %v2933_v47 = vmul.f32 %v6705_v58, %v2670_v39  ;;  %v3061_v48 = vmul.f32 %v6705_v58, %v2798_v40  ;;  %v2931_v53 = vmul.f32 %v6705_v58, %v2668_v41  ;;  %v7013_v56 = vpop.f32.mrb[30].mxu0  ;;  %v7015_v57 = vpop.f32.mrb[30].mxu1 }
 0x167   : > { %v3193_v51 = vadd.f32 %v6719_v12, %v2930_v36  ;;  %v3321_v52 = vadd.f32 %v6719_v12, %v3058_v37  ;;  %v3059_v55 = vmul.f32 %v6705_v58, %v2796_v44  ;;  %v5356_v59 = vpack.c.bf16 %v3195_v42, %v3195_v42  ;;  %v7019_v63 = vpop.f32.mrb[31].mxu0  ;;  %v7021_v0 = vpop.f32.mrb[31].mxu1 }
 0x168   : > { %v5484_v60 = vpack.c.bf16 %v3323_v43, %v3323_v43  ;;  %v3196_v61 = vadd.f32 %v6719_v12, %v2933_v47  ;;  %v3324_v62 = vadd.f32 %v6719_v12, %v3061_v48  ;;  %v3194_v5 = vadd.f32 %v6719_v12, %v2931_v53 }
 0x169   : > { %v5354_v1 = vpack.c.bf16 %v3193_v51, %v3193_v51  ;;  %v5482_v4 = vpack.c.bf16 %v3321_v52, %v3321_v52  ;;  %v3322_v6 = vadd.f32 %v6719_v12, %v3059_v55  ;;  %4476 = vst.msk [vmem:[%s6749_s9 + $0x58] sm:$0xf] %vm4453_vm2, %v5356_v59  ;;  %v1729_v11 = vadd.f32 %v6943_v2, %v6697_v54 }
 0x16a   : > { %4604 = vst.msk [vmem:[%s6749_s9 + $0x258] sm:$0xf] %vm4453_vm2, %v5484_v60  ;;  %v5357_v7 = vpack.c.bf16 %v3196_v61, %v3196_v61  ;;  %v5485_v10 = vpack.c.bf16 %v3324_v62, %v3324_v62  ;;  %v2241_v13 = vadd.f32 %v6945_v3, %v6697_v54  ;;  %v5355_v14 = vpack.c.bf16 %v3194_v5, %v3194_v5 }
 0x16b   : > { %4474 = vst.msk [vmem:[%s6749_s9 + $0x50] sm:$0xf] %vm4453_vm2, %v5354_v1  ;;  %4602 = vst.msk [vmem:[%s6749_s9 + $0x250] sm:$0xf] %vm4453_vm2, %v5482_v4  ;;  %v5483_v17 = vpack.c.bf16 %v3322_v6, %v3322_v6  ;;  %v1721_v18 = vadd.f32 %v6697_v54, %v6949_v8  ;;  %v2233_v19 = vadd.f32 %v6697_v54, %v6951_v9  ;;  %v2673_v2 = vmax.f32 %v1729_v11, 0.0  ;;  %v7057_v24 = vpop.f32.mrb[32].mxu0 }
 0x16c   : > { %4477 = vst.msk [vmem:[%s6749_s9 + $0x5c] sm:$0xf] %vm4453_vm2, %v5357_v7  ;;  %4605 = vst.msk [vmem:[%s6749_s9 + $0x25c] sm:$0xf] %vm4453_vm2, %v5485_v10  ;;  %v2801_v20 = vmax.f32 %v2241_v13, 0.0  ;;  %v1732_v3 = vadd.f32 %v6955_v15, %v6697_v54  ;;  %v2244_v23 = vadd.f32 %v6957_v16, %v6697_v54  ;;  %v1724_v9 = vadd.f32 %v6697_v54, %v6967_v21  ;;  %v7059_v25 = vpop.f32.mrb[32].mxu1 }
 0x16d   : > { %4475 = vst.msk [vmem:[%s6749_s9 + $0x54] sm:$0xf] %vm4453_vm2, %v5355_v14  ;;  %4603 = vst.msk [vmem:[%s6749_s9 + $0x254] sm:$0xf] %vm4453_vm2, %v5483_v17  ;;  %v2671_v8 = vmax.f32 %v1721_v18, 0.0  ;;  %v2799_v26 = vmax.f32 %v2233_v19, 0.0  ;;  %v2236_v27 = vadd.f32 %v6697_v54, %v6969_v22  ;;  %v2936_v15 = vmul.f32 %v6705_v58, %v2673_v2 }
 0x16e   : > { %v3064_v16 = vmul.f32 %v6705_v58, %v2801_v20  ;;  %v2674_v28 = vmax.f32 %v1732_v3, 0.0  ;;  %v2802_v29 = vmax.f32 %v2244_v23, 0.0  ;;  %v7063_v32 = vpop.f32.mrb[33].mxu0  ;;  %v7065_v30 = vpop.f32.mrb[33].mxu1  ;;  %v2672_v31 = vmax.f32 %v1724_v9, 0.0 }
 0x16f   : > { %v2934_v33 = vmul.f32 %v6705_v58, %v2671_v8  ;;  %v3062_v21 = vmul.f32 %v6705_v58, %v2799_v26  ;;  %v2800_v22 = vmax.f32 %v2236_v27, 0.0  ;;  %v7069_v34 = vpop.f32.mrb[34].mxu0  ;;  %v7071_v35 = vpop.f32.mrb[34].mxu1  ;;  %v3199_v38 = vadd.f32 %v6719_v12, %v2936_v15 }
 0x170   : > { %v3327_v39 = vadd.f32 %v6719_v12, %v3064_v16  ;;  %v2937_v40 = vmul.f32 %v6705_v58, %v2674_v28  ;;  %v3065_v36 = vmul.f32 %v6705_v58, %v2802_v29  ;;  %v7077_v37 = vpop.f32.mrb[35].mxu0  ;;  %v7079_v41 = vpop.f32.mrb[35].mxu1  ;;  %v2935_v43 = vmul.f32 %v6705_v58, %v2672_v31 }
 0x171   : > { %v3197_v44 = vadd.f32 %v6719_v12, %v2934_v33  ;;  %v3325_v42 = vadd.f32 %v6719_v12, %v3062_v21  ;;  %v3063_v47 = vmul.f32 %v6705_v58, %v2800_v22  ;;  %v5360_v48 = vpack.c.bf16 %v3199_v38, %v3199_v38 }
 0x172   : > { %v5488_v51 = vpack.c.bf16 %v3327_v39, %v3327_v39  ;;  %v3200_v52 = vadd.f32 %v6719_v12, %v2937_v40  ;;  %v3328_v53 = vadd.f32 %v6719_v12, %v3065_v36  ;;  %v3198_v60 = vadd.f32 %v6719_v12, %v2935_v43 }
 0x173   : > { %v5358_v55 = vpack.c.bf16 %v3197_v44, %v3197_v44  ;;  %v5486_v59 = vpack.c.bf16 %v3325_v42, %v3325_v42  ;;  %v3326_v61 = vadd.f32 %v6719_v12, %v3063_v47  ;;  %4480 = vst.msk [vmem:[%s6749_s9 + $0x68] sm:$0xf] %vm4453_vm2, %v5360_v48  ;;  %v1745_v4 = vadd.f32 %v6997_v45, %v6697_v54  ;;  %v7105_v13 = vpop.f32.mrb[36].mxu0  ;;  %v7107_v45 = vpop.f32.mrb[36].mxu1 }
 0x174   : > { %4608 = vst.msk [vmem:[%s6749_s9 + $0x268] sm:$0xf] %vm4453_vm2, %v5488_v51  ;;  %v5361_v62 = vpack.c.bf16 %v3200_v52, %v3200_v52  ;;  %v5489_v1 = vpack.c.bf16 %v3328_v53, %v3328_v53  ;;  %v2257_v5 = vadd.f32 %v6999_v46, %v6697_v54  ;;  %v5359_v6 = vpack.c.bf16 %v3198_v60, %v3198_v60  ;;  %v7119_v19 = vpop.f32.mrb[37].mxu1 }
 0x175   : > { %4478 = vst.msk [vmem:[%s6749_s9 + $0x60] sm:$0xf] %vm4453_vm2, %v5358_v55  ;;  %4606 = vst.msk [vmem:[%s6749_s9 + $0x260] sm:$0xf] %vm4453_vm2, %v5486_v59  ;;  %v5487_v7 = vpack.c.bf16 %v3326_v61, %v3326_v61  ;;  %v1737_v10 = vadd.f32 %v6697_v54, %v7005_v49  ;;  %v2249_v11 = vadd.f32 %v6697_v54, %v7007_v50  ;;  %v2677_v46 = vmax.f32 %v1745_v4, 0.0  ;;  %v7117_v49 = vpop.f32.mrb[37].mxu0 }
 0x176   : > { %4481 = vst.msk [vmem:[%s6749_s9 + $0x6c] sm:$0xf] %vm4453_vm2, %v5361_v62  ;;  %4609 = vst.msk [vmem:[%s6749_s9 + $0x26c] sm:$0xf] %vm4453_vm2, %v5489_v1  ;;  %v2805_v14 = vmax.f32 %v2257_v5, 0.0  ;;  %v1748_v17 = vadd.f32 %v7013_v56, %v6697_v54  ;;  %v2260_v18 = vadd.f32 %v7015_v57, %v6697_v54  ;;  %v1740_v20 = vadd.f32 %v6697_v54, %v7019_v63  ;;  %v7129_v56 = vpop.f32.mrb[38].mxu0 }
 0x177   : > { %4479 = vst.msk [vmem:[%s6749_s9 + $0x64] sm:$0xf] %vm4453_vm2, %v5359_v6  ;;  %4607 = vst.msk [vmem:[%s6749_s9 + $0x264] sm:$0xf] %vm4453_vm2, %v5487_v7  ;;  %v2675_v50 = vmax.f32 %v1737_v10, 0.0  ;;  %v2803_v2 = vmax.f32 %v2249_v11, 0.0  ;;  %v2252_v3 = vadd.f32 %v6697_v54, %v7021_v0  ;;  %v2940_v57 = vmul.f32 %v6705_v58, %v2677_v46 }
 0x178   : > { %v7131_v23 = vpop.f32.mrb[38].mxu1  ;;  %v3068_v8 = vmul.f32 %v6705_v58, %v2805_v14  ;;  %v2678_v26 = vmax.f32 %v1748_v17, 0.0  ;;  %v2806_v9 = vmax.f32 %v2260_v18, 0.0  ;;  %v7135_v27 = vpop.f32.mrb[39].mxu0  ;;  %v2676_v28 = vmax.f32 %v1740_v20, 0.0 }
 0x179   : > { %v7137_v15 = vpop.f32.mrb[39].mxu1  ;;  %v2938_v16 = vmul.f32 %v6705_v58, %v2675_v50  ;;  %v3066_v63 = vmul.f32 %v6705_v58, %v2803_v2  ;;  %v2804_v0 = vmax.f32 %v2252_v3, 0.0  ;;  %v3203_v29 = vadd.f32 %v6719_v12, %v2940_v57  ;;  %v7188_v46 = vld [vmem:[%s8770_s2] ss:$0 sm:$0xff] }
 0x17a   : > { %v3331_v33 = vadd.f32 %v6719_v12, %v3068_v8  ;;  %v2941_v21 = vmul.f32 %v6705_v58, %v2678_v26  ;;  %v3069_v31 = vmul.f32 %v6705_v58, %v2806_v9  ;;  %v2939_v39 = vmul.f32 %v6705_v58, %v2676_v28 }
 0x17b   : > { %v3201_v22 = vadd.f32 %v6719_v12, %v2938_v16  ;;  %v3329_v38 = vadd.f32 %v6719_v12, %v3066_v63  ;;  %v3067_v40 = vmul.f32 %v6705_v58, %v2804_v0  ;;  %v5364_v36 = vpack.c.bf16 %v3203_v29, %v3203_v29  ;;  %v7153_v53 = vpop.f32.mrb[40].mxu0  ;;  %v7155_v55 = vpop.f32.mrb[40].mxu1  ;;  %v7222_v0 = vld [vmem:[%s8772_s4] ss:$0 sm:$0xff] }
 0x17c   : > { %v5492_v44 = vpack.c.bf16 %v3331_v33, %v3331_v33  ;;  %v3204_v42 = vadd.f32 %v6719_v12, %v2941_v21  ;;  %v3332_v43 = vadd.f32 %v6719_v12, %v3069_v31  ;;  %v3202_v51 = vadd.f32 %v6719_v12, %v2939_v39  ;;  %v7165_v62 = vpop.f32.mrb[41].mxu0  ;;  %v7167_v1 = vpop.f32.mrb[41].mxu1 }
 0x17d   : > { %v5362_v47 = vpack.c.bf16 %v3201_v22, %v3201_v22  ;;  %v5490_v48 = vpack.c.bf16 %v3329_v38, %v3329_v38  ;;  %v3330_v52 = vadd.f32 %v6719_v12, %v3067_v40  ;;  %4484 = vst.msk [vmem:[%s6749_s9 + $0x78] sm:$0xf] %vm4453_vm2, %v5364_v36  ;;  %v1761_v60 = vadd.f32 %v7057_v24, %v6697_v54  ;;  %v7177_v7 = vpop.f32.mrb[42].mxu0 }
 0x17e   : > { %4612 = vst.msk [vmem:[%s6749_s9 + $0x278] sm:$0xf] %vm4453_vm2, %v5492_v44  ;;  %v5365_v58 = vpack.c.bf16 %v3204_v42, %v3204_v42  ;;  %v5493_v59 = vpack.c.bf16 %v3332_v43, %v3332_v43  ;;  %v2273_v61 = vadd.f32 %v7059_v25, %v6697_v54  ;;  %v5363_v4 = vpack.c.bf16 %v3202_v51, %v3202_v51  ;;  %v7179_v25 = vpop.f32.mrb[42].mxu1 }
 0x17f   : > { %4482 = vst.msk [vmem:[%s6749_s9 + $0x70] sm:$0xf] %vm4453_vm2, %v5362_v47  ;;  %4610 = vst.msk [vmem:[%s6749_s9 + $0x270] sm:$0xf] %vm4453_vm2, %v5490_v48  ;;  %v5491_v5 = vpack.c.bf16 %v3330_v52, %v3330_v52  ;;  %v1753_v6 = vadd.f32 %v6697_v54, %v7063_v32  ;;  %v2265_v24 = vadd.f32 %v6697_v54, %v7065_v30  ;;  %v2681_v10 = vmax.f32 %v1761_v60, 0.0  ;;  %v7194_v30 = vpop.f32.mrb[43].mxu0 }
 0x180   : > { %4485 = vst.msk [vmem:[%s6749_s9 + $0x7c] sm:$0xf] %vm4453_vm2, %v5365_v58  ;;  %4613 = vst.msk [vmem:[%s6749_s9 + $0x27c] sm:$0xf] %vm4453_vm2, %v5493_v59  ;;  %v2809_v11 = vmax.f32 %v2273_v61, 0.0  ;;  %v1764_v32 = vadd.f32 %v7188_v46, %v7069_v34  ;;  %v2276_v54 = vadd.f32 %v7188_v46, %v7071_v35  ;;  %v7196_v14 = vpop.f32.mrb[43].mxu1  ;;  %v1756_v50 = vadd.f32 %v7188_v46, %v7077_v37 }
 0x181   : > { %4483 = vst.msk [vmem:[%s6749_s9 + $0x74] sm:$0xf] %vm4453_vm2, %v5363_v4  ;;  %4611 = vst.msk [vmem:[%s6749_s9 + $0x274] sm:$0xf] %vm4453_vm2, %v5491_v5  ;;  %v2679_v17 = vmax.f32 %v1753_v6, 0.0  ;;  %v2807_v18 = vmax.f32 %v2265_v24, 0.0  ;;  %v2268_v2 = vadd.f32 %v7188_v46, %v7079_v41  ;;  %v1777_v61 = vadd.f32 %v7188_v46, %v7105_v13 }
 0x182   : > { %v7209_v34 = vld [vmem:[%s8771_s3] ss:$0 sm:$0xff]  ;;  %v2682_v3 = vmax.f32 %v1764_v32, 0.0  ;;  %v2810_v57 = vmax.f32 %v2276_v54, 0.0  ;;  %v2680_v9 = vmax.f32 %v1756_v50, 0.0  ;;  %v2289_v4 = vadd.f32 %v7188_v46, %v7107_v45 }
 0x183   : > { %v2944_v35 = vmul.f32 %v7209_v34, %v2681_v10  ;;  %v3072_v20 = vmul.f32 %v7209_v34, %v2809_v11  ;;  %v2942_v8 = vmul.f32 %v7209_v34, %v2679_v17  ;;  %v3070_v26 = vmul.f32 %v7209_v34, %v2807_v18  ;;  %v7230_v22 = vpop.f32.mrb[44].mxu1 }
 0x184   : > { %v2808_v37 = vmax.f32 %v2268_v2, 0.0  ;;  %v2945_v63 = vmul.f32 %v7209_v34, %v2682_v3  ;;  %v3073_v28 = vmul.f32 %v7209_v34, %v2810_v57  ;;  %v2943_v21 = vmul.f32 %v7209_v34, %v2680_v9  ;;  %v7236_v42 = vpop.f32.mrb[45].mxu1 }
 0x185   : > { %v3207_v16 = vadd.f32 %v6719_v12, %v2944_v35  ;;  %v3335_v41 = vadd.f32 %v6719_v12, %v3072_v20  ;;  %v3205_v29 = vadd.f32 %v7222_v0, %v2942_v8  ;;  %v3333_v33 = vadd.f32 %v7222_v0, %v3070_v26  ;;  %v7228_v12 = vpop.f32.mrb[44].mxu0  ;;  %v7242_v58 = vpop.f32.mrb[46].mxu1 }
 0x186   : > { %v3071_v31 = vmul.f32 %v7209_v34, %v2808_v37  ;;  %v3208_v40 = vadd.f32 %v7222_v0, %v2945_v63  ;;  %v3336_v36 = vadd.f32 %v7222_v0, %v3073_v28  ;;  %v7234_v44 = vpop.f32.mrb[45].mxu0  ;;  %v3206_v48 = vadd.f32 %v7222_v0, %v2943_v21  ;;  %v7254_v6 = vpop.f32.mrb[47].mxu1 }
 0x187   : > { %v5368_v38 = vpack.c.bf16 %v3207_v16, %v3207_v16  ;;  %v5496_v39 = vpack.c.bf16 %v3335_v41, %v3335_v41  ;;  %v5366_v43 = vpack.c.bf16 %v3205_v29, %v3205_v29  ;;  %v5494_v47 = vpack.c.bf16 %v3333_v33, %v3333_v33  ;;  %v7240_v52 = vpop.f32.mrb[46].mxu0 }
 0x188   : > { %v3334_v51 = vadd.f32 %v7222_v0, %v3071_v31  ;;  %v5369_v59 = vpack.c.bf16 %v3208_v40, %v3208_v40  ;;  %v5497_v60 = vpack.c.bf16 %v3336_v36, %v3336_v36  ;;  %v7252_v5 = vpop.f32.mrb[47].mxu0  ;;  %v5367_v24 = vpack.c.bf16 %v3206_v48, %v3206_v48 }
 0x189   : > { %4488 = vst.msk [vmem:[%s6749_s9 + $0x88] sm:$0xf] %vm4453_vm2, %v5368_v38  ;;  %4616 = vst.msk [vmem:[%s6749_s9 + $0x288] sm:$0xf] %vm4453_vm2, %v5496_v39  ;;  %v1769_v11 = vadd.f32 %v7188_v46, %v7117_v49  ;;  %v2281_v13 = vadd.f32 %v7188_v46, %v7119_v19  ;;  %v2685_v45 = vmax.f32 %v1777_v61, 0.0  ;;  %v2813_v32 = vmax.f32 %v2289_v4, 0.0 }
 0x18a   : > { %4486 = vst.msk [vmem:[%s6749_s9 + $0x80] sm:$0xf] %vm4453_vm2, %v5366_v43  ;;  %4614 = vst.msk [vmem:[%s6749_s9 + $0x280] sm:$0xf] %vm4453_vm2, %v5494_v47  ;;  %v5495_v10 = vpack.c.bf16 %v3334_v51, %v3334_v51  ;;  %v1780_v54 = vadd.f32 %v7188_v46, %v7129_v56  ;;  %v2292_v17 = vadd.f32 %v7188_v46, %v7131_v23 }
 0x18b   : > { %4489 = vst.msk [vmem:[%s6749_s9 + $0x8c] sm:$0xf] %vm4453_vm2, %v5369_v59  ;;  %4617 = vst.msk [vmem:[%s6749_s9 + $0x28c] sm:$0xf] %vm4453_vm2, %v5497_v60  ;;  %v2683_v49 = vmax.f32 %v1769_v11, 0.0  ;;  %v2811_v18 = vmax.f32 %v2281_v13, 0.0  ;;  %v1772_v19 = vadd.f32 %v7188_v46, %v7135_v27  ;;  %v2284_v50 = vadd.f32 %v7188_v46, %v7137_v15 }
 0x18c   : > { %4487 = vst.msk [vmem:[%s6749_s9 + $0x84] sm:$0xf] %vm4453_vm2, %v5367_v24  ;;  %4615 = vst.msk [vmem:[%s6749_s9 + $0x284] sm:$0xf] %vm4453_vm2, %v5495_v10  ;;  %v2948_v2 = vmul.f32 %v7209_v34, %v2685_v45  ;;  %v3076_v35 = vmul.f32 %v7209_v34, %v2813_v32  ;;  %v2686_v56 = vmax.f32 %v1780_v54, 0.0  ;;  %v2814_v20 = vmax.f32 %v2292_v17, 0.0 }
 0x18d   : > { %v2946_v23 = vmul.f32 %v7209_v34, %v2683_v49  ;;  %v3074_v3 = vmul.f32 %v7209_v34, %v2811_v18  ;;  %v2684_v57 = vmax.f32 %v1772_v19, 0.0  ;;  %v2812_v8 = vmax.f32 %v2284_v50, 0.0  ;;  %v7284_v26 = vpop.f32.mrb[48].mxu0  ;;  %v7286_v9 = vpop.f32.mrb[48].mxu1 }
 0x18e   : > { %v3211_v27 = vadd.f32 %v7222_v0, %v2948_v2  ;;  %v3339_v15 = vadd.f32 %v7222_v0, %v3076_v35  ;;  %v2949_v37 = vmul.f32 %v7209_v34, %v2686_v56  ;;  %v3077_v16 = vmul.f32 %v7209_v34, %v2814_v20  ;;  %v7292_v41 = vpop.f32.mrb[49].mxu0  ;;  %v7294_v63 = vpop.f32.mrb[49].mxu1 }
 0x18f   : > { %v3209_v28 = vadd.f32 %v7222_v0, %v2946_v23  ;;  %v3337_v29 = vadd.f32 %v7222_v0, %v3074_v3  ;;  %v2947_v33 = vmul.f32 %v7209_v34, %v2684_v57  ;;  %v3075_v21 = vmul.f32 %v7209_v34, %v2812_v8  ;;  %v7300_v31 = vpop.f32.mrb[50].mxu0  ;;  %v7302_v38 = vpop.f32.mrb[50].mxu1 }
 0x190   : > { %v5372_v39 = vpack.c.bf16 %v3211_v27, %v3211_v27  ;;  %v5500_v40 = vpack.c.bf16 %v3339_v15, %v3339_v15  ;;  %v3212_v36 = vadd.f32 %v7222_v0, %v2949_v37  ;;  %v3340_v43 = vadd.f32 %v7222_v0, %v3077_v16  ;;  %v7306_v47 = vpop.f32.mrb[51].mxu0  ;;  %v7308_v48 = vpop.f32.mrb[51].mxu1 }
 0x191   : > { %v5370_v51 = vpack.c.bf16 %v3209_v28, %v3209_v28  ;;  %v5498_v59 = vpack.c.bf16 %v3337_v29, %v3337_v29  ;;  %v3210_v60 = vadd.f32 %v7222_v0, %v2947_v33  ;;  %v3338_v61 = vadd.f32 %v7222_v0, %v3075_v21 }
 0x192   : > { %4492 = vst.msk [vmem:[%s6749_s9 + $0x98] sm:$0xf] %vm4453_vm2, %v5372_v39  ;;  %4620 = vst.msk [vmem:[%s6749_s9 + $0x298] sm:$0xf] %vm4453_vm2, %v5500_v40  ;;  %v5373_v4 = vpack.c.bf16 %v3212_v36, %v3212_v36  ;;  %v5501_v24 = vpack.c.bf16 %v3340_v43, %v3340_v43  ;;  %v1793_v10 = vadd.f32 %v7188_v46, %v7153_v53 }
 0x193   : > { %v2305_v11 = vadd.f32 %v7188_v46, %v7155_v55  ;;  %4490 = vst.msk [vmem:[%s6749_s9 + $0x90] sm:$0xf] %vm4453_vm2, %v5370_v51  ;;  %4618 = vst.msk [vmem:[%s6749_s9 + $0x290] sm:$0xf] %vm4453_vm2, %v5498_v59  ;;  %v5371_v13 = vpack.c.bf16 %v3210_v60, %v3210_v60  ;;  %v5499_v45 = vpack.c.bf16 %v3338_v61, %v3338_v61  ;;  %v7344_v50 = vpop.f32.mrb[52].mxu0  ;;  %v7346_v2 = vpop.f32.mrb[52].mxu1 }
 0x194   : > { %v1785_v32 = vadd.f32 %v7188_v46, %v7165_v62  ;;  %v2297_v54 = vadd.f32 %v7188_v46, %v7167_v1  ;;  %4493 = vst.msk [vmem:[%s6749_s9 + $0x9c] sm:$0xf] %vm4453_vm2, %v5373_v4  ;;  %4621 = vst.msk [vmem:[%s6749_s9 + $0x29c] sm:$0xf] %vm4453_vm2, %v5501_v24  ;;  %v2689_v53 = vmax.f32 %v1793_v10, 0.0  ;;  %v1796_v55 = vadd.f32 %v7188_v46, %v7177_v7  ;;  %v7350_v20 = vpop.f32.mrb[53].mxu0 }
 0x195   : > { %v2817_v17 = vmax.f32 %v2305_v11, 0.0  ;;  %v2308_v49 = vadd.f32 %v7188_v46, %v7179_v25  ;;  %4491 = vst.msk [vmem:[%s6749_s9 + $0x94] sm:$0xf] %vm4453_vm2, %v5371_v13  ;;  %4619 = vst.msk [vmem:[%s6749_s9 + $0x294] sm:$0xf] %vm4453_vm2, %v5499_v45  ;;  %v1788_v1 = vadd.f32 %v7188_v46, %v7194_v30  ;;  %v2300_v19 = vadd.f32 %v7188_v46, %v7196_v14  ;;  %v7352_v23 = vpop.f32.mrb[53].mxu1 }
 0x196   : > { %v2687_v62 = vmax.f32 %v1785_v32, 0.0  ;;  %v2815_v18 = vmax.f32 %v2297_v54, 0.0  ;;  %v2952_v7 = vmul.f32 %v7209_v34, %v2689_v53  ;;  %v2690_v35 = vmax.f32 %v1796_v55, 0.0  ;;  %v7356_v8 = vpop.f32.mrb[54].mxu0  ;;  %v7358_v27 = vpop.f32.mrb[54].mxu1 }
 0x197   : > { %v3080_v25 = vmul.f32 %v7209_v34, %v2817_v17  ;;  %v2818_v56 = vmax.f32 %v2308_v49, 0.0  ;;  %v2688_v57 = vmax.f32 %v1788_v1, 0.0  ;;  %v2816_v14 = vmax.f32 %v2300_v19, 0.0  ;;  %v7364_v29 = vpop.f32.mrb[55].mxu0  ;;  %v7366_v33 = vpop.f32.mrb[55].mxu1 }
 0x198   : > { %v2950_v3 = vmul.f32 %v7209_v34, %v2687_v62  ;;  %v3078_v30 = vmul.f32 %v7209_v34, %v2815_v18  ;;  %v3215_v15 = vadd.f32 %v7222_v0, %v2952_v7  ;;  %v2953_v16 = vmul.f32 %v7209_v34, %v2690_v35 }
 0x199   : > { %v3343_v37 = vadd.f32 %v7222_v0, %v3080_v25  ;;  %v3081_v28 = vmul.f32 %v7209_v34, %v2818_v56  ;;  %v2951_v40 = vmul.f32 %v7209_v34, %v2688_v57  ;;  %v3079_v36 = vmul.f32 %v7209_v34, %v2816_v14 }
 0x19a   : > { %v3213_v21 = vadd.f32 %v7222_v0, %v2950_v3  ;;  %v3341_v39 = vadd.f32 %v7222_v0, %v3078_v30  ;;  %v5376_v43 = vpack.c.bf16 %v3215_v15, %v3215_v15  ;;  %v3216_v59 = vadd.f32 %v7222_v0, %v2953_v16 }
 0x19b   : > { %v5504_v51 = vpack.c.bf16 %v3343_v37, %v3343_v37  ;;  %v3344_v60 = vadd.f32 %v7222_v0, %v3081_v28  ;;  %v3214_v24 = vadd.f32 %v7222_v0, %v2951_v40  ;;  %v3342_v10 = vadd.f32 %v7222_v0, %v3079_v36  ;;  %v7392_v49 = vpop.f32.mrb[56].mxu0 }
 0x19c   : > { %v5374_v61 = vpack.c.bf16 %v3213_v21, %v3213_v21  ;;  %v5502_v4 = vpack.c.bf16 %v3341_v39, %v3341_v39  ;;  %4496 = vst.msk [vmem:[%s6749_s9 + $0xa8] sm:$0xf] %vm4453_vm2, %v5376_v43  ;;  %v5377_v11 = vpack.c.bf16 %v3216_v59, %v3216_v59  ;;  %v1809_v45 = vadd.f32 %v7188_v46, %v7228_v12  ;;  %v7394_v12 = vpop.f32.mrb[56].mxu1 }
 0x19d   : > { %4624 = vst.msk [vmem:[%s6749_s9 + $0x2a8] sm:$0xf] %vm4453_vm2, %v5504_v51  ;;  %v5505_v13 = vpack.c.bf16 %v3344_v60, %v3344_v60  ;;  %v2321_v32 = vadd.f32 %v7188_v46, %v7230_v22  ;;  %v5375_v54 = vpack.c.bf16 %v3214_v24, %v3214_v24  ;;  %v5503_v53 = vpack.c.bf16 %v3342_v10, %v3342_v10  ;;  %v7406_v19 = vpop.f32.mrb[57].mxu1 }
 0x19e   : > { %4494 = vst.msk [vmem:[%s6749_s9 + $0xa0] sm:$0xf] %vm4453_vm2, %v5374_v61  ;;  %4622 = vst.msk [vmem:[%s6749_s9 + $0x2a0] sm:$0xf] %vm4453_vm2, %v5502_v4  ;;  %v1801_v17 = vadd.f32 %v7188_v46, %v7234_v44  ;;  %v2313_v55 = vadd.f32 %v7188_v46, %v7236_v42  ;;  %v2693_v22 = vmax.f32 %v1809_v45, 0.0  ;;  %v1812_v18 = vadd.f32 %v7188_v46, %v7240_v52  ;;  %v7404_v44 = vpop.f32.mrb[57].mxu0 }
 0x19f   : > { %4497 = vst.msk [vmem:[%s6749_s9 + $0xac] sm:$0xf] %vm4453_vm2, %v5377_v11  ;;  %4625 = vst.msk [vmem:[%s6749_s9 + $0x2ac] sm:$0xf] %vm4453_vm2, %v5505_v13  ;;  %v2821_v62 = vmax.f32 %v2321_v32, 0.0  ;;  %v2324_v1 = vadd.f32 %v7188_v46, %v7242_v58  ;;  %v1804_v25 = vadd.f32 %v7188_v46, %v7252_v5  ;;  %v2316_v35 = vadd.f32 %v7188_v46, %v7254_v6  ;;  %v7416_v52 = vpop.f32.mrb[58].mxu0 }
 0x1a0   : > { %4495 = vst.msk [vmem:[%s6749_s9 + $0xa4] sm:$0xf] %vm4453_vm2, %v5375_v54  ;;  %4623 = vst.msk [vmem:[%s6749_s9 + $0x2a4] sm:$0xf] %vm4453_vm2, %v5503_v53  ;;  %v2691_v42 = vmax.f32 %v1801_v17, 0.0  ;;  %v2819_v7 = vmax.f32 %v2313_v55, 0.0  ;;  %v2956_v58 = vmul.f32 %v7209_v34, %v2693_v22  ;;  %v1825_v55 = vadd.f32 %v7188_v46, %v7284_v26 }
 0x1a1   : > { %v7418_v56 = vpop.f32.mrb[58].mxu1  ;;  %v3084_v3 = vmul.f32 %v7209_v34, %v2821_v62  ;;  %v2694_v30 = vmax.f32 %v1812_v18, 0.0  ;;  %v2822_v57 = vmax.f32 %v2324_v1, 0.0  ;;  %v7422_v14 = vpop.f32.mrb[59].mxu0  ;;  %v2692_v16 = vmax.f32 %v1804_v25, 0.0 }
 0x1a2   : > { %v7424_v15 = vpop.f32.mrb[59].mxu1  ;;  %v2954_v37 = vmul.f32 %v7209_v34, %v2691_v42  ;;  %v3082_v5 = vmul.f32 %v7209_v34, %v2819_v7  ;;  %v2820_v6 = vmax.f32 %v2316_v35, 0.0  ;;  %v3219_v28 = vadd.f32 %v7222_v0, %v2956_v58 }
 0x1a3   : > { %v3347_v21 = vadd.f32 %v7222_v0, %v3084_v3  ;;  %v2957_v39 = vmul.f32 %v7209_v34, %v2694_v30  ;;  %v3085_v40 = vmul.f32 %v7209_v34, %v2822_v57  ;;  %v2955_v51 = vmul.f32 %v7209_v34, %v2692_v16  ;;  %v7440_v32 = vpop.f32.mrb[60].mxu0  ;;  %v7442_v54 = vpop.f32.mrb[60].mxu1 }
 0x1a4   : > { %v3217_v36 = vadd.f32 %v7222_v0, %v2954_v37  ;;  %v3345_v43 = vadd.f32 %v7222_v0, %v3082_v5  ;;  %v3083_v59 = vmul.f32 %v7209_v34, %v2820_v6  ;;  %v5380_v60 = vpack.c.bf16 %v3219_v28, %v3219_v28  ;;  %v7452_v62 = vpop.f32.mrb[61].mxu0  ;;  %v7454_v18 = vpop.f32.mrb[61].mxu1 }
 0x1a5   : > { %v5508_v61 = vpack.c.bf16 %v3347_v21, %v3347_v21  ;;  %v3220_v4 = vadd.f32 %v7222_v0, %v2957_v39  ;;  %v3348_v24 = vadd.f32 %v7222_v0, %v3085_v40  ;;  %v3218_v13 = vadd.f32 %v7222_v0, %v2955_v51  ;;  %v7464_v25 = vpop.f32.mrb[62].mxu0 }
 0x1a6   : > { %v5378_v10 = vpack.c.bf16 %v3217_v36, %v3217_v36  ;;  %v5506_v11 = vpack.c.bf16 %v3345_v43, %v3345_v43  ;;  %v3346_v45 = vadd.f32 %v7222_v0, %v3083_v59  ;;  %4500 = vst.msk [vmem:[%s6749_s9 + $0xb8] sm:$0xf] %vm4453_vm2, %v5380_v60  ;;  %v2337_v22 = vadd.f32 %v7188_v46, %v7286_v9  ;;  %v7466_v9 = vpop.f32.mrb[62].mxu1 }
 0x1a7   : > { %4628 = vst.msk [vmem:[%s6749_s9 + $0x2b8] sm:$0xf] %vm4453_vm2, %v5508_v61  ;;  %v5381_v53 = vpack.c.bf16 %v3220_v4, %v3220_v4  ;;  %v5509_v17 = vpack.c.bf16 %v3348_v24, %v3348_v24  ;;  %v5379_v1 = vpack.c.bf16 %v3218_v13, %v3218_v13  ;;  %v1817_v7 = vadd.f32 %v7188_v46, %v7292_v41  ;;  %v7476_v41 = vpop.f32.mrb[63].mxu0  ;;  %v7478_v57 = vpop.f32.mrb[63].mxu1 }
 0x1a8   : > { %4498 = vst.msk [vmem:[%s6749_s9 + $0xb0] sm:$0xf] %vm4453_vm2, %v5378_v10  ;;  %4626 = vst.msk [vmem:[%s6749_s9 + $0x2b0] sm:$0xf] %vm4453_vm2, %v5506_v11  ;;  %v5507_v42 = vpack.c.bf16 %v3346_v45, %v3346_v45  ;;  %v2329_v26 = vadd.f32 %v7188_v46, %v7294_v63  ;;  %v2697_v35 = vmax.f32 %v1825_v55, 0.0  ;;  %v2825_v58 = vmax.f32 %v2337_v22, 0.0 }
 0x1a9   : > { %4501 = vst.msk [vmem:[%s6749_s9 + $0xbc] sm:$0xf] %vm4453_vm2, %v5381_v53  ;;  %4629 = vst.msk [vmem:[%s6749_s9 + $0x2bc] sm:$0xf] %vm4453_vm2, %v5509_v17  ;;  %v1828_v3 = vadd.f32 %v7188_v46, %v7300_v31  ;;  %v2340_v30 = vadd.f32 %v7188_v46, %v7302_v38  ;;  %v2695_v63 = vmax.f32 %v1817_v7, 0.0  ;;  %v1820_v5 = vadd.f32 %v7188_v46, %v7306_v47 }
 0x1aa   : > { %4499 = vst.msk [vmem:[%s6749_s9 + $0xb4] sm:$0xf] %vm4453_vm2, %v5379_v1  ;;  %4627 = vst.msk [vmem:[%s6749_s9 + $0x2b4] sm:$0xf] %vm4453_vm2, %v5507_v42  ;;  %v2823_v37 = vmax.f32 %v2329_v26, 0.0  ;;  %v2332_v16 = vadd.f32 %v7188_v46, %v7308_v48  ;;  %v2960_v31 = vmul.f32 %v7209_v34, %v2697_v35  ;;  %v3088_v38 = vmul.f32 %v7209_v34, %v2825_v58 }
 0x1ab   : > { %v2698_v6 = vmax.f32 %v1828_v3, 0.0  ;;  %v2826_v28 = vmax.f32 %v2340_v30, 0.0  ;;  %v2958_v21 = vmul.f32 %v7209_v34, %v2695_v63  ;;  %v2696_v40 = vmax.f32 %v1820_v5, 0.0  ;;  %v7500_v24 = vpop.f32.mrb[64].mxu0  ;;  %v7502_v10 = vpop.f32.mrb[64].mxu1 }
 0x1ac   : > { %v3086_v39 = vmul.f32 %v7209_v34, %v2823_v37  ;;  %v2824_v36 = vmax.f32 %v2332_v16, 0.0  ;;  %v3223_v43 = vadd.f32 %v7222_v0, %v2960_v31  ;;  %v3351_v51 = vadd.f32 %v7222_v0, %v3088_v38  ;;  %v7506_v17 = vpop.f32.mrb[65].mxu0  ;;  %v7508_v55 = vpop.f32.mrb[65].mxu1 }
 0x1ad   : > { %v2961_v47 = vmul.f32 %v7209_v34, %v2698_v6  ;;  %v3089_v48 = vmul.f32 %v7209_v34, %v2826_v28  ;;  %v3221_v59 = vadd.f32 %v7222_v0, %v2958_v21  ;;  %v2959_v61 = vmul.f32 %v7209_v34, %v2696_v40  ;;  %v7512_v26 = vpop.f32.mrb[66].mxu0  ;;  %v7514_v35 = vpop.f32.mrb[66].mxu1 }
 0x1ae   : > { %v3349_v60 = vadd.f32 %v7222_v0, %v3086_v39  ;;  %v3087_v4 = vmul.f32 %v7209_v34, %v2824_v36  ;;  %v5384_v11 = vpack.c.bf16 %v3223_v43, %v3223_v43  ;;  %v5512_v13 = vpack.c.bf16 %v3351_v51, %v3351_v51  ;;  %v7524_v37 = vpop.f32.mrb[67].mxu0  ;;  %v7526_v5 = vpop.f32.mrb[67].mxu1 }
 0x1af   : > { %v3224_v45 = vadd.f32 %v7222_v0, %v2961_v47  ;;  %v3352_v53 = vadd.f32 %v7222_v0, %v3089_v48  ;;  %v5382_v22 = vpack.c.bf16 %v3221_v59, %v3221_v59  ;;  %v3222_v42 = vadd.f32 %v7222_v0, %v2959_v61 }
 0x1b0   : > { %v5510_v1 = vpack.c.bf16 %v3349_v60, %v3349_v60  ;;  %v3350_v7 = vadd.f32 %v7222_v0, %v3087_v4  ;;  %4504 = vst.msk [vmem:[%s6749_s9 + $0xc8] sm:$0xf] %vm4453_vm2, %v5384_v11  ;;  %4632 = vst.msk [vmem:[%s6749_s9 + $0x2c8] sm:$0xf] %vm4453_vm2, %v5512_v13  ;;  %v1841_v30 = vadd.f32 %v7188_v46, %v7344_v50 }
 0x1b1   : > { %v5385_v58 = vpack.c.bf16 %v3224_v45, %v3224_v45  ;;  %v5513_v3 = vpack.c.bf16 %v3352_v53, %v3352_v53  ;;  %v2353_v63 = vadd.f32 %v7188_v46, %v7346_v2  ;;  %4502 = vst.msk [vmem:[%s6749_s9 + $0xc0] sm:$0xf] %vm4453_vm2, %v5382_v22  ;;  %v5383_v16 = vpack.c.bf16 %v3222_v42, %v3222_v42 }
 0x1b2   : > { %4630 = vst.msk [vmem:[%s6749_s9 + $0x2c0] sm:$0xf] %vm4453_vm2, %v5510_v1  ;;  %v5511_v31 = vpack.c.bf16 %v3350_v7, %v3350_v7  ;;  %v1833_v38 = vadd.f32 %v7188_v46, %v7350_v20  ;;  %v2345_v50 = vadd.f32 %v7188_v46, %v7352_v23  ;;  %v2701_v2 = vmax.f32 %v1841_v30, 0.0 }
 0x1b3   : > { %4505 = vst.msk [vmem:[%s6749_s9 + $0xcc] sm:$0xf] %vm4453_vm2, %v5385_v58  ;;  %4633 = vst.msk [vmem:[%s6749_s9 + $0x2cc] sm:$0xf] %vm4453_vm2, %v5513_v3  ;;  %v2829_v6 = vmax.f32 %v2353_v63, 0.0  ;;  %v1844_v28 = vadd.f32 %v7188_v46, %v7356_v8  ;;  %v2356_v21 = vadd.f32 %v7188_v46, %v7358_v27  ;;  %v1836_v23 = vadd.f32 %v7188_v46, %v7364_v29  ;;  %v7556_v60 = vpop.f32.mrb[68].mxu0 }
 0x1b4   : > { %4503 = vst.msk [vmem:[%s6749_s9 + $0xc4] sm:$0xf] %vm4453_vm2, %v5383_v16  ;;  %4631 = vst.msk [vmem:[%s6749_s9 + $0x2c4] sm:$0xf] %vm4453_vm2, %v5511_v31  ;;  %v2699_v20 = vmax.f32 %v1833_v38, 0.0  ;;  %v2827_v39 = vmax.f32 %v2345_v50, 0.0  ;;  %v2348_v40 = vadd.f32 %v7188_v46, %v7366_v33  ;;  %v2964_v36 = vmul.f32 %v7209_v34, %v2701_v2 }
 0x1b5   : > { %v3092_v43 = vmul.f32 %v7209_v34, %v2829_v6  ;;  %v2702_v8 = vmax.f32 %v1844_v28, 0.0  ;;  %v2830_v51 = vmax.f32 %v2356_v21, 0.0  ;;  %v2700_v48 = vmax.f32 %v1836_v23, 0.0  ;;  %v7558_v61 = vpop.f32.mrb[68].mxu1  ;;  %v7564_v13 = vpop.f32.mrb[69].mxu0 }
 0x1b6   : > { %v2962_v27 = vmul.f32 %v7209_v34, %v2699_v20  ;;  %v3090_v47 = vmul.f32 %v7209_v34, %v2827_v39  ;;  %v2828_v59 = vmax.f32 %v2348_v40, 0.0  ;;  %v3227_v29 = vadd.f32 %v7222_v0, %v2964_v36  ;;  %v7566_v45 = vpop.f32.mrb[69].mxu1  ;;  %v7572_v7 = vpop.f32.mrb[70].mxu0 }
 0x1b7   : > { %v3355_v33 = vadd.f32 %v7222_v0, %v3092_v43  ;;  %v2965_v4 = vmul.f32 %v7209_v34, %v2702_v8  ;;  %v3093_v11 = vmul.f32 %v7209_v34, %v2830_v51  ;;  %v2963_v1 = vmul.f32 %v7209_v34, %v2700_v48  ;;  %v7574_v58 = vpop.f32.mrb[70].mxu1  ;;  %v7578_v31 = vpop.f32.mrb[71].mxu0 }
 0x1b8   : > { %v3225_v53 = vadd.f32 %v7222_v0, %v2962_v27  ;;  %v3353_v22 = vadd.f32 %v7222_v0, %v3090_v47  ;;  %v3091_v42 = vmul.f32 %v7209_v34, %v2828_v59  ;;  %v5388_v3 = vpack.c.bf16 %v3227_v29, %v3227_v29  ;;  %v7580_v38 = vpop.f32.mrb[71].mxu1 }
 0x1b9   : > { %v5516_v30 = vpack.c.bf16 %v3355_v33, %v3355_v33  ;;  %v3228_v63 = vadd.f32 %v7222_v0, %v2965_v4  ;;  %v3356_v16 = vadd.f32 %v7222_v0, %v3093_v11  ;;  %v3226_v6 = vadd.f32 %v7222_v0, %v2963_v1 }
 0x1ba   : > { %v5386_v50 = vpack.c.bf16 %v3225_v53, %v3225_v53  ;;  %v5514_v2 = vpack.c.bf16 %v3353_v22, %v3353_v22  ;;  %v3354_v28 = vadd.f32 %v7222_v0, %v3091_v42  ;;  %4508 = vst.msk [vmem:[%s6749_s9 + $0xd8] sm:$0xf] %vm4453_vm2, %v5388_v3  ;;  %v1857_v39 = vadd.f32 %v7188_v46, %v7392_v49 }
 0x1bb   : > { %4636 = vst.msk [vmem:[%s6749_s9 + $0x2d8] sm:$0xf] %vm4453_vm2, %v5516_v30  ;;  %v5389_v21 = vpack.c.bf16 %v3228_v63, %v3228_v63  ;;  %v5517_v20 = vpack.c.bf16 %v3356_v16, %v3356_v16  ;;  %v2369_v23 = vadd.f32 %v7188_v46, %v7394_v12  ;;  %v5387_v40 = vpack.c.bf16 %v3226_v6, %v3226_v6  ;;  %v7616_v59 = vpop.f32.mrb[72].mxu0  ;;  %v7618_v29 = vpop.f32.mrb[72].mxu1 }
 0x1bc   : > { %4506 = vst.msk [vmem:[%s6749_s9 + $0xd0] sm:$0xf] %vm4453_vm2, %v5386_v50  ;;  %4634 = vst.msk [vmem:[%s6749_s9 + $0x2d0] sm:$0xf] %vm4453_vm2, %v5514_v2  ;;  %v5515_v36 = vpack.c.bf16 %v3354_v28, %v3354_v28  ;;  %v1849_v43 = vadd.f32 %v7188_v46, %v7404_v44  ;;  %v2361_v8 = vadd.f32 %v7188_v46, %v7406_v19  ;;  %v2705_v49 = vmax.f32 %v1857_v39, 0.0  ;;  %v7622_v11 = vpop.f32.mrb[73].mxu0 }
 0x1bd   : > { %4509 = vst.msk [vmem:[%s6749_s9 + $0xdc] sm:$0xf] %vm4453_vm2, %v5389_v21  ;;  %4637 = vst.msk [vmem:[%s6749_s9 + $0x2dc] sm:$0xf] %vm4453_vm2, %v5517_v20  ;;  %v2833_v51 = vmax.f32 %v2369_v23, 0.0  ;;  %v1860_v12 = vadd.f32 %v7188_v46, %v7416_v52  ;;  %v2372_v27 = vadd.f32 %v7188_v46, %v7418_v56  ;;  %v1852_v19 = vadd.f32 %v7188_v46, %v7422_v14  ;;  %v7624_v53 = vpop.f32.mrb[73].mxu1 }
 0x1be   : > { %4507 = vst.msk [vmem:[%s6749_s9 + $0xd4] sm:$0xf] %vm4453_vm2, %v5387_v40  ;;  %4635 = vst.msk [vmem:[%s6749_s9 + $0x2d4] sm:$0xf] %vm4453_vm2, %v5515_v36  ;;  %v2703_v44 = vmax.f32 %v1849_v43, 0.0  ;;  %v2831_v47 = vmax.f32 %v2361_v8, 0.0  ;;  %v2364_v48 = vadd.f32 %v7188_v46, %v7424_v15  ;;  %v2968_v52 = vmul.f32 %v7209_v34, %v2705_v49 }
 0x1bf   : > { %v3096_v56 = vmul.f32 %v7209_v34, %v2833_v51  ;;  %v2706_v33 = vmax.f32 %v1860_v12, 0.0  ;;  %v2834_v4 = vmax.f32 %v2372_v27, 0.0  ;;  %v2704_v1 = vmax.f32 %v1852_v19, 0.0  ;;  %v7628_v42 = vpop.f32.mrb[74].mxu0  ;;  %v7630_v3 = vpop.f32.mrb[74].mxu1 }
 0x1c0   : > { %v2966_v22 = vmul.f32 %v7209_v34, %v2703_v44  ;;  %v3094_v14 = vmul.f32 %v7209_v34, %v2831_v47  ;;  %v2832_v15 = vmax.f32 %v2364_v48, 0.0  ;;  %v3231_v30 = vadd.f32 %v7222_v0, %v2968_v52  ;;  %v7636_v2 = vpop.f32.mrb[75].mxu0  ;;  %v7638_v6 = vpop.f32.mrb[75].mxu1 }
 0x1c1   : > { %v3359_v63 = vadd.f32 %v7222_v0, %v3096_v56  ;;  %v2969_v16 = vmul.f32 %v7209_v34, %v2706_v33  ;;  %v3097_v50 = vmul.f32 %v7209_v34, %v2834_v4  ;;  %v2967_v20 = vmul.f32 %v7209_v34, %v2704_v1 }
 0x1c2   : > { %v3229_v28 = vadd.f32 %v7222_v0, %v2966_v22  ;;  %v3357_v21 = vadd.f32 %v7222_v0, %v3094_v14  ;;  %v3095_v39 = vmul.f32 %v7209_v34, %v2832_v15  ;;  %v5392_v23 = vpack.c.bf16 %v3231_v30, %v3231_v30 }
 0x1c3   : > { %v5520_v40 = vpack.c.bf16 %v3359_v63, %v3359_v63  ;;  %v3232_v36 = vadd.f32 %v7222_v0, %v2969_v16  ;;  %v3360_v43 = vadd.f32 %v7222_v0, %v3097_v50  ;;  %v3230_v51 = vadd.f32 %v7222_v0, %v2967_v20  ;;  %v7664_v4 = vpop.f32.mrb[76].mxu0 }
 0x1c4   : > { %v5390_v8 = vpack.c.bf16 %v3229_v28, %v3229_v28  ;;  %v5518_v49 = vpack.c.bf16 %v3357_v21, %v3357_v21  ;;  %v3358_v12 = vadd.f32 %v7222_v0, %v3095_v39  ;;  %4512 = vst.msk [vmem:[%s6749_s9 + $0xe8] sm:$0xf] %vm4453_vm2, %v5392_v23  ;;  %v1873_v47 = vadd.f32 %v7188_v46, %v7440_v32  ;;  %v7666_v32 = vpop.f32.mrb[76].mxu1 }
 0x1c5   : > { %4640 = vst.msk [vmem:[%s6749_s9 + $0x2e8] sm:$0xf] %vm4453_vm2, %v5520_v40  ;;  %v5393_v27 = vpack.c.bf16 %v3232_v36, %v3232_v36  ;;  %v5521_v44 = vpack.c.bf16 %v3360_v43, %v3360_v43  ;;  %v2385_v19 = vadd.f32 %v7188_v46, %v7442_v54  ;;  %v5391_v48 = vpack.c.bf16 %v3230_v51, %v3230_v51  ;;  %v7678_v15 = vpop.f32.mrb[77].mxu1 }
 0x1c6   : > { %4510 = vst.msk [vmem:[%s6749_s9 + $0xe0] sm:$0xf] %vm4453_vm2, %v5390_v8  ;;  %4638 = vst.msk [vmem:[%s6749_s9 + $0x2e0] sm:$0xf] %vm4453_vm2, %v5518_v49  ;;  %v5519_v52 = vpack.c.bf16 %v3358_v12, %v3358_v12  ;;  %v1865_v56 = vadd.f32 %v7188_v46, %v7452_v62  ;;  %v2377_v33 = vadd.f32 %v7188_v46, %v7454_v18  ;;  %v2709_v54 = vmax.f32 %v1873_v47, 0.0  ;;  %v7676_v62 = vpop.f32.mrb[77].mxu0 }
 0x1c7   : > { %4513 = vst.msk [vmem:[%s6749_s9 + $0xec] sm:$0xf] %vm4453_vm2, %v5393_v27  ;;  %4641 = vst.msk [vmem:[%s6749_s9 + $0x2ec] sm:$0xf] %vm4453_vm2, %v5521_v44  ;;  %v2837_v22 = vmax.f32 %v2385_v19, 0.0  ;;  %v1876_v14 = vadd.f32 %v7188_v46, %v7464_v25  ;;  %v2388_v1 = vadd.f32 %v7188_v46, %v7466_v9  ;;  %v1868_v63 = vadd.f32 %v7188_v46, %v7476_v41  ;;  %v7688_v25 = vpop.f32.mrb[78].mxu0 }
 0x1c8   : > { %4511 = vst.msk [vmem:[%s6749_s9 + $0xe4] sm:$0xf] %vm4453_vm2, %v5391_v48  ;;  %4639 = vst.msk [vmem:[%s6749_s9 + $0x2e4] sm:$0xf] %vm4453_vm2, %v5519_v52  ;;  %v2707_v18 = vmax.f32 %v1865_v56, 0.0  ;;  %v2835_v30 = vmax.f32 %v2377_v33, 0.0  ;;  %v2380_v16 = vadd.f32 %v7188_v46, %v7478_v57  ;;  %v2972_v9 = vmul.f32 %v7209_v34, %v2709_v54 }
 0x1c9   : > { %v7690_v50 = vpop.f32.mrb[78].mxu1  ;;  %v3100_v28 = vmul.f32 %v7209_v34, %v2837_v22  ;;  %v2710_v21 = vmax.f32 %v1876_v14, 0.0  ;;  %v2838_v20 = vmax.f32 %v2388_v1, 0.0  ;;  %v7694_v39 = vpop.f32.mrb[79].mxu0  ;;  %v2708_v36 = vmax.f32 %v1868_v63, 0.0 }
 0x1ca   : > { %v7696_v23 = vpop.f32.mrb[79].mxu1  ;;  %v2970_v40 = vmul.f32 %v7209_v34, %v2707_v18  ;;  %v3098_v41 = vmul.f32 %v7209_v34, %v2835_v30  ;;  %v2836_v57 = vmax.f32 %v2380_v16, 0.0  ;;  %v3235_v43 = vadd.f32 %v7222_v0, %v2972_v9 }
 0x1cb   : > { %v3363_v8 = vadd.f32 %v7222_v0, %v3100_v28  ;;  %v2973_v49 = vmul.f32 %v7209_v34, %v2710_v21  ;;  %v3101_v51 = vmul.f32 %v7209_v34, %v2838_v20  ;;  %v2971_v44 = vmul.f32 %v7209_v34, %v2708_v36  ;;  %v7712_v1 = vpop.f32.mrb[80].mxu0  ;;  %v7714_v18 = vpop.f32.mrb[80].mxu1 }
 0x1cc   : > { %v3233_v12 = vadd.f32 %v7222_v0, %v2970_v40  ;;  %v3361_v27 = vadd.f32 %v7222_v0, %v3098_v41  ;;  %v3099_v47 = vmul.f32 %v7209_v34, %v2836_v57  ;;  %v5396_v19 = vpack.c.bf16 %v3235_v43, %v3235_v43  ;;  %v7724_v28 = vpop.f32.mrb[81].mxu0  ;;  %v7726_v21 = vpop.f32.mrb[81].mxu1 }
 0x1cd   : > { %v5524_v48 = vpack.c.bf16 %v3363_v8, %v3363_v8  ;;  %v3236_v52 = vadd.f32 %v7222_v0, %v2973_v49  ;;  %v3364_v56 = vadd.f32 %v7222_v0, %v3101_v51  ;;  %v3234_v22 = vadd.f32 %v7222_v0, %v2971_v44  ;;  %v7736_v36 = vpop.f32.mrb[82].mxu0 }
 0x1ce   : > { %v5394_v33 = vpack.c.bf16 %v3233_v12, %v3233_v12  ;;  %v5522_v54 = vpack.c.bf16 %v3361_v27, %v3361_v27  ;;  %v3362_v14 = vadd.f32 %v7222_v0, %v3099_v47  ;;  %4516 = vst.msk [vmem:[%s6749_s9 + $0xf8] sm:$0xf] %vm4453_vm2, %v5396_v19  ;;  %v1889_v16 = vadd.f32 %v7188_v46, %v7500_v24 }
 0x1cf   : > { %4644 = vst.msk [vmem:[%s6749_s9 + $0x2f8] sm:$0xf] %vm4453_vm2, %v5524_v48  ;;  %v5397_v30 = vpack.c.bf16 %v3236_v52, %v3236_v52  ;;  %v5525_v63 = vpack.c.bf16 %v3364_v56, %v3364_v56  ;;  %v2401_v9 = vadd.f32 %v7188_v46, %v7502_v10  ;;  %v5395_v20 = vpack.c.bf16 %v3234_v22, %v3234_v22  ;;  %v7738_v10 = vpop.f32.mrb[82].mxu1 }
 0x1d0   : > { %4514 = vst.msk [vmem:[%s6749_s9 + $0xf0] sm:$0xf] %vm4453_vm2, %v5394_v33  ;;  %4642 = vst.msk [vmem:[%s6749_s9 + $0x2f0] sm:$0xf] %vm4453_vm2, %v5522_v54  ;;  %v5523_v40 = vpack.c.bf16 %v3362_v14, %v3362_v14  ;;  %v1881_v41 = vadd.f32 %v7188_v46, %v7506_v17  ;;  %v2393_v24 = vadd.f32 %v7188_v46, %v7508_v55  ;;  %v2713_v57 = vmax.f32 %v1889_v16, 0.0  ;;  %v7748_v17 = vpop.f32.mrb[83].mxu0 }
 0x1d1   : > { %4517 = vst.msk [vmem:[%s6749_s9 + $0xfc] sm:$0xf] %vm4453_vm2, %v5397_v30  ;;  %4645 = vst.msk [vmem:[%s6749_s9 + $0x2fc] sm:$0xf] %vm4453_vm2, %v5525_v63  ;;  %v2841_v43 = vmax.f32 %v2401_v9, 0.0  ;;  %v1892_v8 = vadd.f32 %v7188_v46, %v7512_v26  ;;  %v2404_v49 = vadd.f32 %v7188_v46, %v7514_v35  ;;  %v7750_v51 = vpop.f32.mrb[83].mxu1  ;;  %v1884_v27 = vadd.f32 %v7188_v46, %v7524_v37 }
 0x1d2   : > { %4515 = vst.msk [vmem:[%s6749_s9 + $0xf4] sm:$0xf] %vm4453_vm2, %v5395_v20  ;;  %4643 = vst.msk [vmem:[%s6749_s9 + $0x2f4] sm:$0xf] %vm4453_vm2, %v5523_v40  ;;  %v2711_v55 = vmax.f32 %v1881_v41, 0.0  ;;  %v2839_v12 = vmax.f32 %v2393_v24, 0.0  ;;  %v2396_v44 = vadd.f32 %v7188_v46, %v7526_v5  ;;  %v2976_v26 = vmul.f32 %v7209_v34, %v2713_v57 }
 0x1d3   : > { %v3104_v35 = vmul.f32 %v7209_v34, %v2841_v43  ;;  %v2714_v47 = vmax.f32 %v1892_v8, 0.0  ;;  %v2842_v19 = vmax.f32 %v2404_v49, 0.0  ;;  %v2712_v56 = vmax.f32 %v1884_v27, 0.0  ;;  %v7772_v9 = vpop.f32.mrb[84].mxu0  ;;  %v7774_v20 = vpop.f32.mrb[84].mxu1 }
 0x1d4   : > { %v2974_v48 = vmul.f32 %v7209_v34, %v2711_v55  ;;  %v3102_v52 = vmul.f32 %v7209_v34, %v2839_v12  ;;  %v2840_v33 = vmax.f32 %v2396_v44, 0.0  ;;  %v3239_v54 = vadd.f32 %v7222_v0, %v2976_v26  ;;  %v7778_v43 = vpop.f32.mrb[85].mxu0  ;;  %v7780_v8 = vpop.f32.mrb[85].mxu1 }
 0x1d5   : > { %v3367_v22 = vadd.f32 %v7222_v0, %v3104_v35  ;;  %v2977_v37 = vmul.f32 %v7209_v34, %v2714_v47  ;;  %v3105_v5 = vmul.f32 %v7209_v34, %v2842_v19  ;;  %v2975_v63 = vmul.f32 %v7209_v34, %v2712_v56  ;;  %v7784_v27 = vpop.f32.mrb[86].mxu0  ;;  %v7786_v44 = vpop.f32.mrb[86].mxu1 }
 0x1d6   : > { %v3237_v14 = vadd.f32 %v7222_v0, %v2974_v48  ;;  %v3365_v30 = vadd.f32 %v7222_v0, %v3102_v52  ;;  %v3103_v16 = vmul.f32 %v7209_v34, %v2840_v33  ;;  %v5400_v40 = vpack.c.bf16 %v3239_v54, %v3239_v54  ;;  %v7798_v48 = vpop.f32.mrb[87].mxu1  ;;  %v7807_v33 = vld [vmem:[%s8770_s2] ss:$0 sm:$0xff] }
 0x1d7   : > { %v5528_v41 = vpack.c.bf16 %v3367_v22, %v3367_v22  ;;  %v3240_v24 = vadd.f32 %v7222_v0, %v2977_v37  ;;  %v3368_v57 = vadd.f32 %v7222_v0, %v3105_v5  ;;  %v3238_v34 = vadd.f32 %v7222_v0, %v2975_v63 }
 0x1d8   : > { %v5398_v49 = vpack.c.bf16 %v3237_v14, %v3237_v14  ;;  %v5526_v55 = vpack.c.bf16 %v3365_v30, %v3365_v30  ;;  %v3366_v12 = vadd.f32 %v7222_v0, %v3103_v16  ;;  %4520 = vst.msk [vmem:[%s6749_s9 + $0x108] sm:$0xf] %vm4453_vm2, %v5400_v40  ;;  %v1905_v47 = vadd.f32 %v7188_v46, %v7556_v60  ;;  %v7796_v0 = vpop.f32.mrb[87].mxu0  ;;  %v7832_v30 = vld [vmem:[%s8771_s3] ss:$0 sm:$0xff] }
 0x1d9   : > { %4648 = vst.msk [vmem:[%s6749_s9 + $0x308] sm:$0xf] %vm4453_vm2, %v5528_v41  ;;  %v5401_v26 = vpack.c.bf16 %v3240_v24, %v3240_v24  ;;  %v5529_v35 = vpack.c.bf16 %v3368_v57, %v3368_v57  ;;  %v2417_v19 = vadd.f32 %v7188_v46, %v7558_v61  ;;  %v5399_v52 = vpack.c.bf16 %v3238_v34, %v3238_v34 }
 0x1da   : > { %4518 = vst.msk [vmem:[%s6749_s9 + $0x100] sm:$0xf] %vm4453_vm2, %v5398_v49  ;;  %4646 = vst.msk [vmem:[%s6749_s9 + $0x300] sm:$0xf] %vm4453_vm2, %v5526_v55  ;;  %v5527_v56 = vpack.c.bf16 %v3366_v12, %v3366_v12  ;;  %v1897_v46 = vadd.f32 %v7807_v33, %v7564_v13  ;;  %v2409_v60 = vadd.f32 %v7807_v33, %v7566_v45  ;;  %v2717_v61 = vmax.f32 %v1905_v47, 0.0 }
 0x1db   : > { %4521 = vst.msk [vmem:[%s6749_s9 + $0x10c] sm:$0xf] %vm4453_vm2, %v5401_v26  ;;  %4649 = vst.msk [vmem:[%s6749_s9 + $0x30c] sm:$0xf] %vm4453_vm2, %v5529_v35  ;;  %v2845_v54 = vmax.f32 %v2417_v19, 0.0  ;;  %v1908_v22 = vadd.f32 %v7807_v33, %v7572_v7  ;;  %v2420_v37 = vadd.f32 %v7807_v33, %v7574_v58  ;;  %v1900_v45 = vadd.f32 %v7807_v33, %v7578_v31  ;;  %v7838_v57 = vpop.f32.mrb[88].mxu0 }
 0x1dc   : > { %4519 = vst.msk [vmem:[%s6749_s9 + $0x104] sm:$0xf] %vm4453_vm2, %v5399_v52  ;;  %4647 = vst.msk [vmem:[%s6749_s9 + $0x304] sm:$0xf] %vm4453_vm2, %v5527_v56  ;;  %v2715_v13 = vmax.f32 %v1897_v46, 0.0  ;;  %v2843_v5 = vmax.f32 %v2409_v60, 0.0  ;;  %v2412_v14 = vadd.f32 %v7807_v33, %v7580_v38  ;;  %v2980_v7 = vmul.f32 %v7832_v30, %v2717_v61 }
 0x1dd   : > { %v3108_v58 = vmul.f32 %v7832_v30, %v2845_v54  ;;  %v2718_v63 = vmax.f32 %v1908_v22, 0.0  ;;  %v2846_v16 = vmax.f32 %v2420_v37, 0.0  ;;  %v2716_v24 = vmax.f32 %v1900_v45, 0.0  ;;  %v7840_v38 = vpop.f32.mrb[88].mxu1  ;;  %v7845_v49 = vld [vmem:[%s8772_s4] ss:$0 sm:$0xff] }
 0x1de   : > { %v2978_v40 = vmul.f32 %v7832_v30, %v2715_v13  ;;  %v3106_v41 = vmul.f32 %v7832_v30, %v2843_v5  ;;  %v2844_v31 = vmax.f32 %v2412_v14, 0.0  ;;  %v3243_v55 = vadd.f32 %v7845_v49, %v2980_v7  ;;  %v7851_v35 = vpop.f32.mrb[89].mxu0  ;;  %v7853_v47 = vpop.f32.mrb[89].mxu1 }
 0x1df   : > { %v3371_v34 = vadd.f32 %v7845_v49, %v3108_v58  ;;  %v2981_v12 = vmul.f32 %v7832_v30, %v2718_v63  ;;  %v3109_v26 = vmul.f32 %v7832_v30, %v2846_v16  ;;  %v2979_v56 = vmul.f32 %v7832_v30, %v2716_v24  ;;  %v7859_v60 = vpop.f32.mrb[90].mxu0  ;;  %v7861_v61 = vpop.f32.mrb[90].mxu1 }
 0x1e0   : > { %v3241_v19 = vadd.f32 %v7845_v49, %v2978_v40  ;;  %v3369_v52 = vadd.f32 %v7845_v49, %v3106_v41  ;;  %v3107_v46 = vmul.f32 %v7832_v30, %v2844_v31  ;;  %v5404_v54 = vpack.c.bf16 %v3243_v55, %v3243_v55  ;;  %v7865_v5 = vpop.f32.mrb[91].mxu0  ;;  %v7867_v45 = vpop.f32.mrb[91].mxu1 }
 0x1e1   : > { %v5532_v22 = vpack.c.bf16 %v3371_v34, %v3371_v34  ;;  %v3244_v37 = vadd.f32 %v7845_v49, %v2981_v12  ;;  %v3372_v13 = vadd.f32 %v7845_v49, %v3109_v26  ;;  %v3242_v58 = vadd.f32 %v7845_v49, %v2979_v56 }
 0x1e2   : > { %v5402_v14 = vpack.c.bf16 %v3241_v19, %v3241_v19  ;;  %v5530_v7 = vpack.c.bf16 %v3369_v52, %v3369_v52  ;;  %v3370_v63 = vadd.f32 %v7845_v49, %v3107_v46  ;;  %4524 = vst.msk [vmem:[%s6749_s9 + $0x118] sm:$0xf] %vm4453_vm2, %v5404_v54  ;;  %v1921_v41 = vadd.f32 %v7807_v33, %v7616_v59 }
 0x1e3   : > { %4652 = vst.msk [vmem:[%s6749_s9 + $0x318] sm:$0xf] %vm4453_vm2, %v5532_v22  ;;  %v5405_v16 = vpack.c.bf16 %v3244_v37, %v3244_v37  ;;  %v5533_v40 = vpack.c.bf16 %v3372_v13, %v3372_v13  ;;  %v2433_v24 = vadd.f32 %v7807_v33, %v7618_v29  ;;  %v5403_v31 = vpack.c.bf16 %v3242_v58, %v3242_v58  ;;  %v7903_v46 = vpop.f32.mrb[92].mxu0  ;;  %v7905_v54 = vpop.f32.mrb[92].mxu1 }
 0x1e4   : > { %4522 = vst.msk [vmem:[%s6749_s9 + $0x110] sm:$0xf] %vm4453_vm2, %v5402_v14  ;;  %4650 = vst.msk [vmem:[%s6749_s9 + $0x310] sm:$0xf] %vm4453_vm2, %v5530_v7  ;;  %v5531_v55 = vpack.c.bf16 %v3370_v63, %v3370_v63  ;;  %v1913_v34 = vadd.f32 %v7807_v33, %v7622_v11  ;;  %v2425_v12 = vadd.f32 %v7807_v33, %v7624_v53  ;;  %v2721_v59 = vmax.f32 %v1921_v41, 0.0  ;;  %v7909_v13 = vpop.f32.mrb[93].mxu0 }
 0x1e5   : > { %4525 = vst.msk [vmem:[%s6749_s9 + $0x11c] sm:$0xf] %vm4453_vm2, %v5405_v16  ;;  %4653 = vst.msk [vmem:[%s6749_s9 + $0x31c] sm:$0xf] %vm4453_vm2, %v5533_v40  ;;  %v2849_v26 = vmax.f32 %v2433_v24, 0.0  ;;  %v1924_v29 = vadd.f32 %v7807_v33, %v7628_v42  ;;  %v2436_v19 = vadd.f32 %v7807_v33, %v7630_v3  ;;  %v1916_v53 = vadd.f32 %v7807_v33, %v7636_v2  ;;  %v7911_v14 = vpop.f32.mrb[93].mxu1 }
 0x1e6   : > { %4523 = vst.msk [vmem:[%s6749_s9 + $0x114] sm:$0xf] %vm4453_vm2, %v5403_v31  ;;  %4651 = vst.msk [vmem:[%s6749_s9 + $0x314] sm:$0xf] %vm4453_vm2, %v5531_v55  ;;  %v2719_v11 = vmax.f32 %v1913_v34, 0.0  ;;  %v2847_v52 = vmax.f32 %v2425_v12, 0.0  ;;  %v2428_v56 = vadd.f32 %v7807_v33, %v7638_v6  ;;  %v2984_v42 = vmul.f32 %v7832_v30, %v2721_v59 }
 0x1e7   : > { %v3112_v3 = vmul.f32 %v7832_v30, %v2849_v26  ;;  %v2722_v22 = vmax.f32 %v1924_v29, 0.0  ;;  %v2850_v37 = vmax.f32 %v2436_v19, 0.0  ;;  %v2720_v58 = vmax.f32 %v1916_v53, 0.0  ;;  %v7915_v63 = vpop.f32.mrb[94].mxu0  ;;  %v7917_v16 = vpop.f32.mrb[94].mxu1 }
 0x1e8   : > { %v2982_v7 = vmul.f32 %v7832_v30, %v2719_v11  ;;  %v3110_v2 = vmul.f32 %v7832_v30, %v2847_v52  ;;  %v2848_v6 = vmax.f32 %v2428_v56, 0.0  ;;  %v3247_v40 = vadd.f32 %v7845_v49, %v2984_v42  ;;  %v7923_v55 = vpop.f32.mrb[95].mxu0  ;;  %v7925_v34 = vpop.f32.mrb[95].mxu1 }
 0x1e9   : > { %v3375_v41 = vadd.f32 %v7845_v49, %v3112_v3  ;;  %v2985_v24 = vmul.f32 %v7832_v30, %v2722_v22  ;;  %v3113_v31 = vmul.f32 %v7832_v30, %v2850_v37  ;;  %v2983_v26 = vmul.f32 %v7832_v30, %v2720_v58 }
 0x1ea   : > { %v3245_v12 = vadd.f32 %v7845_v49, %v2982_v7  ;;  %v3373_v59 = vadd.f32 %v7845_v49, %v3110_v2  ;;  %v3111_v29 = vmul.f32 %v7832_v30, %v2848_v6  ;;  %v5408_v19 = vpack.c.bf16 %v3247_v40, %v3247_v40 }
 0x1eb   : > { %v5536_v11 = vpack.c.bf16 %v3375_v41, %v3375_v41  ;;  %v3248_v52 = vadd.f32 %v7845_v49, %v2985_v24  ;;  %v3376_v53 = vadd.f32 %v7845_v49, %v3113_v31  ;;  %v3246_v3 = vadd.f32 %v7845_v49, %v2983_v26  ;;  %v7951_v31 = vpop.f32.mrb[96].mxu0 }
 0x1ec   : > { %v5406_v56 = vpack.c.bf16 %v3245_v12, %v3245_v12  ;;  %v5534_v42 = vpack.c.bf16 %v3373_v59, %v3373_v59  ;;  %v3374_v22 = vadd.f32 %v7845_v49, %v3111_v29  ;;  %4528 = vst.msk [vmem:[%s6749_s9 + $0x128] sm:$0xf] %vm4453_vm2, %v5408_v19  ;;  %v1937_v2 = vadd.f32 %v7807_v33, %v7664_v4  ;;  %v7953_v4 = vpop.f32.mrb[96].mxu1 }
 0x1ed   : > { %4656 = vst.msk [vmem:[%s6749_s9 + $0x328] sm:$0xf] %vm4453_vm2, %v5536_v11  ;;  %v5409_v37 = vpack.c.bf16 %v3248_v52, %v3248_v52  ;;  %v5537_v7 = vpack.c.bf16 %v3376_v53, %v3376_v53  ;;  %v2449_v58 = vadd.f32 %v7807_v33, %v7666_v32  ;;  %v5407_v6 = vpack.c.bf16 %v3246_v3, %v3246_v3  ;;  %v7965_v29 = vpop.f32.mrb[97].mxu1 }
 0x1ee   : > { %4526 = vst.msk [vmem:[%s6749_s9 + $0x120] sm:$0xf] %vm4453_vm2, %v5406_v56  ;;  %4654 = vst.msk [vmem:[%s6749_s9 + $0x320] sm:$0xf] %vm4453_vm2, %v5534_v42  ;;  %v5535_v40 = vpack.c.bf16 %v3374_v22, %v3374_v22  ;;  %v1929_v41 = vadd.f32 %v7807_v33, %v7676_v62  ;;  %v2441_v24 = vadd.f32 %v7807_v33, %v7678_v15  ;;  %v2725_v32 = vmax.f32 %v1937_v2, 0.0  ;;  %v7963_v62 = vpop.f32.mrb[97].mxu0 }
 0x1ef   : > { %4529 = vst.msk [vmem:[%s6749_s9 + $0x12c] sm:$0xf] %vm4453_vm2, %v5409_v37  ;;  %4657 = vst.msk [vmem:[%s6749_s9 + $0x32c] sm:$0xf] %vm4453_vm2, %v5537_v7  ;;  %v2853_v12 = vmax.f32 %v2449_v58, 0.0  ;;  %v1940_v59 = vadd.f32 %v7807_v33, %v7688_v25  ;;  %v2452_v26 = vadd.f32 %v7807_v33, %v7690_v50  ;;  %v1932_v11 = vadd.f32 %v7807_v33, %v7694_v39  ;;  %v7975_v25 = vpop.f32.mrb[98].mxu0 }
 0x1f0   : > { %4527 = vst.msk [vmem:[%s6749_s9 + $0x124] sm:$0xf] %vm4453_vm2, %v5407_v6  ;;  %4655 = vst.msk [vmem:[%s6749_s9 + $0x324] sm:$0xf] %vm4453_vm2, %v5535_v40  ;;  %v2723_v15 = vmax.f32 %v1929_v41, 0.0  ;;  %v2851_v19 = vmax.f32 %v2441_v24, 0.0  ;;  %v2444_v52 = vadd.f32 %v7807_v33, %v7696_v23  ;;  %v2988_v50 = vmul.f32 %v7832_v30, %v2725_v32 }
 0x1f1   : > { %v7977_v53 = vpop.f32.mrb[98].mxu1  ;;  %v3116_v56 = vmul.f32 %v7832_v30, %v2853_v12  ;;  %v2726_v42 = vmax.f32 %v1940_v59, 0.0  ;;  %v2854_v3 = vmax.f32 %v2452_v26, 0.0  ;;  %v7981_v22 = vpop.f32.mrb[99].mxu0  ;;  %v2724_v2 = vmax.f32 %v1932_v11, 0.0 }
 0x1f2   : > { %v7983_v37 = vpop.f32.mrb[99].mxu1  ;;  %v2986_v7 = vmul.f32 %v7832_v30, %v2723_v15  ;;  %v3114_v39 = vmul.f32 %v7832_v30, %v2851_v19  ;;  %v2852_v23 = vmax.f32 %v2444_v52, 0.0  ;;  %v3251_v58 = vadd.f32 %v7845_v49, %v2988_v50 }
 0x1f3   : > { %v3379_v6 = vadd.f32 %v7845_v49, %v3116_v56  ;;  %v2989_v40 = vmul.f32 %v7832_v30, %v2726_v42  ;;  %v3117_v41 = vmul.f32 %v7832_v30, %v2854_v3  ;;  %v2987_v12 = vmul.f32 %v7832_v30, %v2724_v2  ;;  %v7999_v3 = vpop.f32.mrb[100].mxu0 }
 0x1f4   : > { %v3249_v24 = vadd.f32 %v7845_v49, %v2986_v7  ;;  %v3377_v32 = vadd.f32 %v7845_v49, %v3114_v39  ;;  %v3115_v59 = vmul.f32 %v7832_v30, %v2852_v23  ;;  %v5412_v26 = vpack.c.bf16 %v3251_v58, %v3251_v58  ;;  %v8001_v7 = vpop.f32.mrb[100].mxu1 }
 0x1f5   : > { %v5540_v15 = vpack.c.bf16 %v3379_v6, %v3379_v6  ;;  %v3252_v19 = vadd.f32 %v7845_v49, %v2989_v40  ;;  %v3380_v11 = vadd.f32 %v7845_v49, %v3117_v41  ;;  %v3250_v56 = vadd.f32 %v7845_v49, %v2987_v12  ;;  %v8011_v6 = vpop.f32.mrb[101].mxu0  ;;  %v8013_v40 = vpop.f32.mrb[101].mxu1 }
 0x1f6   : > { %v5410_v52 = vpack.c.bf16 %v3249_v24, %v3249_v24  ;;  %v5538_v50 = vpack.c.bf16 %v3377_v32, %v3377_v32  ;;  %v3378_v42 = vadd.f32 %v7845_v49, %v3115_v59  ;;  %4532 = vst.msk [vmem:[%s6749_s9 + $0x138] sm:$0xf] %vm4453_vm2, %v5412_v26  ;;  %v1953_v23 = vadd.f32 %v7807_v33, %v7712_v1  ;;  %v8023_v12 = vpop.f32.mrb[102].mxu0 }
 0x1f7   : > { %4660 = vst.msk [vmem:[%s6749_s9 + $0x338] sm:$0xf] %vm4453_vm2, %v5540_v15  ;;  %v5413_v39 = vpack.c.bf16 %v3252_v19, %v3252_v19  ;;  %v5541_v2 = vpack.c.bf16 %v3380_v11, %v3380_v11  ;;  %v2465_v58 = vadd.f32 %v7807_v33, %v7714_v18  ;;  %v5411_v41 = vpack.c.bf16 %v3250_v56, %v3250_v56  ;;  %v8025_v18 = vpop.f32.mrb[102].mxu1 }
 0x1f8   : > { %4530 = vst.msk [vmem:[%s6749_s9 + $0x130] sm:$0xf] %vm4453_vm2, %v5410_v52  ;;  %4658 = vst.msk [vmem:[%s6749_s9 + $0x330] sm:$0xf] %vm4453_vm2, %v5538_v50  ;;  %v5539_v24 = vpack.c.bf16 %v3378_v42, %v3378_v42  ;;  %v1945_v32 = vadd.f32 %v7807_v33, %v7724_v28  ;;  %v2457_v1 = vadd.f32 %v7807_v33, %v7726_v21  ;;  %v2729_v59 = vmax.f32 %v1953_v23, 0.0  ;;  %v8035_v28 = vpop.f32.mrb[103].mxu0 }
 0x1f9   : > { %4533 = vst.msk [vmem:[%s6749_s9 + $0x13c] sm:$0xf] %vm4453_vm2, %v5413_v39  ;;  %4661 = vst.msk [vmem:[%s6749_s9 + $0x33c] sm:$0xf] %vm4453_vm2, %v5541_v2  ;;  %v2857_v26 = vmax.f32 %v2465_v58, 0.0  ;;  %v1956_v15 = vadd.f32 %v7807_v33, %v7736_v36  ;;  %v2468_v19 = vadd.f32 %v7807_v33, %v7738_v10  ;;  %v8037_v11 = vpop.f32.mrb[103].mxu1  ;;  %v1948_v50 = vadd.f32 %v7807_v33, %v7748_v17 }
 0x1fa   : > { %4531 = vst.msk [vmem:[%s6749_s9 + $0x134] sm:$0xf] %vm4453_vm2, %v5411_v41  ;;  %4659 = vst.msk [vmem:[%s6749_s9 + $0x334] sm:$0xf] %vm4453_vm2, %v5539_v24  ;;  %v2727_v21 = vmax.f32 %v1945_v32, 0.0  ;;  %v2855_v52 = vmax.f32 %v2457_v1, 0.0  ;;  %v2460_v56 = vadd.f32 %v7807_v33, %v7750_v51  ;;  %v2992_v36 = vmul.f32 %v7832_v30, %v2729_v59 }
 0x1fb   : > { %v3120_v10 = vmul.f32 %v7832_v30, %v2857_v26  ;;  %v2730_v42 = vmax.f32 %v1956_v15, 0.0  ;;  %v2858_v39 = vmax.f32 %v2468_v19, 0.0  ;;  %v2728_v58 = vmax.f32 %v1948_v50, 0.0  ;;  %v8059_v19 = vpop.f32.mrb[104].mxu0 }
 0x1fc   : > { %v2990_v2 = vmul.f32 %v7832_v30, %v2727_v21  ;;  %v3118_v23 = vmul.f32 %v7832_v30, %v2855_v52  ;;  %v2856_v41 = vmax.f32 %v2460_v56, 0.0  ;;  %v3255_v24 = vadd.f32 %v7845_v49, %v2992_v36  ;;  %v8061_v21 = vpop.f32.mrb[104].mxu1 }
 0x1fd   : > { %v3383_v32 = vadd.f32 %v7845_v49, %v3120_v10  ;;  %v2993_v17 = vmul.f32 %v7832_v30, %v2730_v42  ;;  %v3121_v51 = vmul.f32 %v7832_v30, %v2858_v39  ;;  %v2991_v26 = vmul.f32 %v7832_v30, %v2728_v58  ;;  %v8065_v10 = vpop.f32.mrb[105].mxu0  ;;  %v8067_v42 = vpop.f32.mrb[105].mxu1 }
 0x1fe   : > { %v3253_v1 = vadd.f32 %v7845_v49, %v2990_v2  ;;  %v3381_v59 = vadd.f32 %v7845_v49, %v3118_v23  ;;  %v3119_v15 = vmul.f32 %v7832_v30, %v2856_v41  ;;  %v5416_v52 = vpack.c.bf16 %v3255_v24, %v3255_v24  ;;  %v8071_v41 = vpop.f32.mrb[106].mxu0  ;;  %v8073_v24 = vpop.f32.mrb[106].mxu1 }
 0x1ff   : > { %v5544_v50 = vpack.c.bf16 %v3383_v32, %v3383_v32  ;;  %v3256_v56 = vadd.f32 %v7845_v49, %v2993_v17  ;;  %v3384_v36 = vadd.f32 %v7845_v49, %v3121_v51  ;;  %v3254_v23 = vadd.f32 %v7845_v49, %v2991_v26  ;;  %v8085_v26 = vpop.f32.mrb[107].mxu1 }
 0x200   : > { %v5414_v39 = vpack.c.bf16 %v3253_v1, %v3253_v1  ;;  %v5542_v2 = vpack.c.bf16 %v3381_v59, %v3381_v59  ;;  %v3382_v58 = vadd.f32 %v7845_v49, %v3119_v15  ;;  %4536 = vst.msk [vmem:[%s6749_s9 + $0x148] sm:$0xf] %vm4453_vm2, %v5416_v52  ;;  %v1969_v51 = vadd.f32 %v7807_v33, %v7772_v9  ;;  %v8083_v59 = vpop.f32.mrb[107].mxu0 }
 0x201   : > { %4664 = vst.msk [vmem:[%s6749_s9 + $0x348] sm:$0xf] %vm4453_vm2, %v5544_v50  ;;  %v5417_v32 = vpack.c.bf16 %v3256_v56, %v3256_v56  ;;  %v5545_v17 = vpack.c.bf16 %v3384_v36, %v3384_v36  ;;  %v2481_v1 = vadd.f32 %v7807_v33, %v7774_v20  ;;  %v5415_v15 = vpack.c.bf16 %v3254_v23, %v3254_v23 }
 0x202   : > { %4534 = vst.msk [vmem:[%s6749_s9 + $0x140] sm:$0xf] %vm4453_vm2, %v5414_v39  ;;  %4662 = vst.msk [vmem:[%s6749_s9 + $0x340] sm:$0xf] %vm4453_vm2, %v5542_v2  ;;  %v5543_v52 = vpack.c.bf16 %v3382_v58, %v3382_v58  ;;  %v1961_v50 = vadd.f32 %v7807_v33, %v7778_v43  ;;  %v2473_v9 = vadd.f32 %v7807_v33, %v7780_v8  ;;  %v2733_v20 = vmax.f32 %v1969_v51, 0.0 }
 0x203   : > { %4537 = vst.msk [vmem:[%s6749_s9 + $0x14c] sm:$0xf] %vm4453_vm2, %v5417_v32  ;;  %4665 = vst.msk [vmem:[%s6749_s9 + $0x34c] sm:$0xf] %vm4453_vm2, %v5545_v17  ;;  %v2861_v56 = vmax.f32 %v2481_v1, 0.0  ;;  %v1972_v36 = vadd.f32 %v7807_v33, %v7784_v27  ;;  %v2484_v39 = vadd.f32 %v7807_v33, %v7786_v44  ;;  %v1964_v8 = vadd.f32 %v7807_v33, %v7796_v0 }
 0x204   : > { %4535 = vst.msk [vmem:[%s6749_s9 + $0x144] sm:$0xf] %vm4453_vm2, %v5415_v15  ;;  %4663 = vst.msk [vmem:[%s6749_s9 + $0x344] sm:$0xf] %vm4453_vm2, %v5543_v52  ;;  %v2731_v43 = vmax.f32 %v1961_v50, 0.0  ;;  %v2859_v2 = vmax.f32 %v2473_v9, 0.0  ;;  %v2476_v23 = vadd.f32 %v7807_v33, %v7798_v48  ;;  %v2996_v58 = vmul.f32 %v7832_v30, %v2733_v20 }
 0x205   : > { %v3124_v32 = vmul.f32 %v7832_v30, %v2861_v56  ;;  %v2734_v27 = vmax.f32 %v1972_v36, 0.0  ;;  %v2862_v17 = vmax.f32 %v2484_v39, 0.0  ;;  %v2732_v1 = vmax.f32 %v1964_v8, 0.0  ;;  %v8115_v52 = vpop.f32.mrb[108].mxu0  ;;  %v8117_v50 = vpop.f32.mrb[108].mxu1 }
 0x206   : > { %v2994_v44 = vmul.f32 %v7832_v30, %v2731_v43  ;;  %v3122_v51 = vmul.f32 %v7832_v30, %v2859_v2  ;;  %v2860_v15 = vmax.f32 %v2476_v23, 0.0  ;;  %v3259_v0 = vadd.f32 %v7845_v49, %v2996_v58  ;;  %v8123_v56 = vpop.f32.mrb[109].mxu0  ;;  %v8125_v36 = vpop.f32.mrb[109].mxu1 }
 0x207   : > { %v3387_v48 = vadd.f32 %v7845_v49, %v3124_v32  ;;  %v2997_v9 = vmul.f32 %v7832_v30, %v2734_v27  ;;  %v3125_v20 = vmul.f32 %v7832_v30, %v2862_v17  ;;  %8780 = vst [vmem:[#allocation8_spill] sm:$0xff] %v8123_v56  ;;  %8781 = vst [vmem:[#allocation9_spill] sm:$0xff] %v8125_v36  ;;  %v8131_v23 = vpop.f32.mrb[110].mxu0  ;;  %v8133_v58 = vpop.f32.mrb[110].mxu1 }
 0x208   : > { %v3257_v39 = vadd.f32 %v7845_v49, %v2994_v44  ;;  %v3385_v43 = vadd.f32 %v7845_v49, %v3122_v51  ;;  %v2995_v2 = vmul.f32 %v7832_v30, %v2732_v1  ;;  %v3123_v8 = vmul.f32 %v7832_v30, %v2860_v15  ;;  %8782 = vst [vmem:[#allocation10_spill] sm:$0xff] %v8133_v58  ;;  %v8137_v36 = vpop.f32.mrb[111].mxu0  ;;  %v8139_v51 = vpop.f32.mrb[111].mxu1 }
 0x209   : > { %v5420_v32 = vpack.c.bf16 %v3259_v0, %v3259_v0  ;;  %v5548_v27 = vpack.c.bf16 %v3387_v48, %v3387_v48  ;;  %v3260_v17 = vadd.f32 %v7845_v49, %v2997_v9  ;;  %v3388_v44 = vadd.f32 %v7845_v49, %v3125_v20 }
 0x20a   : > { %v5418_v56 = vpack.c.bf16 %v3257_v39, %v3257_v39  ;;  %v5546_v1 = vpack.c.bf16 %v3385_v43, %v3385_v43  ;;  %v3258_v15 = vadd.f32 %v7845_v49, %v2995_v2  ;;  %v3386_v58 = vadd.f32 %v7845_v49, %v3123_v8 }
 0x20b   : > { %4540 = vst.msk [vmem:[%s6749_s9 + $0x158] sm:$0xf] %vm4453_vm2, %v5420_v32  ;;  %4668 = vst.msk [vmem:[%s6749_s9 + $0x358] sm:$0xf] %vm4453_vm2, %v5548_v27  ;;  %v5421_v0 = vpack.c.bf16 %v3260_v17, %v3260_v17  ;;  %v5549_v48 = vpack.c.bf16 %v3388_v44, %v3388_v44  ;;  %v1985_v9 = vadd.f32 %v7807_v33, %v7838_v57 }
 0x20c   : > { %v2497_v20 = vadd.f32 %v7807_v33, %v7840_v38  ;;  %4538 = vst.msk [vmem:[%s6749_s9 + $0x150] sm:$0xf] %vm4453_vm2, %v5418_v56  ;;  %4666 = vst.msk [vmem:[%s6749_s9 + $0x350] sm:$0xf] %vm4453_vm2, %v5546_v1  ;;  %v5419_v39 = vpack.c.bf16 %v3258_v15, %v3258_v15  ;;  %v5547_v43 = vpack.c.bf16 %v3386_v58, %v3386_v58  ;;  %v8175_v17 = vpop.f32.mrb[112].mxu0  ;;  %v8177_v44 = vpop.f32.mrb[112].mxu1 }
 0x20d   : > { %v1977_v2 = vadd.f32 %v7807_v33, %v7851_v35  ;;  %v2489_v8 = vadd.f32 %v7807_v33, %v7853_v47  ;;  %4541 = vst.msk [vmem:[%s6749_s9 + $0x15c] sm:$0xf] %vm4453_vm2, %v5421_v0  ;;  %4669 = vst.msk [vmem:[%s6749_s9 + $0x35c] sm:$0xf] %vm4453_vm2, %v5549_v48  ;;  %v2737_v57 = vmax.f32 %v1985_v9, 0.0  ;;  %v1988_v38 = vadd.f32 %v7807_v33, %v7859_v60  ;;  %v8181_v0 = vpop.f32.mrb[113].mxu0 }
 0x20e   : > { %v2865_v32 = vmax.f32 %v2497_v20, 0.0  ;;  %v2500_v56 = vadd.f32 %v7807_v33, %v7861_v61  ;;  %4539 = vst.msk [vmem:[%s6749_s9 + $0x154] sm:$0xf] %vm4453_vm2, %v5419_v39  ;;  %4667 = vst.msk [vmem:[%s6749_s9 + $0x354] sm:$0xf] %vm4453_vm2, %v5547_v43  ;;  %v1980_v47 = vadd.f32 %v7807_v33, %v7865_v5  ;;  %v2492_v27 = vadd.f32 %v7807_v33, %v7867_v45  ;;  %v8183_v48 = vpop.f32.mrb[113].mxu1 }
 0x20f   : > { %v2735_v35 = vmax.f32 %v1977_v2, 0.0  ;;  %v2863_v58 = vmax.f32 %v2489_v8, 0.0  ;;  %v3000_v60 = vmul.f32 %v7832_v30, %v2737_v57  ;;  %v2738_v1 = vmax.f32 %v1988_v38, 0.0  ;;  %v8187_v39 = vpop.f32.mrb[114].mxu0  ;;  %v8189_v43 = vpop.f32.mrb[114].mxu1 }
 0x210   : > { %v3128_v61 = vmul.f32 %v7832_v30, %v2865_v32  ;;  %v2866_v15 = vmax.f32 %v2500_v56, 0.0  ;;  %v2736_v20 = vmax.f32 %v1980_v47, 0.0  ;;  %v2864_v45 = vmax.f32 %v2492_v27, 0.0  ;;  %8783 = vst [vmem:[#allocation11_spill] sm:$0xff] %v8189_v43  ;;  %v8195_v38 = vpop.f32.mrb[115].mxu0  ;;  %v8197_v56 = vpop.f32.mrb[115].mxu1 }
 0x211   : > { %v2998_v9 = vmul.f32 %v7832_v30, %v2735_v35  ;;  %v3126_v5 = vmul.f32 %v7832_v30, %v2863_v58  ;;  %v3263_v2 = vadd.f32 %v7845_v49, %v3000_v60  ;;  %v3001_v57 = vmul.f32 %v7832_v30, %v2738_v1  ;;  %8784 = vst [vmem:[#allocation12_spill] sm:$0xff] %v8195_v38 }
 0x212   : > { %v3391_v8 = vadd.f32 %v7845_v49, %v3128_v61  ;;  %v3129_v32 = vmul.f32 %v7832_v30, %v2866_v15  ;;  %8785 = vst [vmem:[#allocation13_spill] sm:$0xff] %v8197_v56  ;;  %v2999_v47 = vmul.f32 %v7832_v30, %v2736_v20  ;;  %v3127_v27 = vmul.f32 %v7832_v30, %v2864_v45 }
 0x213   : > { %v3261_v35 = vadd.f32 %v7845_v49, %v2998_v9  ;;  %v3389_v58 = vadd.f32 %v7845_v49, %v3126_v5  ;;  %v5424_v60 = vpack.c.bf16 %v3263_v2, %v3263_v2  ;;  %v3264_v1 = vadd.f32 %v7845_v49, %v3001_v57 }
 0x214   : > { %v5552_v61 = vpack.c.bf16 %v3391_v8, %v3391_v8  ;;  %v3392_v15 = vadd.f32 %v7845_v49, %v3129_v32  ;;  %v3262_v56 = vadd.f32 %v7845_v49, %v2999_v47  ;;  %v3390_v9 = vadd.f32 %v7845_v49, %v3127_v27 }
 0x215   : > { %v5422_v43 = vpack.c.bf16 %v3261_v35, %v3261_v35  ;;  %v5550_v38 = vpack.c.bf16 %v3389_v58, %v3389_v58  ;;  %4544 = vst.msk [vmem:[%s6749_s9 + $0x168] sm:$0xf] %vm4453_vm2, %v5424_v60  ;;  %v5425_v5 = vpack.c.bf16 %v3264_v1, %v3264_v1  ;;  %v2001_v45 = vadd.f32 %v7807_v33, %v7903_v46  ;;  %v8223_v58 = vpop.f32.mrb[116].mxu0 }
 0x216   : > { %4672 = vst.msk [vmem:[%s6749_s9 + $0x368] sm:$0xf] %vm4453_vm2, %v5552_v61  ;;  %v5553_v20 = vpack.c.bf16 %v3392_v15, %v3392_v15  ;;  %v2513_v2 = vadd.f32 %v7807_v33, %v7905_v54  ;;  %v5423_v8 = vpack.c.bf16 %v3262_v56, %v3262_v56  ;;  %v5551_v57 = vpack.c.bf16 %v3390_v9, %v3390_v9  ;;  %v8233_v56 = vpop.f32.mrb[116].mxu1 }
 0x217   : > { %4542 = vst.msk [vmem:[%s6749_s9 + $0x160] sm:$0xf] %vm4453_vm2, %v5422_v43  ;;  %4670 = vst.msk [vmem:[%s6749_s9 + $0x360] sm:$0xf] %vm4453_vm2, %v5550_v38  ;;  %v1993_v32 = vadd.f32 %v7807_v33, %v7909_v13  ;;  %v2505_v35 = vadd.f32 %v7807_v33, %v7911_v14  ;;  %v2741_v46 = vmax.f32 %v2001_v45, 0.0  ;;  %v2004_v43 = vadd.f32 %v7807_v33, %v7915_v63  ;;  %v8235_v13 = vpop.f32.mrb[117].mxu0 }
 0x218   : > { %4545 = vst.msk [vmem:[%s6749_s9 + $0x16c] sm:$0xf] %vm4453_vm2, %v5425_v5  ;;  %4673 = vst.msk [vmem:[%s6749_s9 + $0x36c] sm:$0xf] %vm4453_vm2, %v5553_v20  ;;  %v2869_v54 = vmax.f32 %v2513_v2, 0.0  ;;  %v2516_v38 = vadd.f32 %v7807_v33, %v7917_v16  ;;  %v1996_v27 = vadd.f32 %v7807_v33, %v7923_v55  ;;  %v2508_v60 = vadd.f32 %v7807_v33, %v7925_v34  ;;  %v8245_v63 = vpop.f32.mrb[117].mxu1 }
 0x219   : > { %4543 = vst.msk [vmem:[%s6749_s9 + $0x164] sm:$0xf] %vm4453_vm2, %v5423_v8  ;;  %4671 = vst.msk [vmem:[%s6749_s9 + $0x364] sm:$0xf] %vm4453_vm2, %v5551_v57  ;;  %v2739_v14 = vmax.f32 %v1993_v32, 0.0  ;;  %v2867_v47 = vmax.f32 %v2505_v35, 0.0  ;;  %v3004_v16 = vmul.f32 %v7832_v30, %v2741_v46 }
 0x21a   : > { %v8247_v61 = vpop.f32.mrb[118].mxu0  ;;  %v3132_v1 = vmul.f32 %v7832_v30, %v2869_v54  ;;  %v2742_v15 = vmax.f32 %v2004_v43, 0.0  ;;  %v2870_v9 = vmax.f32 %v2516_v38, 0.0  ;;  %v8251_v5 = vpop.f32.mrb[118].mxu1  ;;  %v2740_v2 = vmax.f32 %v1996_v27, 0.0 }
 0x21b   : > { %v8253_v20 = vpop.f32.mrb[119].mxu0  ;;  %v3002_v45 = vmul.f32 %v7832_v30, %v2739_v14  ;;  %v3130_v55 = vmul.f32 %v7832_v30, %v2867_v47  ;;  %v2868_v34 = vmax.f32 %v2508_v60, 0.0  ;;  %v8257_v8 = vpop.f32.mrb[119].mxu1  ;;  %v3267_v57 = vadd.f32 %v7845_v49, %v3004_v16 }
 0x21c   : > { %8786 = vst [vmem:[#allocation14_spill] sm:$0xff] %v8257_v8  ;;  %v3395_v32 = vadd.f32 %v7845_v49, %v3132_v1  ;;  %v3005_v35 = vmul.f32 %v7832_v30, %v2742_v15  ;;  %v3133_v46 = vmul.f32 %v7832_v30, %v2870_v9  ;;  %v3003_v38 = vmul.f32 %v7832_v30, %v2740_v2  ;;  %v8271_v8 = vpop.f32.mrb[120].mxu0 }
 0x21d   : > { %v3265_v54 = vadd.f32 %v7845_v49, %v3002_v45  ;;  %v3393_v43 = vadd.f32 %v7845_v49, %v3130_v55  ;;  %v3131_v14 = vmul.f32 %v7832_v30, %v2868_v34  ;;  %v5428_v47 = vpack.c.bf16 %v3267_v57, %v3267_v57 }
 0x21e   : > { %v5556_v27 = vpack.c.bf16 %v3395_v32, %v3395_v32  ;;  %v3268_v60 = vadd.f32 %v7845_v49, %v3005_v35  ;;  %v3396_v16 = vadd.f32 %v7845_v49, %v3133_v46  ;;  %v3266_v9 = vadd.f32 %v7845_v49, %v3003_v38  ;;  %v8281_v32 = vpop.f32.mrb[120].mxu1  ;;  %v8283_v35 = vpop.f32.mrb[121].mxu0 }
 0x21f   : > { %v5426_v1 = vpack.c.bf16 %v3265_v54, %v3265_v54  ;;  %v5554_v15 = vpack.c.bf16 %v3393_v43, %v3393_v43  ;;  %v3394_v45 = vadd.f32 %v7845_v49, %v3131_v14  ;;  %4548 = vst.msk [vmem:[%s6749_s9 + $0x178] sm:$0xf] %vm4453_vm2, %v5428_v47  ;;  %v2017_v34 = vadd.f32 %v7807_v33, %v7951_v31  ;;  %v8293_v38 = vpop.f32.mrb[121].mxu1 }
 0x220   : > { %4676 = vst.msk [vmem:[%s6749_s9 + $0x378] sm:$0xf] %vm4453_vm2, %v5556_v27  ;;  %v5429_v55 = vpack.c.bf16 %v3268_v60, %v3268_v60  ;;  %v5557_v2 = vpack.c.bf16 %v3396_v16, %v3396_v16  ;;  %v2529_v57 = vadd.f32 %v7807_v33, %v7953_v4  ;;  %v5427_v46 = vpack.c.bf16 %v3266_v9, %v3266_v9  ;;  %v8295_v4 = vpop.f32.mrb[122].mxu0 }
 0x221   : > { %4546 = vst.msk [vmem:[%s6749_s9 + $0x170] sm:$0xf] %vm4453_vm2, %v5426_v1  ;;  %4674 = vst.msk [vmem:[%s6749_s9 + $0x370] sm:$0xf] %vm4453_vm2, %v5554_v15  ;;  %v5555_v54 = vpack.c.bf16 %v3394_v45, %v3394_v45  ;;  %v2009_v43 = vadd.f32 %v7807_v33, %v7963_v62  ;;  %v2521_v31 = vadd.f32 %v7807_v33, %v7965_v29  ;;  %v2745_v14 = vmax.f32 %v2017_v34, 0.0  ;;  %v8305_v62 = vpop.f32.mrb[122].mxu1 }
 0x222   : > { %4549 = vst.msk [vmem:[%s6749_s9 + $0x17c] sm:$0xf] %vm4453_vm2, %v5429_v55  ;;  %4677 = vst.msk [vmem:[%s6749_s9 + $0x37c] sm:$0xf] %vm4453_vm2, %v5557_v2  ;;  %v2873_v47 = vmax.f32 %v2529_v57, 0.0  ;;  %v2020_v27 = vadd.f32 %v7807_v33, %v7975_v25  ;;  %v2532_v60 = vadd.f32 %v7807_v33, %v7977_v53  ;;  %v8307_v16 = vpop.f32.mrb[123].mxu0  ;;  %v2012_v15 = vadd.f32 %v7807_v33, %v7981_v22 }
 0x223   : > { %4547 = vst.msk [vmem:[%s6749_s9 + $0x174] sm:$0xf] %vm4453_vm2, %v5427_v46  ;;  %4675 = vst.msk [vmem:[%s6749_s9 + $0x374] sm:$0xf] %vm4453_vm2, %v5555_v54  ;;  %v2743_v29 = vmax.f32 %v2009_v43, 0.0  ;;  %v2871_v1 = vmax.f32 %v2521_v31, 0.0  ;;  %v2524_v9 = vadd.f32 %v7807_v33, %v7983_v37  ;;  %v3008_v53 = vmul.f32 %v7832_v30, %v2745_v14 }
 0x224   : > { %v8317_v25 = vpop.f32.mrb[123].mxu1  ;;  %v3136_v45 = vmul.f32 %v7832_v30, %v2873_v47  ;;  %v2746_v55 = vmax.f32 %v2020_v27, 0.0  ;;  %v2874_v2 = vmax.f32 %v2532_v60, 0.0  ;;  %v2744_v46 = vmax.f32 %v2012_v15, 0.0 }
 0x225   : > { %v3006_v34 = vmul.f32 %v7832_v30, %v2743_v29  ;;  %v3134_v57 = vmul.f32 %v7832_v30, %v2871_v1  ;;  %v2872_v54 = vmax.f32 %v2524_v9, 0.0  ;;  %v3271_v43 = vadd.f32 %v7845_v49, %v3008_v53  ;;  %v8331_v29 = vpop.f32.mrb[124].mxu0 }
 0x226   : > { %v3399_v22 = vadd.f32 %v7845_v49, %v3136_v45  ;;  %v3009_v37 = vmul.f32 %v7832_v30, %v2746_v55  ;;  %v3137_v31 = vmul.f32 %v7832_v30, %v2874_v2  ;;  %v3007_v27 = vmul.f32 %v7832_v30, %v2744_v46  ;;  %v8335_v45 = vpop.f32.mrb[124].mxu1  ;;  %v8337_v55 = vpop.f32.mrb[125].mxu0 }
 0x227   : > { %v3269_v14 = vadd.f32 %v7845_v49, %v3006_v34  ;;  %v3397_v47 = vadd.f32 %v7845_v49, %v3134_v57  ;;  %v3135_v60 = vmul.f32 %v7832_v30, %v2872_v54  ;;  %v5432_v1 = vpack.c.bf16 %v3271_v43, %v3271_v43  ;;  %v8341_v54 = vpop.f32.mrb[125].mxu1  ;;  %v8343_v43 = vpop.f32.mrb[126].mxu0 }
 0x228   : > { %v5560_v15 = vpack.c.bf16 %v3399_v22, %v3399_v22  ;;  %v3272_v9 = vadd.f32 %v7845_v49, %v3009_v37  ;;  %v3400_v53 = vadd.f32 %v7845_v49, %v3137_v31  ;;  %v3270_v57 = vadd.f32 %v7845_v49, %v3007_v27  ;;  %v8355_v27 = vpop.f32.mrb[127].mxu0 }
 0x229   : > { %v5430_v2 = vpack.c.bf16 %v3269_v14, %v3269_v14  ;;  %v5558_v34 = vpack.c.bf16 %v3397_v47, %v3397_v47  ;;  %v3398_v46 = vadd.f32 %v7845_v49, %v3135_v60  ;;  %4552 = vst.msk [vmem:[%s6749_s9 + $0x188] sm:$0xf] %vm4453_vm2, %v5432_v1  ;;  %v2033_v31 = vadd.f32 %v7807_v33, %v7999_v3  ;;  %v8353_v47 = vpop.f32.mrb[126].mxu1 }
 0x22a   : > { %4680 = vst.msk [vmem:[%s6749_s9 + $0x388] sm:$0xf] %vm4453_vm2, %v5560_v15  ;;  %v5433_v22 = vpack.c.bf16 %v3272_v9, %v3272_v9  ;;  %v5561_v37 = vpack.c.bf16 %v3400_v53, %v3400_v53  ;;  %v2545_v14 = vadd.f32 %v7807_v33, %v8001_v7  ;;  %v5431_v60 = vpack.c.bf16 %v3270_v57, %v3270_v57  ;;  %v8365_v9 = vpop.f32.mrb[127].mxu1 }
 0x22b   : > { %4550 = vst.msk [vmem:[%s6749_s9 + $0x180] sm:$0xf] %vm4453_vm2, %v5430_v2  ;;  %4678 = vst.msk [vmem:[%s6749_s9 + $0x380] sm:$0xf] %vm4453_vm2, %v5558_v34  ;;  %v5559_v1 = vpack.c.bf16 %v3398_v46, %v3398_v46  ;;  %v2025_v15 = vadd.f32 %v7807_v33, %v8011_v6  ;;  %v2537_v3 = vadd.f32 %v7807_v33, %v8013_v40  ;;  %v2749_v7 = vmax.f32 %v2033_v31, 0.0 }
 0x22c   : > { %4553 = vst.msk [vmem:[%s6749_s9 + $0x18c] sm:$0xf] %vm4453_vm2, %v5433_v22  ;;  %4681 = vst.msk [vmem:[%s6749_s9 + $0x38c] sm:$0xf] %vm4453_vm2, %v5561_v37  ;;  %v2877_v53 = vmax.f32 %v2545_v14, 0.0  ;;  %v2036_v2 = vadd.f32 %v7807_v33, %v8023_v12  ;;  %v2548_v34 = vadd.f32 %v7807_v33, %v8025_v18  ;;  %v2028_v57 = vadd.f32 %v7807_v33, %v8035_v28 }
 0x22d   : > { %4551 = vst.msk [vmem:[%s6749_s9 + $0x184] sm:$0xf] %vm4453_vm2, %v5431_v60  ;;  %4679 = vst.msk [vmem:[%s6749_s9 + $0x384] sm:$0xf] %vm4453_vm2, %v5559_v1  ;;  %v2747_v6 = vmax.f32 %v2025_v15, 0.0  ;;  %v2875_v40 = vmax.f32 %v2537_v3, 0.0  ;;  %v2540_v46 = vadd.f32 %v7807_v33, %v8037_v11  ;;  %v3012_v22 = vmul.f32 %v7832_v30, %v2749_v7 }
 0x22e   : > { %v3140_v37 = vmul.f32 %v7832_v30, %v2877_v53  ;;  %v2750_v12 = vmax.f32 %v2036_v2, 0.0  ;;  %v2878_v31 = vmax.f32 %v2548_v34, 0.0  ;;  %v2748_v60 = vmax.f32 %v2028_v57, 0.0 }
 0x22f   : > { %v3010_v18 = vmul.f32 %v7832_v30, %v2747_v6  ;;  %v3138_v14 = vmul.f32 %v7832_v30, %v2875_v40  ;;  %v2876_v1 = vmax.f32 %v2540_v46, 0.0  ;;  %v3275_v15 = vadd.f32 %v7845_v49, %v3012_v22 }
 0x230   : > { %v3403_v28 = vadd.f32 %v7845_v49, %v3140_v37  ;;  %v3013_v11 = vmul.f32 %v7832_v30, %v2750_v12  ;;  %v3141_v3 = vmul.f32 %v7832_v30, %v2878_v31  ;;  %v3011_v2 = vmul.f32 %v7832_v30, %v2748_v60 }
 0x231   : > { %v3273_v7 = vadd.f32 %v7845_v49, %v3010_v18  ;;  %v3401_v53 = vadd.f32 %v7845_v49, %v3138_v14  ;;  %v3139_v34 = vmul.f32 %v7832_v30, %v2876_v1  ;;  %v5436_v6 = vpack.c.bf16 %v3275_v15, %v3275_v15 }
 0x232   : > { %v5564_v40 = vpack.c.bf16 %v3403_v28, %v3403_v28  ;;  %v3276_v57 = vadd.f32 %v7845_v49, %v3013_v11  ;;  %v3404_v46 = vadd.f32 %v7845_v49, %v3141_v3  ;;  %v3274_v12 = vadd.f32 %v7845_v49, %v3011_v2  ;;  %v8414_v28 = vld [vmem:[%s8770_s2] ss:$0 sm:$0xff] }
 0x233   : > { %v5434_v22 = vpack.c.bf16 %v3273_v7, %v3273_v7  ;;  %v5562_v37 = vpack.c.bf16 %v3401_v53, %v3401_v53  ;;  %v3402_v31 = vadd.f32 %v7845_v49, %v3139_v34  ;;  %4556 = vst.msk [vmem:[%s6749_s9 + $0x198] sm:$0xf] %vm4453_vm2, %v5436_v6  ;;  %v2049_v14 = vadd.f32 %v7807_v33, %v8059_v19  ;;  %v8439_v34 = vld [vmem:[%s8771_s3] ss:$0 sm:$0xff] }
 0x234   : > { %4684 = vst.msk [vmem:[%s6749_s9 + $0x398] sm:$0xf] %vm4453_vm2, %v5564_v40  ;;  %v5437_v30 = vpack.c.bf16 %v3276_v57, %v3276_v57  ;;  %v5565_v18 = vpack.c.bf16 %v3404_v46, %v3404_v46  ;;  %v2561_v60 = vadd.f32 %v7807_v33, %v8061_v21  ;;  %v5435_v1 = vpack.c.bf16 %v3274_v12, %v3274_v12 }
 0x235   : > { %4554 = vst.msk [vmem:[%s6749_s9 + $0x190] sm:$0xf] %vm4453_vm2, %v5434_v22  ;;  %4682 = vst.msk [vmem:[%s6749_s9 + $0x390] sm:$0xf] %vm4453_vm2, %v5562_v37  ;;  %v5563_v15 = vpack.c.bf16 %v3402_v31, %v3402_v31  ;;  %v2041_v11 = vadd.f32 %v8414_v28, %v8065_v10  ;;  %v2553_v19 = vadd.f32 %v8414_v28, %v8067_v42  ;;  %v2753_v33 = vmax.f32 %v2049_v14, 0.0 }
 0x236   : > { %4557 = vst.msk [vmem:[%s6749_s9 + $0x19c] sm:$0xf] %vm4453_vm2, %v5437_v30  ;;  %4685 = vst.msk [vmem:[%s6749_s9 + $0x39c] sm:$0xf] %vm4453_vm2, %v5565_v18  ;;  %v2881_v21 = vmax.f32 %v2561_v60, 0.0  ;;  %v2052_v3 = vadd.f32 %v8414_v28, %v8071_v41  ;;  %v2564_v7 = vadd.f32 %v8414_v28, %v8073_v24  ;;  %v2044_v42 = vadd.f32 %v8414_v28, %v8083_v59 }
 0x237   : > { %4555 = vst.msk [vmem:[%s6749_s9 + $0x194] sm:$0xf] %vm4453_vm2, %v5435_v1  ;;  %4683 = vst.msk [vmem:[%s6749_s9 + $0x394] sm:$0xf] %vm4453_vm2, %v5563_v15  ;;  %v2751_v10 = vmax.f32 %v2041_v11, 0.0  ;;  %v2879_v53 = vmax.f32 %v2553_v19, 0.0  ;;  %v2556_v2 = vadd.f32 %v8414_v28, %v8085_v26  ;;  %v3016_v41 = vmul.f32 %v8439_v34, %v2753_v33 }
 0x238   : > { %v3144_v24 = vmul.f32 %v8439_v34, %v2881_v21  ;;  %v2754_v6 = vmax.f32 %v2052_v3, 0.0  ;;  %v2882_v40 = vmax.f32 %v2564_v7, 0.0  ;;  %v2752_v22 = vmax.f32 %v2044_v42, 0.0  ;;  %v8452_v30 = vld [vmem:[%s8772_s4] ss:$0 sm:$0xff] }
 0x239   : > { %v3014_v57 = vmul.f32 %v8439_v34, %v2751_v10  ;;  %v3142_v46 = vmul.f32 %v8439_v34, %v2879_v53  ;;  %v2880_v59 = vmax.f32 %v2556_v2, 0.0  ;;  %v3279_v37 = vadd.f32 %v7845_v49, %v3016_v41 }
 0x23a   : > { %v3407_v26 = vadd.f32 %v7845_v49, %v3144_v24  ;;  %v3017_v12 = vmul.f32 %v8439_v34, %v2754_v6  ;;  %v3145_v31 = vmul.f32 %v8439_v34, %v2882_v40  ;;  %v3015_v60 = vmul.f32 %v8439_v34, %v2752_v22  ;;  %v8787_v6 = vld [vmem:[#allocation8_spill] sm:$0xff] }
 0x23b   : > { %v3277_v18 = vadd.f32 %v8452_v30, %v3014_v57  ;;  %v3405_v14 = vadd.f32 %v8452_v30, %v3142_v46  ;;  %v3143_v49 = vmul.f32 %v8439_v34, %v2880_v59  ;;  %v5440_v1 = vpack.c.bf16 %v3279_v37, %v3279_v37  ;;  %v8788_v57 = vld [vmem:[#allocation9_spill] sm:$0xff]  ;;  %v8789_v59 = vld [vmem:[#allocation10_spill] sm:$0xff] }
 0x23c   : > { %v5568_v15 = vpack.c.bf16 %v3407_v26, %v3407_v26  ;;  %v3280_v11 = vadd.f32 %v8452_v30, %v3017_v12  ;;  %v3408_v19 = vadd.f32 %v8452_v30, %v3145_v31  ;;  %v3278_v3 = vadd.f32 %v8452_v30, %v3015_v60 }
 0x23d   : > { %v5438_v33 = vpack.c.bf16 %v3277_v18, %v3277_v18  ;;  %v5566_v21 = vpack.c.bf16 %v3405_v14, %v3405_v14  ;;  %v3406_v7 = vadd.f32 %v8452_v30, %v3143_v49  ;;  %4560 = vst.msk [vmem:[%s6749_s9 + $0x1a8] sm:$0xf] %vm4453_vm2, %v5440_v1  ;;  %v2065_v42 = vadd.f32 %v8414_v28, %v8115_v52 }
 0x23e   : > { %4688 = vst.msk [vmem:[%s6749_s9 + $0x3a8] sm:$0xf] %vm4453_vm2, %v5568_v15  ;;  %v5441_v10 = vpack.c.bf16 %v3280_v11, %v3280_v11  ;;  %v5569_v53 = vpack.c.bf16 %v3408_v19, %v3408_v19  ;;  %v2577_v2 = vadd.f32 %v8414_v28, %v8117_v50  ;;  %v5439_v41 = vpack.c.bf16 %v3278_v3, %v3278_v3 }
 0x23f   : > { %4558 = vst.msk [vmem:[%s6749_s9 + $0x1a0] sm:$0xf] %vm4453_vm2, %v5438_v33  ;;  %4686 = vst.msk [vmem:[%s6749_s9 + $0x3a0] sm:$0xf] %vm4453_vm2, %v5566_v21  ;;  %v5567_v24 = vpack.c.bf16 %v3406_v7, %v3406_v7  ;;  %v2057_v40 = vadd.f32 %v8414_v28, %v8787_v6  ;;  %v2569_v46 = vadd.f32 %v8414_v28, %v8788_v57  ;;  %v2757_v52 = vmax.f32 %v2065_v42, 0.0 }
 0x240   : > { %4561 = vst.msk [vmem:[%s6749_s9 + $0x1ac] sm:$0xf] %vm4453_vm2, %v5441_v10  ;;  %4689 = vst.msk [vmem:[%s6749_s9 + $0x3ac] sm:$0xf] %vm4453_vm2, %v5569_v53  ;;  %v2885_v22 = vmax.f32 %v2577_v2, 0.0  ;;  %v2068_v50 = vadd.f32 %v8414_v28, %v8131_v23  ;;  %v2580_v37 = vadd.f32 %v8414_v28, %v8789_v59  ;;  %v2060_v31 = vadd.f32 %v8414_v28, %v8137_v36 }
 0x241   : > { %4559 = vst.msk [vmem:[%s6749_s9 + $0x1a4] sm:$0xf] %vm4453_vm2, %v5439_v41  ;;  %4687 = vst.msk [vmem:[%s6749_s9 + $0x3a4] sm:$0xf] %vm4453_vm2, %v5567_v24  ;;  %v2755_v26 = vmax.f32 %v2057_v40, 0.0  ;;  %v2883_v12 = vmax.f32 %v2569_v46, 0.0  ;;  %v2572_v18 = vadd.f32 %v8414_v28, %v8139_v51  ;;  %v3020_v14 = vmul.f32 %v8439_v34, %v2757_v52 }
 0x242   : > { %v3148_v60 = vmul.f32 %v8439_v34, %v2885_v22  ;;  %v2758_v23 = vmax.f32 %v2068_v50, 0.0  ;;  %v2886_v49 = vmax.f32 %v2580_v37, 0.0  ;;  %v2756_v11 = vmax.f32 %v2060_v31, 0.0 }
 0x243   : > { %v3018_v1 = vmul.f32 %v8439_v34, %v2755_v26  ;;  %v3146_v15 = vmul.f32 %v8439_v34, %v2883_v12  ;;  %v2884_v19 = vmax.f32 %v2572_v18, 0.0  ;;  %v3283_v33 = vadd.f32 %v8452_v30, %v3020_v14  ;;  %v8790_v14 = vld [vmem:[#allocation11_spill] sm:$0xff] }
 0x244   : > { %v3411_v36 = vadd.f32 %v8452_v30, %v3148_v60  ;;  %v3021_v51 = vmul.f32 %v8439_v34, %v2758_v23  ;;  %v3149_v21 = vmul.f32 %v8439_v34, %v2886_v49  ;;  %v3019_v10 = vmul.f32 %v8439_v34, %v2756_v11  ;;  %v8791_v49 = vld [vmem:[#allocation12_spill] sm:$0xff] }
 0x245   : > { %v3281_v3 = vadd.f32 %v8452_v30, %v3018_v1  ;;  %v3409_v7 = vadd.f32 %v8452_v30, %v3146_v15  ;;  %v3147_v53 = vmul.f32 %v8439_v34, %v2884_v19  ;;  %v5444_v42 = vpack.c.bf16 %v3283_v33, %v3283_v33  ;;  %v8792_v1 = vld [vmem:[#allocation13_spill] sm:$0xff] }
 0x246   : > { %v5572_v2 = vpack.c.bf16 %v3411_v36, %v3411_v36  ;;  %v3284_v41 = vadd.f32 %v8452_v30, %v3021_v51  ;;  %v3412_v24 = vadd.f32 %v8452_v30, %v3149_v21  ;;  %v3282_v57 = vadd.f32 %v8452_v30, %v3019_v10 }
 0x247   : > { %v5442_v6 = vpack.c.bf16 %v3281_v3, %v3281_v3  ;;  %v5570_v40 = vpack.c.bf16 %v3409_v7, %v3409_v7  ;;  %v3410_v46 = vadd.f32 %v8452_v30, %v3147_v53  ;;  %4564 = vst.msk [vmem:[%s6749_s9 + $0x1b8] sm:$0xf] %vm4453_vm2, %v5444_v42  ;;  %v2081_v50 = vadd.f32 %v8414_v28, %v8175_v17 }
 0x248   : > { %4692 = vst.msk [vmem:[%s6749_s9 + $0x3b8] sm:$0xf] %vm4453_vm2, %v5572_v2  ;;  %v5445_v52 = vpack.c.bf16 %v3284_v41, %v3284_v41  ;;  %v5573_v22 = vpack.c.bf16 %v3412_v24, %v3412_v24  ;;  %v2593_v59 = vadd.f32 %v8414_v28, %v8177_v44  ;;  %v5443_v37 = vpack.c.bf16 %v3282_v57, %v3282_v57 }
 0x249   : > { %4562 = vst.msk [vmem:[%s6749_s9 + $0x1b0] sm:$0xf] %vm4453_vm2, %v5442_v6  ;;  %4690 = vst.msk [vmem:[%s6749_s9 + $0x3b0] sm:$0xf] %vm4453_vm2, %v5570_v40  ;;  %v5571_v26 = vpack.c.bf16 %v3410_v46, %v3410_v46  ;;  %v2073_v12 = vadd.f32 %v8414_v28, %v8181_v0  ;;  %v2585_v31 = vadd.f32 %v8414_v28, %v8183_v48  ;;  %v2761_v17 = vmax.f32 %v2081_v50, 0.0 }
 0x24a   : > { %4565 = vst.msk [vmem:[%s6749_s9 + $0x1bc] sm:$0xf] %vm4453_vm2, %v5445_v52  ;;  %4693 = vst.msk [vmem:[%s6749_s9 + $0x3bc] sm:$0xf] %vm4453_vm2, %v5573_v22  ;;  %v2889_v18 = vmax.f32 %v2593_v59, 0.0  ;;  %v2084_v44 = vadd.f32 %v8414_v28, %v8187_v39  ;;  %v2596_v60 = vadd.f32 %v8414_v28, %v8790_v14  ;;  %v2076_v48 = vadd.f32 %v8414_v28, %v8791_v49 }
 0x24b   : > { %4563 = vst.msk [vmem:[%s6749_s9 + $0x1b4] sm:$0xf] %vm4453_vm2, %v5443_v37  ;;  %4691 = vst.msk [vmem:[%s6749_s9 + $0x3b4] sm:$0xf] %vm4453_vm2, %v5571_v26  ;;  %v2759_v0 = vmax.f32 %v2073_v12, 0.0  ;;  %v2887_v23 = vmax.f32 %v2585_v31, 0.0  ;;  %v2588_v15 = vadd.f32 %v8414_v28, %v8792_v1  ;;  %v3024_v11 = vmul.f32 %v8439_v34, %v2761_v17 }
 0x24c   : > { %v3152_v19 = vmul.f32 %v8439_v34, %v2889_v18  ;;  %v2762_v39 = vmax.f32 %v2084_v44, 0.0  ;;  %v2890_v33 = vmax.f32 %v2596_v60, 0.0  ;;  %v2760_v21 = vmax.f32 %v2076_v48, 0.0  ;;  %v8793_v48 = vld [vmem:[#allocation14_spill] sm:$0xff] }
 0x24d   : > { %v3022_v36 = vmul.f32 %v8439_v34, %v2759_v0  ;;  %v3150_v51 = vmul.f32 %v8439_v34, %v2887_v23  ;;  %v2888_v3 = vmax.f32 %v2588_v15, 0.0  ;;  %v3287_v7 = vadd.f32 %v8452_v30, %v3024_v11 }
 0x24e   : > { %v3415_v10 = vadd.f32 %v8452_v30, %v3152_v19  ;;  %v3025_v53 = vmul.f32 %v8439_v34, %v2762_v39  ;;  %v3153_v42 = vmul.f32 %v8439_v34, %v2890_v33  ;;  %v3023_v24 = vmul.f32 %v8439_v34, %v2760_v21 }
 0x24f   : > { %v3285_v2 = vadd.f32 %v8452_v30, %v3022_v36  ;;  %v3413_v41 = vadd.f32 %v8452_v30, %v3150_v51  ;;  %v3151_v6 = vmul.f32 %v8439_v34, %v2888_v3  ;;  %v5448_v40 = vpack.c.bf16 %v3287_v7, %v3287_v7 }
 0x250   : > { %v5576_v57 = vpack.c.bf16 %v3415_v10, %v3415_v10  ;;  %v3288_v46 = vadd.f32 %v8452_v30, %v3025_v53  ;;  %v3416_v52 = vadd.f32 %v8452_v30, %v3153_v42  ;;  %v3286_v59 = vadd.f32 %v8452_v30, %v3023_v24 }
 0x251   : > { %v5446_v22 = vpack.c.bf16 %v3285_v2, %v3285_v2  ;;  %v5574_v50 = vpack.c.bf16 %v3413_v41, %v3413_v41  ;;  %v3414_v37 = vadd.f32 %v8452_v30, %v3151_v6  ;;  %4568 = vst.msk [vmem:[%s6749_s9 + $0x1c8] sm:$0xf] %vm4453_vm2, %v5448_v40  ;;  %v2097_v31 = vadd.f32 %v8414_v28, %v8223_v58 }
 0x252   : > { %4696 = vst.msk [vmem:[%s6749_s9 + $0x3c8] sm:$0xf] %vm4453_vm2, %v5576_v57  ;;  %v5449_v26 = vpack.c.bf16 %v3288_v46, %v3288_v46  ;;  %v5577_v12 = vpack.c.bf16 %v3416_v52, %v3416_v52  ;;  %v2609_v17 = vadd.f32 %v8414_v28, %v8233_v56  ;;  %v5447_v18 = vpack.c.bf16 %v3286_v59, %v3286_v59 }
 0x253   : > { %4566 = vst.msk [vmem:[%s6749_s9 + $0x1c0] sm:$0xf] %vm4453_vm2, %v5446_v22  ;;  %4694 = vst.msk [vmem:[%s6749_s9 + $0x3c0] sm:$0xf] %vm4453_vm2, %v5574_v50  ;;  %v5575_v44 = vpack.c.bf16 %v3414_v37, %v3414_v37  ;;  %v2089_v14 = vadd.f32 %v8414_v28, %v8235_v13  ;;  %v2601_v60 = vadd.f32 %v8414_v28, %v8245_v63  ;;  %v2765_v58 = vmax.f32 %v2097_v31, 0.0 }
 0x254   : > { %4569 = vst.msk [vmem:[%s6749_s9 + $0x1cc] sm:$0xf] %vm4453_vm2, %v5449_v26  ;;  %4697 = vst.msk [vmem:[%s6749_s9 + $0x3cc] sm:$0xf] %vm4453_vm2, %v5577_v12  ;;  %v2893_v0 = vmax.f32 %v2609_v17, 0.0  ;;  %v2100_v56 = vadd.f32 %v8414_v28, %v8247_v61  ;;  %v2612_v23 = vadd.f32 %v8414_v28, %v8251_v5  ;;  %v2092_v63 = vadd.f32 %v8414_v28, %v8253_v20 }
 0x255   : > { %4567 = vst.msk [vmem:[%s6749_s9 + $0x1c4] sm:$0xf] %vm4453_vm2, %v5447_v18  ;;  %4695 = vst.msk [vmem:[%s6749_s9 + $0x3c4] sm:$0xf] %vm4453_vm2, %v5575_v44  ;;  %v2763_v13 = vmax.f32 %v2089_v14, 0.0  ;;  %v2891_v49 = vmax.f32 %v2601_v60, 0.0  ;;  %v2604_v1 = vadd.f32 %v8414_v28, %v8793_v48  ;;  %v3028_v15 = vmul.f32 %v8439_v34, %v2765_v58 }
 0x256   : > { %v3156_v11 = vmul.f32 %v8439_v34, %v2893_v0  ;;  %v2766_v61 = vmax.f32 %v2100_v56, 0.0  ;;  %v2894_v19 = vmax.f32 %v2612_v23, 0.0  ;;  %v2764_v33 = vmax.f32 %v2092_v63, 0.0 }
 0x257   : > { %v3026_v5 = vmul.f32 %v8439_v34, %v2763_v13  ;;  %v3154_v39 = vmul.f32 %v8439_v34, %v2891_v49  ;;  %v2892_v36 = vmax.f32 %v2604_v1, 0.0  ;;  %v3291_v51 = vadd.f32 %v8452_v30, %v3028_v15 }
 0x258   : > { %v3419_v20 = vadd.f32 %v8452_v30, %v3156_v11  ;;  %v3029_v21 = vmul.f32 %v8439_v34, %v2766_v61  ;;  %v3157_v3 = vmul.f32 %v8439_v34, %v2894_v19  ;;  %v3027_v53 = vmul.f32 %v8439_v34, %v2764_v33 }
 0x259   : > { %v3289_v7 = vadd.f32 %v8452_v30, %v3026_v5  ;;  %v3417_v10 = vadd.f32 %v8452_v30, %v3154_v39  ;;  %v3155_v42 = vmul.f32 %v8439_v34, %v2892_v36  ;;  %v5452_v2 = vpack.c.bf16 %v3291_v51, %v3291_v51 }
 0x25a   : > { %v5580_v41 = vpack.c.bf16 %v3419_v20, %v3419_v20  ;;  %v3292_v24 = vadd.f32 %v8452_v30, %v3029_v21  ;;  %v3420_v6 = vadd.f32 %v8452_v30, %v3157_v3  ;;  %v3290_v46 = vadd.f32 %v8452_v30, %v3027_v53 }
 0x25b   : > { %v5450_v40 = vpack.c.bf16 %v3289_v7, %v3289_v7  ;;  %v5578_v57 = vpack.c.bf16 %v3417_v10, %v3417_v10  ;;  %v3418_v52 = vadd.f32 %v8452_v30, %v3155_v42  ;;  %4572 = vst.msk [vmem:[%s6749_s9 + $0x1d8] sm:$0xf] %vm4453_vm2, %v5452_v2  ;;  %v2113_v59 = vadd.f32 %v8414_v28, %v8271_v8 }
 0x25c   : > { %4700 = vst.msk [vmem:[%s6749_s9 + $0x3d8] sm:$0xf] %vm4453_vm2, %v5580_v41  ;;  %v5453_v22 = vpack.c.bf16 %v3292_v24, %v3292_v24  ;;  %v5581_v50 = vpack.c.bf16 %v3420_v6, %v3420_v6  ;;  %v2625_v37 = vadd.f32 %v8414_v28, %v8281_v32  ;;  %v5451_v26 = vpack.c.bf16 %v3290_v46, %v3290_v46 }
 0x25d   : > { %4570 = vst.msk [vmem:[%s6749_s9 + $0x1d0] sm:$0xf] %vm4453_vm2, %v5450_v40  ;;  %4698 = vst.msk [vmem:[%s6749_s9 + $0x3d0] sm:$0xf] %vm4453_vm2, %v5578_v57  ;;  %v5579_v12 = vpack.c.bf16 %v3418_v52, %v3418_v52  ;;  %v2105_v31 = vadd.f32 %v8414_v28, %v8283_v35  ;;  %v2617_v17 = vadd.f32 %v8414_v28, %v8293_v38  ;;  %v2769_v8 = vmax.f32 %v2113_v59, 0.0 }
 0x25e   : > { %4573 = vst.msk [vmem:[%s6749_s9 + $0x1dc] sm:$0xf] %vm4453_vm2, %v5453_v22  ;;  %4701 = vst.msk [vmem:[%s6749_s9 + $0x3dc] sm:$0xf] %vm4453_vm2, %v5581_v50  ;;  %v2897_v18 = vmax.f32 %v2625_v37, 0.0  ;;  %v2116_v32 = vadd.f32 %v8414_v28, %v8295_v4  ;;  %v2628_v44 = vadd.f32 %v8414_v28, %v8305_v62  ;;  %v2108_v38 = vadd.f32 %v8414_v28, %v8307_v16 }
 0x25f   : > { %4571 = vst.msk [vmem:[%s6749_s9 + $0x1d4] sm:$0xf] %vm4453_vm2, %v5451_v26  ;;  %4699 = vst.msk [vmem:[%s6749_s9 + $0x3d4] sm:$0xf] %vm4453_vm2, %v5579_v12  ;;  %v2767_v35 = vmax.f32 %v2105_v31, 0.0  ;;  %v2895_v14 = vmax.f32 %v2617_v17, 0.0  ;;  %v2620_v60 = vadd.f32 %v8414_v28, %v8317_v25  ;;  %v3032_v58 = vmul.f32 %v8439_v34, %v2769_v8 }
 0x260   : > { %v3160_v0 = vmul.f32 %v8439_v34, %v2897_v18  ;;  %v2770_v4 = vmax.f32 %v2116_v32, 0.0  ;;  %v2898_v56 = vmax.f32 %v2628_v44, 0.0  ;;  %v2768_v13 = vmax.f32 %v2108_v38, 0.0 }
 0x261   : > { %v3030_v62 = vmul.f32 %v8439_v34, %v2767_v35  ;;  %v3158_v23 = vmul.f32 %v8439_v34, %v2895_v14  ;;  %v2896_v49 = vmax.f32 %v2620_v60, 0.0  ;;  %v3295_v63 = vadd.f32 %v8452_v30, %v3032_v58 }
 0x262   : > { %v3423_v16 = vadd.f32 %v8452_v30, %v3160_v0  ;;  %v3033_v25 = vmul.f32 %v8439_v34, %v2770_v4  ;;  %v3161_v48 = vmul.f32 %v8439_v34, %v2898_v56  ;;  %v3031_v11 = vmul.f32 %v8439_v34, %v2768_v13 }
 0x263   : > { %v3293_v1 = vadd.f32 %v8452_v30, %v3030_v62  ;;  %v3421_v15 = vadd.f32 %v8452_v30, %v3158_v23  ;;  %v3159_v61 = vmul.f32 %v8439_v34, %v2896_v49  ;;  %v5456_v19 = vpack.c.bf16 %v3295_v63, %v3295_v63 }
 0x264   : > { %v5584_v5 = vpack.c.bf16 %v3423_v16, %v3423_v16  ;;  %v3296_v39 = vadd.f32 %v8452_v30, %v3033_v25  ;;  %v3424_v33 = vadd.f32 %v8452_v30, %v3161_v48  ;;  %v3294_v20 = vadd.f32 %v8452_v30, %v3031_v11 }
 0x265   : > { %v5454_v36 = vpack.c.bf16 %v3293_v1, %v3293_v1  ;;  %v5582_v51 = vpack.c.bf16 %v3421_v15, %v3421_v15  ;;  %v3422_v21 = vadd.f32 %v8452_v30, %v3159_v61  ;;  %4576 = vst.msk [vmem:[%s6749_s9 + $0x1e8] sm:$0xf] %vm4453_vm2, %v5456_v19  ;;  %v2129_v10 = vadd.f32 %v8414_v28, %v8331_v29 }
 0x266   : > { %4704 = vst.msk [vmem:[%s6749_s9 + $0x3e8] sm:$0xf] %vm4453_vm2, %v5584_v5  ;;  %v5457_v3 = vpack.c.bf16 %v3296_v39, %v3296_v39  ;;  %v5585_v7 = vpack.c.bf16 %v3424_v33, %v3424_v33  ;;  %v2641_v53 = vadd.f32 %v8414_v28, %v8335_v45  ;;  %v5455_v42 = vpack.c.bf16 %v3294_v20, %v3294_v20 }
 0x267   : > { %4574 = vst.msk [vmem:[%s6749_s9 + $0x1e0] sm:$0xf] %vm4453_vm2, %v5454_v36  ;;  %4702 = vst.msk [vmem:[%s6749_s9 + $0x3e0] sm:$0xf] %vm4453_vm2, %v5582_v51  ;;  %v5583_v2 = vpack.c.bf16 %v3422_v21, %v3422_v21  ;;  %v2121_v41 = vadd.f32 %v8414_v28, %v8337_v55  ;;  %v2633_v24 = vadd.f32 %v8414_v28, %v8341_v54  ;;  %v2773_v29 = vmax.f32 %v2129_v10, 0.0 }
 0x268   : > { %4577 = vst.msk [vmem:[%s6749_s9 + $0x1ec] sm:$0xf] %vm4453_vm2, %v5457_v3  ;;  %4705 = vst.msk [vmem:[%s6749_s9 + $0x3ec] sm:$0xf] %vm4453_vm2, %v5585_v7  ;;  %v2901_v6 = vmax.f32 %v2641_v53, 0.0  ;;  %v2132_v45 = vadd.f32 %v8414_v28, %v8343_v43  ;;  %v2644_v40 = vadd.f32 %v8414_v28, %v8353_v47  ;;  %v2124_v54 = vadd.f32 %v8414_v28, %v8355_v27 }
 0x269   : > { %4575 = vst.msk [vmem:[%s6749_s9 + $0x1e4] sm:$0xf] %vm4453_vm2, %v5455_v42  ;;  %4703 = vst.msk [vmem:[%s6749_s9 + $0x3e4] sm:$0xf] %vm4453_vm2, %v5583_v2  ;;  %v2771_v55 = vmax.f32 %v2121_v41, 0.0  ;;  %v2899_v57 = vmax.f32 %v2633_v24, 0.0  ;;  %v2636_v46 = vadd.f32 %v8414_v28, %v8365_v9  ;;  %v3036_v52 = vmul.f32 %v8439_v34, %v2773_v29 }
 0x26a   : > { %v3164_v43 = vmul.f32 %v8439_v34, %v2901_v6  ;;  %v2774_v22 = vmax.f32 %v2132_v45, 0.0  ;;  %v2902_v47 = vmax.f32 %v2644_v40, 0.0  ;;  %v2772_v37 = vmax.f32 %v2124_v54, 0.0 }
 0x26b   : > { %v3034_v50 = vmul.f32 %v8439_v34, %v2771_v55  ;;  %v3162_v59 = vmul.f32 %v8439_v34, %v2899_v57  ;;  %v2900_v26 = vmax.f32 %v2636_v46, 0.0  ;;  %v3299_v12 = vadd.f32 %v8452_v30, %v3036_v52 }
 0x26c   : > { %v3427_v27 = vadd.f32 %v8452_v30, %v3164_v43  ;;  %v3037_v9 = vmul.f32 %v8439_v34, %v2774_v22  ;;  %v3165_v28 = vmul.f32 %v8439_v34, %v2902_v47  ;;  %v3035_v8 = vmul.f32 %v8439_v34, %v2772_v37 }
 0x26d   : > { %v3297_v31 = vadd.f32 %v8452_v30, %v3034_v50  ;;  %v3425_v17 = vadd.f32 %v8452_v30, %v3162_v59  ;;  %v3163_v18 = vmul.f32 %v8439_v34, %v2900_v26  ;;  %v5460_v32 = vpack.c.bf16 %v3299_v12, %v3299_v12 }
 0x26e   : > { %v5588_v44 = vpack.c.bf16 %v3427_v27, %v3427_v27  ;;  %v3300_v35 = vadd.f32 %v8452_v30, %v3037_v9  ;;  %v3428_v14 = vadd.f32 %v8452_v30, %v3165_v28  ;;  %v3298_v58 = vadd.f32 %v8452_v30, %v3035_v8 }
 0x26f   : > { %v5458_v38 = vpack.c.bf16 %v3297_v31, %v3297_v31  ;;  %v5586_v60 = vpack.c.bf16 %v3425_v17, %v3425_v17  ;;  %v3426_v34 = vadd.f32 %v8452_v30, %v3163_v18  ;;  %4580 = vst.msk [vmem:[%s6749_s9 + $0x1f8] sm:$0xf] %vm4453_vm2, %v5460_v32 }
 0x270   : > { %4708 = vst.msk [vmem:[%s6749_s9 + $0x3f8] sm:$0xf] %vm4453_vm2, %v5588_v44  ;;  %v5461_v0 = vpack.c.bf16 %v3300_v35, %v3300_v35  ;;  %v5589_v4 = vpack.c.bf16 %v3428_v14, %v3428_v14  ;;  %v5459_v30 = vpack.c.bf16 %v3298_v58, %v3298_v58 }
 0x271   : > { %4578 = vst.msk [vmem:[%s6749_s9 + $0x1f0] sm:$0xf] %vm4453_vm2, %v5458_v38  ;;  %4706 = vst.msk [vmem:[%s6749_s9 + $0x3f0] sm:$0xf] %vm4453_vm2, %v5586_v60  ;;  %v5587_v56 = vpack.c.bf16 %v3426_v34, %v3426_v34 }
 0x272   : > { %4581 = vst.msk [vmem:[%s6749_s9 + $0x1fc] sm:$0xf] %vm4453_vm2, %v5461_v0  ;;  %4709 = vst.msk [vmem:[%s6749_s9 + $0x3fc] sm:$0xf] %vm4453_vm2, %v5589_v4 }
 0x273   : > { %4579 = vst.msk [vmem:[%s6749_s9 + $0x1f4] sm:$0xf] %vm4453_vm2, %v5459_v30  ;;  %4707 = vst.msk [vmem:[%s6749_s9 + $0x3f4] sm:$0xf] %vm4453_vm2, %v5587_v56 }
 0x274   : > { %6249 = shalt.err (!%p6246_p1)
}
 0x275   : > { %s6250_s9 = scalar_lea.hbm %s8711_s12, 16384  ;;  %s6254_s28 = scalar_lea.hbm %s8773_s5, 802816 }
 0x276   : > { %p6251_p3 = scmp.ne.s32.totalorder %s8711_s12, %s6250_s9  ;;  %p6255_p0 = scmp.lt.u32.totalorder %s8711_s12, %s8773_s5 }
 0x277   : > { %p6256_p2 = scmp.lt.u32.totalorder %s6254_s28, %s6250_s9  ;;  %p6258_p6 = scmp.lt.u32.totalorder %s6250_s9, %s8711_s12 }
 0x278   : > { %p6252_p4 = pnand %p6251_p3, %p8794_p10 }
 0x279   : > { %p6257_p7 = por %p6256_p2, %p6255_p0 }
 0x27a   : > { %p6253_p5 = pneg %p6252_p4 }
 0x27b   : > { %p6259_p11 = por %p6258_p6, %p6257_p7 }
 0x27d   : > { %p6260_p12 = pnand %p6259_p11, %p6253_p5 }
 0x27f   : > { %6263 = shalt.err (!%p6260_p12)
}
 0x280   : > { %s6308_s13 = smov 64   ;;  %s6309_s22 = smov 4  }
 0x281   : > { %6014 = dma.vmem_to_hbm [thread:$0]  (%p8794_p10), %s8713_s17, 16384, %s8711_s12, %s4711_s14, %s6308_s13, %s6308_s13, %s6309_s22  }
 0x282 PF: > { %p6025_p8 = scmp.ge.s32.totalorder %s6302_s21, 2  ;;  %s4739_s26 = sand.u32 1, %s6290_s18  }
 0x283   : > { %p8795_p9 = scmp.ne.s32.totalorder %s8778_s6, 0  ;;  %s4740_s15 = scalar_lea.sflag [#allocation4], %s4739_s26 }
 0x285   : > { %p6021_p13 = pnand %p6025_p8, %p8795_p9 }
 0x287   : > { %6285 = dma.done.wait (!%p6021_p13), %s4740_s15, 16384  }
 0x288   : > { %6287 = vsyncadd (!%p6021_p13), %s4740_s15, 4294950912  ;;  %p18_p1 = scmp.ge.s32.totalorder %s6365_s24, 51   ;;  %s8796_s18 = smov %s6294_s19 }
 0x289   : > { %s8797_s19 = smov %s6298_s20  ;;  %s8798_s20 = smov %s6377_s27 }
 0x28a   : > { %s8799_s21 = smov %s6365_s24  ;;  %20 = sbr.rel (!%p18_p1) target bundleno = 5 (0x5), region = 85 }
 0x291   :  { %4745 = vsyncpa [#allocation3], 1 }
 0x292   :  { %4747 = vsyncpa [#allocation3 + $0x1], 1 }
 0x293   :  { %4748 = vsyncpa [#allocation4], 1 }
 0x294   :  { %4750 = vsyncpa [#allocation4 + $0x1], 1 }

</bundles_post_ra>
